<compile_context>
chip_gen: v6e
topology: v6e:2x2x1
jax: 0.10.0
libtpu: 0.0.40
codegen_flags: <defaults>
</compile_context>

<pallas_src>
import math

import jax
import jax.numpy as jnp
from jax import lax
from jax.experimental import pallas as pl
from jax.experimental.pallas import tpu as pltpu


# ----------------------------- helpers ------------------------------------ #

def _gelu_exact(x):
    # matches torch.nn.GELU() default (erf-based, exact)
    return 0.5 * x * (1.0 + lax.erf(x * (1.0 / math.sqrt(2.0))))


def _mxu(a, b):
    # bf16 MXU operands, f32 accumulation; elementwise math stays f32.
    return jnp.dot(a.astype(jnp.bfloat16), b.astype(jnp.bfloat16),
                   preferred_element_type=jnp.float32)


# --------------------------- Pallas kernel --------------------------------- #

def _make_expert_kernel(*, tb, S, S_max, D, H, d_out, n_lin):
    """grid = (batch_block, expert); output block is the resident accumulator."""
    N = tb * S_max  # rows of the pooled/padded activation block

    def kernel(mask_ref, gate_ref, x_ref, pool_ref, wmlp_ref, bias_ref,
               wtb_ref, shiftm_ref, wr_ref, br_ref, out_ref, hp_ref):
        bb = pl.program_id(0)
        e = pl.program_id(1)

        @pl.when(e == 0)
        def _init():
            out_ref[...] = jnp.zeros_like(out_ref)

        # softmax gates are strictly positive, so `!= 0` exactly marks routed
        # experts (see correctness note in the wrapper).
        @pl.when(mask_ref[bb, e] != 0)
        def _compute():
            pool = pool_ref[0]                               # [S_max, S] bf16

            # 1) avg_pool1d downsample, per batch element (shared [S_max, S]
            #    operator — no tb-block-diagonal Kron).  Padded rows (t >= S_i)
            #    are exact zeros here; they only carry propagated biases later
            #    (wasted but harmless — masked out by wr's zero columns).
            for b in range(tb):
                hp_ref[pl.ds(b * S_max, S_max), :] = jnp.dot(
                    pool, x_ref[pl.ds(b * S, S), :],
                    preferred_element_type=jnp.float32)
            h = hp_ref[...]                                  # [N, D] f32

            # 2) BasicExpert MLP, M-batched over all tb*S_max rows; weights
            #    come from one packed slab sliced with static pl.ds.
            h = _mxu(h, wmlp_ref[0, pl.ds(0, D), :]) + bias_ref[0, :, pl.ds(0, H)]
            for l in range(1, n_lin):
                w_off = D + (l - 1) * H
                h = (_mxu(_gelu_exact(h), wmlp_ref[0, pl.ds(w_off, H), :])
                     + bias_ref[0, :, pl.ds(l * H, H)])      # [N, H] f32

            # 3) TimeBlock: +-1 time shifts via XLU roll + precomputed
            #    edge / block-boundary masks (replaces two [N,N] shift matmuls).
            sm = shiftm_ref[0]                               # [N, 2] f32
            h_prev = pltpu.roll(h, shift=1, axis=0) * sm[:, 0:1]
            h_next = pltpu.roll(h, shift=N - 1, axis=0) * sm[:, 1:2]
            z = (_mxu(h_prev, wtb_ref[0, pl.ds(0, H), :])
                 + _mxu(h, wtb_ref[0, pl.ds(H, H), :])
                 + _mxu(h_next, wtb_ref[0, pl.ds(2 * H, H), :])
                 + bias_ref[0, :, pl.ds(n_lin * H, 3 * d_out)])   # [N, 3*Dout]
            tconv = z[:, 0:d_out]
            tgate = z[:, d_out:2 * d_out]
            skip = z[:, 2 * d_out:3 * d_out]
            g = _gelu_exact(tconv * jax.nn.sigmoid(tgate) + skip)  # [N, Dout]

            # 4) restore_linear back to S steps + per-batch router gate
            #    (SMEM scalar), accumulated into the resident output block.
            wr = wr_ref[0]                                   # [S, S_max] bf16
            br_col = br_ref[0]                               # [S, 1] f32
            gbf = g.astype(jnp.bfloat16)
            for b in range(tb):
                gate_b = gate_ref[bb * tb + b, e]            # SMEM f32 scalar
                contrib = jnp.dot(wr, gbf[b * S_max:(b + 1) * S_max, :],
                                  preferred_element_type=jnp.float32) + br_col
                out_ref[pl.ds(b * S, S), :] += gate_b * contrib

    return kernel


# ------------------------------ wrappers ----------------------------------- #

def _router_xla(x, r):
    """Tiny router folded into XLA (f32, HIGHEST precision) — not worth a
    pallas_call launch; the Conv1d(D->1, k=3, pad=1) is pre-folded into kmat."""
    B = x.shape[0]
    hp = lax.Precision.HIGHEST
    x_flat = x.reshape(B, -1)                                 # [B, S*D]
    rconv = jnp.dot(x_flat, r['kmat'], precision=hp)          # [B, S]
    h = _gelu_exact(jnp.dot(rconv, r['w1t'], precision=hp) + r['b1'])
    logits = jnp.dot(h, r['w2t'], precision=hp) + r['b2']     # [B, E]
    return jax.nn.softmax(logits, axis=-1)


def _experts_pallas(x, gates, pk, *, tb):
    B, S, D = x.shape
    pool, wmlp, bias = pk['pool'], pk['wmlp'], pk['bias']
    wtb, wr, br = pk['wtb'], pk['wr'], pk['br']

    # all statics re-derived from packed array shapes (jit-safe)
    E, S_max, S_p = pool.shape
    H = wmlp.shape[2]
    d_out = wtb.shape[2] // 3
    n_lin = (bias.shape[2] - 3 * d_out) // H
    assert S_p == S and S_max == S // 2 and d_out == D
    assert wmlp.shape[1] == D + (n_lin - 1) * H

    if tb is None:
        tb = B        # 1 fat block: best on 1-TC v5e/v6e; use tb=B//2 on v7x
    assert B % tb == 0
    NB = B // tb
    TBS = tb * S
    N = tb * S_max
    assert TBS % 8 == 0 and S % 2 == 0

    f32 = jnp.float32

    # per-(block, expert) skip mask — softmax gates are strictly positive so an
    # exact zero means "not routed".
    mask = (gates.reshape(NB, tb, E) != 0).any(axis=1).astype(jnp.int32)

    # edge / block-boundary masks for the rolled +-1 time shifts
    # (constant-folded by XLA at compile time: depends only on static shapes)
    loc = jnp.tile(jnp.arange(S_max, dtype=jnp.int32), tb)                   # [N]
    s_i = jnp.array([S // (i + 2) for i in range(E)], jnp.int32)             # [E]
    prev_keep = jnp.broadcast_to((loc > 0)[None, :], (E, N)).astype(f32)
    next_keep = (loc[None, :] < (s_i[:, None] - 1)).astype(f32)
    shiftmask = jnp.stack([prev_keep, next_keep], axis=-1)                   # [E, N, 2]

    x_flat = x.reshape(B * S, D).astype(jnp.bfloat16)

    kernel = _make_expert_kernel(tb=tb, S=S, S_max=S_max, D=D, H=H,
                                 d_out=d_out, n_lin=n_lin)

    out = pl.pallas_call(
        kernel,
        grid=(NB, E),
        in_specs=[
            pl.BlockSpec(memory_space=pltpu.MemorySpace.SMEM),             # mask  [NB, E] i32
            pl.BlockSpec(memory_space=pltpu.MemorySpace.SMEM),             # gates [B, E]  f32
            pl.BlockSpec((TBS, D), lambda bb, e: (bb, 0)),                 # x (bf16)
            pl.BlockSpec((1, S_max, S), lambda bb, e: (e, 0, 0)),          # pool
            pl.BlockSpec((1, wmlp.shape[1], H), lambda bb, e: (e, 0, 0)),  # MLP slab
            pl.BlockSpec((1, 1, bias.shape[2]), lambda bb, e: (e, 0, 0)),  # bias slab
            pl.BlockSpec((1, 3 * H, 3 * d_out), lambda bb, e: (e, 0, 0)),  # TimeBlock taps
            pl.BlockSpec((1, N, 2), lambda bb, e: (e, 0, 0)),              # shift masks
            pl.BlockSpec((1, S, S_max), lambda bb, e: (e, 0, 0)),          # restore W
            pl.BlockSpec((1, S, 1), lambda bb, e: (e, 0, 0)),              # restore b
        ],
        out_specs=pl.BlockSpec((TBS, D), lambda bb, e: (bb, 0)),
        out_shape=jax.ShapeDtypeStruct((B * S, D), jnp.float32),
        scratch_shapes=[pltpu.VMEM((N, D), jnp.float32)],                  # pooled act
        compiler_params=pltpu.CompilerParams(
            dimension_semantics=("parallel", "arbitrary"),
            vmem_limit_bytes=32 * 1024 * 1024),
    )(mask, gates, x_flat, pool, wmlp, bias, wtb, shiftmask, wr, br)
    return out.reshape(B, S, D)


def spare_moe_forward(packed, x, top_k, *, tb=None):
    """x: [batch, seq_length(=in_channel), dim]."""
    B, S, D = x.shape
    E = packed['pool'].shape[0]

    probs = _router_xla(x, packed['router'])                  # [B, E] f32
    vals, idxs = lax.top_k(probs, top_k)
    vals = vals / jnp.sum(vals, axis=1, keepdims=True)
    # dense gate matrix (zero for unselected experts) == torch where/index_add_
    gates = jnp.zeros((B, E), jnp.float32).at[
        jnp.arange(B)[:, None], idxs].set(vals)

    return _experts_pallas(x, gates, packed, tb=tb)


# ------------------------ one-time parameter prepack ----------------------- #

def prepack_params(params):
    """Hoists all weight re-layout out of the per-forward path (run once)."""
    experts = params['experts']
    E = len(experts)
    n_lin = len(experts[0]['mlp'])
    H, D = experts[0]['mlp'][0][0].shape
    d_out = experts[0]['wtc'].shape[0]
    S = experts[0]['br'].shape[0]          # out_channel == in_channel == seq len
    S_max = S // 2
    f32, bf = jnp.float32, jnp.bfloat16

    pools, wmlps, biases, wtbs, wrs, brs = [], [], [], [], [], []
    for i, ep in enumerate(experts):
        f = i + 2
        S_i = S // f
        rows = jnp.arange(S_max)[:, None]
        cols = jnp.arange(S)[None, :]
        pool = jnp.where((rows < S_i) & (cols >= rows * f) & (cols < (rows + 1) * f),
                         1.0 / f, 0.0).astype(f32)            # [S_max, S], pad rows 0
        pools.append(pool)
        wmlps.append(jnp.concatenate([w.T for (w, _) in ep['mlp']], axis=0))
        biases.append(jnp.concatenate(
            [b for (_, b) in ep['mlp']] + [ep['btc'], ep['btg'], ep['bsk']])[None, :])
        zeros_hd = jnp.zeros((H, d_out), f32)
        wp = jnp.concatenate([ep['wtc'][:, :, 0].T, ep['wtg'][:, :, 0].T, zeros_hd], axis=1)
        wm = jnp.concatenate([ep['wtc'][:, :, 1].T, ep['wtg'][:, :, 1].T,
                              ep['wsk'][:, :, 0].T], axis=1)
        wn = jnp.concatenate([ep['wtc'][:, :, 2].T, ep['wtg'][:, :, 2].T, zeros_hd], axis=1)
        wtbs.append(jnp.concatenate([wp, wm, wn], axis=0))    # [3H, 3*Dout]
        wr_pad = jnp.zeros((S, S_max), f32).at[:, :S_i].set(ep['wr'])
        wrs.append(wr_pad)
        brs.append(ep['br'][:, None])                         # [S, 1]

    packed = dict(
        pool=jnp.stack(pools).astype(bf),                     # [E, S_max, S]
        wmlp=jnp.stack(wmlps).astype(bf),                     # [E, D+(n-1)H, H]
        bias=jnp.stack(biases).astype(f32),                   # [E, 1, n_lin*H+3*Dout]
        wtb=jnp.stack(wtbs).astype(bf),                       # [E, 3H, 3*Dout]
        wr=jnp.stack(wrs).astype(bf),                         # [E, S, S_max]
        br=jnp.stack(brs).astype(f32),                        # [E, S, 1]
    )

    # Router: fold Conv1d(D->1, k=3, pad=1) into a single [S*D, S] matrix and
    # its bias into the first linear's bias.
    rp = params['router']
    wc = rp['wc'][0]                                          # [D, 3]
    shifts = jnp.stack([jnp.eye(S, k=1 - k, dtype=f32) for k in range(3)])
    kmat = jnp.einsum('dk,kps->pds', wc, shifts).reshape(S * D, S)
    b1_eff = rp['b1'] + rp['bc'][0] * jnp.sum(rp['w1'], axis=1)
    packed['router'] = dict(kmat=kmat, w1t=rp['w1'].T, b1=b1_eff[None, :],
                            w2t=rp['w2'].T, b2=rp['b2'][None, :])
    return packed


# -------------------------- parameter creation ----------------------------- #

def _linear(key, fan_in, fan_out):
    kw, kb = jax.random.split(key)
    s = 1.0 / math.sqrt(fan_in)
    w = jax.random.uniform(kw, (fan_out, fan_in), jnp.float32, -s, s)
    b = jax.random.uniform(kb, (fan_out,), jnp.float32, -s, s)
    return w, b


def _conv1d(key, cin, cout, k):
    kw, kb = jax.random.split(key)
    s = 1.0 / math.sqrt(cin * k)
    w = jax.random.uniform(kw, (cout, cin, k), jnp.float32, -s, s)
    b = jax.random.uniform(kb, (cout,), jnp.float32, -s, s)
    return w, b


def init_params(key, *, in_dim, hidden_dim, out_dim, num_expert, num_layer,
                in_channel, out_channel):
    assert in_channel >= num_expert
    keys = jax.random.split(key, num_expert + 1)
    experts = []
    n_lin = num_layer + 1
    for i in range(num_expert):
        ek = jax.random.split(keys[i], n_lin + 4)
        mlp = []
        fan_in = in_dim
        for layer in range(n_lin):
            mlp.append(_linear(ek[layer], fan_in, hidden_dim))
            fan_in = hidden_dim
        wtc, btc = _conv1d(ek[n_lin], hidden_dim, out_dim, 3)
        wsk, bsk = _conv1d(ek[n_lin + 1], hidden_dim, out_dim, 1)
        wtg, btg = _conv1d(ek[n_lin + 2], hidden_dim, out_dim, 3)
        S_i = in_channel // (i + 2)
        wr, br = _linear(ek[n_lin + 3], S_i, out_channel)
        experts.append(dict(mlp=mlp, wtc=wtc, btc=btc, wsk=wsk, bsk=bsk,
                            wtg=wtg, btg=btg, wr=wr, br=br))
    rk = jax.random.split(keys[-1], 3)
    wc, bc = _conv1d(rk[0], in_dim, 1, 3)
    w1, b1 = _linear(rk[1], in_channel, in_channel * 4)
    w2, b2 = _linear(rk[2], in_channel * 4, num_expert)
    return dict(experts=experts,
                router=dict(wc=wc, bc=bc, w1=w1, b1=b1, w2=w2, b2=b2))


# ---------------------- pure-JAX reference (validation) -------------------- #

def reference_forward(params, x, top_k):
    B, S, D = x.shape
    rp = params['router']
    xt = jnp.transpose(x, (0, 2, 1))
    xpad = jnp.pad(xt, ((0, 0), (0, 0), (1, 1)))
    r = rp['bc'][0] + sum(
        jnp.einsum('bdt,d->bt', xpad[:, :, k:k + S], rp['wc'][0, :, k])
        for k in range(3))
    h = _gelu_exact(r @ rp['w1'].T + rp['b1'])
    logits = h @ rp['w2'].T + rp['b2']
    probs = jax.nn.softmax(logits, axis=1)
    vals, idxs = lax.top_k(probs, top_k)
    vals = vals / jnp.sum(vals, axis=1, keepdims=True)

    final = jnp.zeros_like(x)
    for i, ep in enumerate(params['experts']):
        f = i + 2
        S_i = S // f
        xds = jnp.mean(x[:, :S_i * f, :].reshape(B, S_i, f, D), axis=2)
        h = xds @ ep['mlp'][0][0].T + ep['mlp'][0][1]
        for (w, bvec) in ep['mlp'][1:]:
            h = _gelu_exact(h) @ w.T + bvec
        ht = jnp.transpose(h, (0, 2, 1))                    # [B, H, S_i]
        hpad = jnp.pad(ht, ((0, 0), (0, 0), (1, 1)))

        def conv3(w3, b3):
            return b3[None, :, None] + sum(
                jnp.einsum('bct,oc->bot', hpad[:, :, k:k + S_i], w3[:, :, k])
                for k in range(3))

        tc = conv3(ep['wtc'], ep['btc'])
        tg = jax.nn.sigmoid(conv3(ep['wtg'], ep['btg']))
        sk = (jnp.einsum('bct,oc->bot', ht, ep['wsk'][:, :, 0])
              + ep['bsk'][None, :, None])
        g = _gelu_exact(tc * tg + sk)                       # [B, Dout, S_i]
        rest = jnp.einsum('bct,st->bcs', g, ep['wr']) + ep['br'][None, None, :]
        out = jnp.transpose(rest, (0, 2, 1))                # [B, S, Dout]
        gate = jnp.sum(jnp.where(idxs == i, vals, 0.0), axis=1)
        final = final + out * gate[:, None, None]
    return final


# --------------------------------- main ------------------------------------ #

if __name__ == "__main__":
    # seq_length == in_channel == out_channel ; dim == in_dim == out_dim
    B, S, D = 16, 16, 8       # batch, seq_length, feature dim
    H = 32                    # hidden_dim
    E = 4                     # num_expert
    NUM_LAYER = 2
    TOP_K = E // 2

    key = jax.random.PRNGKey(0)
    pkey, xkey = jax.random.split(key)
    params = init_params(pkey, in_dim=D, hidden_dim=H, out_dim=D,
                         num_expert=E, num_layer=NUM_LAYER,
                         in_channel=S, out_channel=S)
    x = jax.random.normal(xkey, (B, S, D), jnp.float32)

    packed = prepack_params(params)      # one-time prepack (hoisted out of forward)

    fwd = jax.jit(lambda pk, xx: spare_moe_forward(pk, xx, TOP_K))
    out = jax.block_until_ready(fwd(packed, x))

    ref = reference_forward(params, x, TOP_K)
    assert out.shape == x.shape
    err = float(jnp.max(jnp.abs(out - ref)))
    # bf16 MXU operands inside the expert kernel -> loosen vs the f32 reference
    tol = 3e-2 + 3e-2 * float(jnp.max(jnp.abs(ref)))
    if not bool(jnp.all(jnp.isfinite(out))) or err > tol:
        raise RuntimeError(f"mismatch vs reference: max abs err = {err} (tol {tol})")

    print("KERNEL_OK")
</pallas_src>

<mosaic_0001>
module attributes {stable_mosaic.version = 11 : i64} {
  func.func @kernel(%arg0: i32, %arg1: i32, %arg2: memref<1x4xi32, #tpu.memory_space<smem>>, %arg3: memref<16x4xf32, #tpu.memory_space<smem>>, %arg4: memref<256x8xbf16, #tpu.memory_space<vmem>>, %arg5: memref<1x8x16xbf16, #tpu.memory_space<vmem>>, %arg6: memref<1x72x32xbf16, #tpu.memory_space<vmem>>, %arg7: memref<1x1x120xf32, #tpu.memory_space<vmem>>, %arg8: memref<1x96x24xbf16, #tpu.memory_space<vmem>>, %arg9: memref<1x128x2xf32, #tpu.memory_space<vmem>>, %arg10: memref<1x16x8xbf16, #tpu.memory_space<vmem>>, %arg11: memref<1x16x1xf32, #tpu.memory_space<vmem>>, %arg12: memref<256x8xf32, #tpu.memory_space<vmem>>, %arg13: memref<128x8xf32, #tpu.memory_space<vmem>>) attributes {dimension_semantics = [#tpu.dimension_semantics<parallel>, #tpu.dimension_semantics<arbitrary>], iteration_bounds = array<i64: 1, 4>, scalar_prefetch = 0 : i64, scratch_operands = 1 : i64, tpu.core_type = #tpu.core_type<tc>, window_params = [{transform_indices = @transform_0, window_bounds = array<i64: 1, 4>}, {transform_indices = @transform_1, window_bounds = array<i64: 16, 4>}, {transform_indices = @transform_2, window_bounds = array<i64: 256, 8>}, {transform_indices = @transform_3, window_bounds = array<i64: 1, 8, 16>}, {transform_indices = @transform_4, window_bounds = array<i64: 1, 72, 32>}, {transform_indices = @transform_5, window_bounds = array<i64: 1, 1, 120>}, {transform_indices = @transform_6, window_bounds = array<i64: 1, 96, 24>}, {transform_indices = @transform_7, window_bounds = array<i64: 1, 128, 2>}, {transform_indices = @transform_8, window_bounds = array<i64: 1, 16, 8>}, {transform_indices = @transform_9, window_bounds = array<i64: 1, 16, 1>}, {transform_indices = @transform_10, window_bounds = array<i64: 256, 8>}]} {
    %c0_i32 = arith.constant 0 : i32
    %0 = arith.cmpi eq, %arg1, %c0_i32 : i32
    %1 = arith.extui %0 : i1 to i32
    %c0_i32_0 = arith.constant 0 : i32
    %2 = arith.cmpi ne, %1, %c0_i32_0 : i32
    scf.if %2 {
      %cst = arith.constant 0.000000e+00 : f32
      %9 = vector.broadcast %cst : f32 to vector<256x8xf32>
      %c0 = arith.constant 0 : index
      %c0_3 = arith.constant 0 : index
      %10 = vector.load %arg12[%c0, %c0_3] : memref<256x8xf32, #tpu.memory_space<vmem>>, vector<256x8xf32>
      tpu.vector_store %arg12[%c0, %c0_3], %9 {strides = array<i32>} : memref<256x8xf32, #tpu.memory_space<vmem>>, vector<256x8xf32>,
    } else {
    }
    %3 = arith.index_cast %arg0 : i32 to index
    %4 = arith.index_cast %arg1 : i32 to index
    %5 = memref.load %arg2[%3, %4] : memref<1x4xi32, #tpu.memory_space<smem>>
    %c0_i32_1 = arith.constant 0 : i32
    %6 = arith.cmpi ne, %5, %c0_i32_1 : i32
    %7 = arith.extui %6 : i1 to i32
    %c0_i32_2 = arith.constant 0 : i32
    %8 = arith.cmpi ne, %7, %c0_i32_2 : i32
    scf.if %8 {
      %c0 = arith.constant 0 : index
      %c0_3 = arith.constant 0 : index
      %c0_4 = arith.constant 0 : index
      %9 = vector.load %arg5[%c0, %c0_3, %c0_4] : memref<1x8x16xbf16, #tpu.memory_space<vmem>>, vector<1x8x16xbf16>
      %10 = vector.shape_cast %9 : vector<1x8x16xbf16> to vector<8x16xbf16>
      %c0_5 = arith.constant 0 : index
      %c0_6 = arith.constant 0 : index
      %11 = vector.load %arg4[%c0_5, %c0_6] : memref<256x8xbf16, #tpu.memory_space<vmem>>, vector<16x8xbf16>
      %cst = arith.constant dense<0.000000e+00> : vector<8x8xf32>
      %12 = tpu.matmul %10, %11, %cst {dimension_numbers = #tpu.dot_dimension_numbers<[1], [0], [0], [1], [0, 0, 1, 1], [], []>} : vector<8x16xbf16>, vector<16x8xbf16>, vector<8x8xf32> -> vector<8x8xf32>
      %c0_7 = arith.constant 0 : index
      %c0_8 = arith.constant 0 : index
      %13 = vector.load %arg13[%c0_7, %c0_8] : memref<128x8xf32, #tpu.memory_space<vmem>>, vector<8x8xf32>
      tpu.vector_store %arg13[%c0_7, %c0_8], %12 {strides = array<i32>} : memref<128x8xf32, #tpu.memory_space<vmem>>, vector<8x8xf32>,
      %c16 = arith.constant 16 : index
      %c0_9 = arith.constant 0 : index
      %14 = vector.load %arg4[%c16, %c0_9] : memref<256x8xbf16, #tpu.memory_space<vmem>>, vector<16x8xbf16>
      %cst_10 = arith.constant dense<0.000000e+00> : vector<8x8xf32>
      %15 = tpu.matmul %10, %14, %cst_10 {dimension_numbers = #tpu.dot_dimension_numbers<[1], [0], [0], [1], [0, 0, 1, 1], [], []>} : vector<8x16xbf16>, vector<16x8xbf16>, vector<8x8xf32> -> vector<8x8xf32>
      %c8 = arith.constant 8 : index
      %c0_11 = arith.constant 0 : index
      %16 = vector.load %arg13[%c8, %c0_11] : memref<128x8xf32, #tpu.memory_space<vmem>>, vector<8x8xf32>
      tpu.vector_store %arg13[%c8, %c0_11], %15 {strides = array<i32>} : memref<128x8xf32, #tpu.memory_space<vmem>>, vector<8x8xf32>,
      %c32 = arith.constant 32 : index
      %c0_12 = arith.constant 0 : index
      %17 = vector.load %arg4[%c32, %c0_12] : memref<256x8xbf16, #tpu.memory_space<vmem>>, vector<16x8xbf16>
      %cst_13 = arith.constant dense<0.000000e+00> : vector<8x8xf32>
      %18 = tpu.matmul %10, %17, %cst_13 {dimension_numbers = #tpu.dot_dimension_numbers<[1], [0], [0], [1], [0, 0, 1, 1], [], []>} : vector<8x16xbf16>, vector<16x8xbf16>, vector<8x8xf32> -> vector<8x8xf32>
      %c16_14 = arith.constant 16 : index
      %c0_15 = arith.constant 0 : index
      %19 = vector.load %arg13[%c16_14, %c0_15] : memref<128x8xf32, #tpu.memory_space<vmem>>, vector<8x8xf32>
      tpu.vector_store %arg13[%c16_14, %c0_15], %18 {strides = array<i32>} : memref<128x8xf32, #tpu.memory_space<vmem>>, vector<8x8xf32>,
      %c48 = arith.constant 48 : index
      %c0_16 = arith.constant 0 : index
      %20 = vector.load %arg4[%c48, %c0_16] : memref<256x8xbf16, #tpu.memory_space<vmem>>, vector<16x8xbf16>
      %cst_17 = arith.constant dense<0.000000e+00> : vector<8x8xf32>
      %21 = tpu.matmul %10, %20, %cst_17 {dimension_numbers = #tpu.dot_dimension_numbers<[1], [0], [0], [1], [0, 0, 1, 1], [], []>} : vector<8x16xbf16>, vector<16x8xbf16>, vector<8x8xf32> -> vector<8x8xf32>
      %c24 = arith.constant 24 : index
      %c0_18 = arith.constant 0 : index
      %22 = vector.load %arg13[%c24, %c0_18] : memref<128x8xf32, #tpu.memory_space<vmem>>, vector<8x8xf32>
      tpu.vector_store %arg13[%c24, %c0_18], %21 {strides = array<i32>} : memref<128x8xf32, #tpu.memory_space<vmem>>, vector<8x8xf32>,
      %c64 = arith.constant 64 : index
      %c0_19 = arith.constant 0 : index
      %23 = vector.load %arg4[%c64, %c0_19] : memref<256x8xbf16, #tpu.memory_space<vmem>>, vector<16x8xbf16>
      %cst_20 = arith.constant dense<0.000000e+00> : vector<8x8xf32>
      %24 = tpu.matmul %10, %23, %cst_20 {dimension_numbers = #tpu.dot_dimension_numbers<[1], [0], [0], [1], [0, 0, 1, 1], [], []>} : vector<8x16xbf16>, vector<16x8xbf16>, vector<8x8xf32> -> vector<8x8xf32>
      %c32_21 = arith.constant 32 : index
      %c0_22 = arith.constant 0 : index
      %25 = vector.load %arg13[%c32_21, %c0_22] : memref<128x8xf32, #tpu.memory_space<vmem>>, vector<8x8xf32>
      tpu.vector_store %arg13[%c32_21, %c0_22], %24 {strides = array<i32>} : memref<128x8xf32, #tpu.memory_space<vmem>>, vector<8x8xf32>,
      %c80 = arith.constant 80 : index
      %c0_23 = arith.constant 0 : index
      %26 = vector.load %arg4[%c80, %c0_23] : memref<256x8xbf16, #tpu.memory_space<vmem>>, vector<16x8xbf16>
      %cst_24 = arith.constant dense<0.000000e+00> : vector<8x8xf32>
      %27 = tpu.matmul %10, %26, %cst_24 {dimension_numbers = #tpu.dot_dimension_numbers<[1], [0], [0], [1], [0, 0, 1, 1], [], []>} : vector<8x16xbf16>, vector<16x8xbf16>, vector<8x8xf32> -> vector<8x8xf32>
      %c40 = arith.constant 40 : index
      %c0_25 = arith.constant 0 : index
      %28 = vector.load %arg13[%c40, %c0_25] : memref<128x8xf32, #tpu.memory_space<vmem>>, vector<8x8xf32>
      tpu.vector_store %arg13[%c40, %c0_25], %27 {strides = array<i32>} : memref<128x8xf32, #tpu.memory_space<vmem>>, vector<8x8xf32>,
      %c96 = arith.constant 96 : index
      %c0_26 = arith.constant 0 : index
      %29 = vector.load %arg4[%c96, %c0_26] : memref<256x8xbf16, #tpu.memory_space<vmem>>, vector<16x8xbf16>
      %cst_27 = arith.constant dense<0.000000e+00> : vector<8x8xf32>
      %30 = tpu.matmul %10, %29, %cst_27 {dimension_numbers = #tpu.dot_dimension_numbers<[1], [0], [0], [1], [0, 0, 1, 1], [], []>} : vector<8x16xbf16>, vector<16x8xbf16>, vector<8x8xf32> -> vector<8x8xf32>
      %c48_28 = arith.constant 48 : index
      %c0_29 = arith.constant 0 : index
      %31 = vector.load %arg13[%c48_28, %c0_29] : memref<128x8xf32, #tpu.memory_space<vmem>>, vector<8x8xf32>
      tpu.vector_store %arg13[%c48_28, %c0_29], %30 {strides = array<i32>} : memref<128x8xf32, #tpu.memory_space<vmem>>, vector<8x8xf32>,
      %c112 = arith.constant 112 : index
      %c0_30 = arith.constant 0 : index
      %32 = vector.load %arg4[%c112, %c0_30] : memref<256x8xbf16, #tpu.memory_space<vmem>>, vector<16x8xbf16>
      %cst_31 = arith.constant dense<0.000000e+00> : vector<8x8xf32>
      %33 = tpu.matmul %10, %32, %cst_31 {dimension_numbers = #tpu.dot_dimension_numbers<[1], [0], [0], [1], [0, 0, 1, 1], [], []>} : vector<8x16xbf16>, vector<16x8xbf16>, vector<8x8xf32> -> vector<8x8xf32>
      %c56 = arith.constant 56 : index
      %c0_32 = arith.constant 0 : index
      %34 = vector.load %arg13[%c56, %c0_32] : memref<128x8xf32, #tpu.memory_space<vmem>>, vector<8x8xf32>
      tpu.vector_store %arg13[%c56, %c0_32], %33 {strides = array<i32>} : memref<128x8xf32, #tpu.memory_space<vmem>>, vector<8x8xf32>,
      %c128 = arith.constant 128 : index
      %c0_33 = arith.constant 0 : index
      %35 = vector.load %arg4[%c128, %c0_33] : memref<256x8xbf16, #tpu.memory_space<vmem>>, vector<16x8xbf16>
      %cst_34 = arith.constant dense<0.000000e+00> : vector<8x8xf32>
      %36 = tpu.matmul %10, %35, %cst_34 {dimension_numbers = #tpu.dot_dimension_numbers<[1], [0], [0], [1], [0, 0, 1, 1], [], []>} : vector<8x16xbf16>, vector<16x8xbf16>, vector<8x8xf32> -> vector<8x8xf32>
      %c64_35 = arith.constant 64 : index
      %c0_36 = arith.constant 0 : index
      %37 = vector.load %arg13[%c64_35, %c0_36] : memref<128x8xf32, #tpu.memory_space<vmem>>, vector<8x8xf32>
      tpu.vector_store %arg13[%c64_35, %c0_36], %36 {strides = array<i32>} : memref<128x8xf32, #tpu.memory_space<vmem>>, vector<8x8xf32>,
      %c144 = arith.constant 144 : index
      %c0_37 = arith.constant 0 : index
      %38 = vector.load %arg4[%c144, %c0_37] : memref<256x8xbf16, #tpu.memory_space<vmem>>, vector<16x8xbf16>
      %cst_38 = arith.constant dense<0.000000e+00> : vector<8x8xf32>
      %39 = tpu.matmul %10, %38, %cst_38 {dimension_numbers = #tpu.dot_dimension_numbers<[1], [0], [0], [1], [0, 0, 1, 1], [], []>} : vector<8x16xbf16>, vector<16x8xbf16>, vector<8x8xf32> -> vector<8x8xf32>
      %c72 = arith.constant 72 : index
      %c0_39 = arith.constant 0 : index
      %40 = vector.load %arg13[%c72, %c0_39] : memref<128x8xf32, #tpu.memory_space<vmem>>, vector<8x8xf32>
      tpu.vector_store %arg13[%c72, %c0_39], %39 {strides = array<i32>} : memref<128x8xf32, #tpu.memory_space<vmem>>, vector<8x8xf32>,
      %c160 = arith.constant 160 : index
      %c0_40 = arith.constant 0 : index
      %41 = vector.load %arg4[%c160, %c0_40] : memref<256x8xbf16, #tpu.memory_space<vmem>>, vector<16x8xbf16>
      %cst_41 = arith.constant dense<0.000000e+00> : vector<8x8xf32>
      %42 = tpu.matmul %10, %41, %cst_41 {dimension_numbers = #tpu.dot_dimension_numbers<[1], [0], [0], [1], [0, 0, 1, 1], [], []>} : vector<8x16xbf16>, vector<16x8xbf16>, vector<8x8xf32> -> vector<8x8xf32>
      %c80_42 = arith.constant 80 : index
      %c0_43 = arith.constant 0 : index
      %43 = vector.load %arg13[%c80_42, %c0_43] : memref<128x8xf32, #tpu.memory_space<vmem>>, vector<8x8xf32>
      tpu.vector_store %arg13[%c80_42, %c0_43], %42 {strides = array<i32>} : memref<128x8xf32, #tpu.memory_space<vmem>>, vector<8x8xf32>,
      %c176 = arith.constant 176 : index
      %c0_44 = arith.constant 0 : index
      %44 = vector.load %arg4[%c176, %c0_44] : memref<256x8xbf16, #tpu.memory_space<vmem>>, vector<16x8xbf16>
      %cst_45 = arith.constant dense<0.000000e+00> : vector<8x8xf32>
      %45 = tpu.matmul %10, %44, %cst_45 {dimension_numbers = #tpu.dot_dimension_numbers<[1], [0], [0], [1], [0, 0, 1, 1], [], []>} : vector<8x16xbf16>, vector<16x8xbf16>, vector<8x8xf32> -> vector<8x8xf32>
      %c88 = arith.constant 88 : index
      %c0_46 = arith.constant 0 : index
      %46 = vector.load %arg13[%c88, %c0_46] : memref<128x8xf32, #tpu.memory_space<vmem>>, vector<8x8xf32>
      tpu.vector_store %arg13[%c88, %c0_46], %45 {strides = array<i32>} : memref<128x8xf32, #tpu.memory_space<vmem>>, vector<8x8xf32>,
      %c192 = arith.constant 192 : index
      %c0_47 = arith.constant 0 : index
      %47 = vector.load %arg4[%c192, %c0_47] : memref<256x8xbf16, #tpu.memory_space<vmem>>, vector<16x8xbf16>
      %cst_48 = arith.constant dense<0.000000e+00> : vector<8x8xf32>
      %48 = tpu.matmul %10, %47, %cst_48 {dimension_numbers = #tpu.dot_dimension_numbers<[1], [0], [0], [1], [0, 0, 1, 1], [], []>} : vector<8x16xbf16>, vector<16x8xbf16>, vector<8x8xf32> -> vector<8x8xf32>
      %c96_49 = arith.constant 96 : index
      %c0_50 = arith.constant 0 : index
      %49 = vector.load %arg13[%c96_49, %c0_50] : memref<128x8xf32, #tpu.memory_space<vmem>>, vector<8x8xf32>
      tpu.vector_store %arg13[%c96_49, %c0_50], %48 {strides = array<i32>} : memref<128x8xf32, #tpu.memory_space<vmem>>, vector<8x8xf32>,
      %c208 = arith.constant 208 : index
      %c0_51 = arith.constant 0 : index
      %50 = vector.load %arg4[%c208, %c0_51] : memref<256x8xbf16, #tpu.memory_space<vmem>>, vector<16x8xbf16>
      %cst_52 = arith.constant dense<0.000000e+00> : vector<8x8xf32>
      %51 = tpu.matmul %10, %50, %cst_52 {dimension_numbers = #tpu.dot_dimension_numbers<[1], [0], [0], [1], [0, 0, 1, 1], [], []>} : vector<8x16xbf16>, vector<16x8xbf16>, vector<8x8xf32> -> vector<8x8xf32>
      %c104 = arith.constant 104 : index
      %c0_53 = arith.constant 0 : index
      %52 = vector.load %arg13[%c104, %c0_53] : memref<128x8xf32, #tpu.memory_space<vmem>>, vector<8x8xf32>
      tpu.vector_store %arg13[%c104, %c0_53], %51 {strides = array<i32>} : memref<128x8xf32, #tpu.memory_space<vmem>>, vector<8x8xf32>,
      %c224 = arith.constant 224 : index
      %c0_54 = arith.constant 0 : index
      %53 = vector.load %arg4[%c224, %c0_54] : memref<256x8xbf16, #tpu.memory_space<vmem>>, vector<16x8xbf16>
      %cst_55 = arith.constant dense<0.000000e+00> : vector<8x8xf32>
      %54 = tpu.matmul %10, %53, %cst_55 {dimension_numbers = #tpu.dot_dimension_numbers<[1], [0], [0], [1], [0, 0, 1, 1], [], []>} : vector<8x16xbf16>, vector<16x8xbf16>, vector<8x8xf32> -> vector<8x8xf32>
      %c112_56 = arith.constant 112 : index
      %c0_57 = arith.constant 0 : index
      %55 = vector.load %arg13[%c112_56, %c0_57] : memref<128x8xf32, #tpu.memory_space<vmem>>, vector<8x8xf32>
      tpu.vector_store %arg13[%c112_56, %c0_57], %54 {strides = array<i32>} : memref<128x8xf32, #tpu.memory_space<vmem>>, vector<8x8xf32>,
      %c240 = arith.constant 240 : index
      %c0_58 = arith.constant 0 : index
      %56 = vector.load %arg4[%c240, %c0_58] : memref<256x8xbf16, #tpu.memory_space<vmem>>, vector<16x8xbf16>
      %cst_59 = arith.constant dense<0.000000e+00> : vector<8x8xf32>
      %57 = tpu.matmul %10, %56, %cst_59 {dimension_numbers = #tpu.dot_dimension_numbers<[1], [0], [0], [1], [0, 0, 1, 1], [], []>} : vector<8x16xbf16>, vector<16x8xbf16>, vector<8x8xf32> -> vector<8x8xf32>
      %c120 = arith.constant 120 : index
      %c0_60 = arith.constant 0 : index
      %58 = vector.load %arg13[%c120, %c0_60] : memref<128x8xf32, #tpu.memory_space<vmem>>, vector<8x8xf32>
      tpu.vector_store %arg13[%c120, %c0_60], %57 {strides = array<i32>} : memref<128x8xf32, #tpu.memory_space<vmem>>, vector<8x8xf32>,
      %c0_61 = arith.constant 0 : index
      %c0_62 = arith.constant 0 : index
      %59 = vector.load %arg13[%c0_61, %c0_62] : memref<128x8xf32, #tpu.memory_space<vmem>>, vector<128x8xf32>
      %c0_63 = arith.constant 0 : index
      %c0_64 = arith.constant 0 : index
      %c0_65 = arith.constant 0 : index
      %60 = vector.load %arg6[%c0_63, %c0_64, %c0_65] : memref<1x72x32xbf16, #tpu.memory_space<vmem>>, vector<1x8x32xbf16>
      %61 = vector.shape_cast %60 : vector<1x8x32xbf16> to vector<8x32xbf16>
      %62 = arith.truncf %59 : vector<128x8xf32> to vector<128x8xbf16>
      %cst_66 = arith.constant dense<0.000000e+00> : vector<128x32xf32>
      %63 = tpu.matmul %62, %61, %cst_66 {dimension_numbers = #tpu.dot_dimension_numbers<[1], [0], [0], [1], [0, 0, 1, 1], [], []>} : vector<128x8xbf16>, vector<8x32xbf16>, vector<128x32xf32> -> vector<128x32xf32>
      %c0_67 = arith.constant 0 : index
      %c0_68 = arith.constant 0 : index
      %c0_69 = arith.constant 0 : index
      %64 = vector.load %arg7[%c0_67, %c0_68, %c0_69] : memref<1x1x120xf32, #tpu.memory_space<vmem>>, vector<1x1x32xf32>
      %65 = vector.shape_cast %64 : vector<1x1x32xf32> to vector<1x32xf32>
      %66 = vector.broadcast %65 : vector<1x32xf32> to vector<128x32xf32>
      %67 = arith.addf %63, %66 : vector<128x32xf32>
      %cst_70 = arith.constant 5.000000e-01 : f32
      %68 = vector.broadcast %cst_70 : f32 to vector<128x32xf32>
      %69 = arith.mulf %68, %67 : vector<128x32xf32>
      %cst_71 = arith.constant 0.707106769 : f32
      %70 = vector.broadcast %cst_71 : f32 to vector<128x32xf32>
      %71 = arith.mulf %67, %70 : vector<128x32xf32>
      %72 = math.erf %71 : vector<128x32xf32>
      %cst_72 = arith.constant 1.000000e+00 : f32
      %73 = vector.broadcast %cst_72 : f32 to vector<128x32xf32>
      %74 = arith.addf %73, %72 : vector<128x32xf32>
      %75 = arith.mulf %69, %74 : vector<128x32xf32>
      %c0_73 = arith.constant 0 : index
      %c8_74 = arith.constant 8 : index
      %c0_75 = arith.constant 0 : index
      %76 = vector.load %arg6[%c0_73, %c8_74, %c0_75] : memref<1x72x32xbf16, #tpu.memory_space<vmem>>, vector<1x32x32xbf16>
      %77 = vector.shape_cast %76 : vector<1x32x32xbf16> to vector<32x32xbf16>
      %78 = arith.truncf %75 : vector<128x32xf32> to vector<128x32xbf16>
      %cst_76 = arith.constant dense<0.000000e+00> : vector<128x32xf32>
      %79 = tpu.matmul %78, %77, %cst_76 {dimension_numbers = #tpu.dot_dimension_numbers<[1], [0], [0], [1], [0, 0, 1, 1], [], []>} : vector<128x32xbf16>, vector<32x32xbf16>, vector<128x32xf32> -> vector<128x32xf32>
      %c0_77 = arith.constant 0 : index
      %c0_78 = arith.constant 0 : index
      %c32_79 = arith.constant 32 : index
      %80 = vector.load %arg7[%c0_77, %c0_78, %c32_79] : memref<1x1x120xf32, #tpu.memory_space<vmem>>, vector<1x1x32xf32>
      %81 = vector.shape_cast %80 : vector<1x1x32xf32> to vector<1x32xf32>
      %82 = vector.broadcast %81 : vector<1x32xf32> to vector<128x32xf32>
      %83 = arith.addf %79, %82 : vector<128x32xf32>
      %cst_80 = arith.constant 5.000000e-01 : f32
      %84 = vector.broadcast %cst_80 : f32 to vector<128x32xf32>
      %85 = arith.mulf %84, %83 : vector<128x32xf32>
      %cst_81 = arith.constant 0.707106769 : f32
      %86 = vector.broadcast %cst_81 : f32 to vector<128x32xf32>
      %87 = arith.mulf %83, %86 : vector<128x32xf32>
      %88 = math.erf %87 : vector<128x32xf32>
      %cst_82 = arith.constant 1.000000e+00 : f32
      %89 = vector.broadcast %cst_82 : f32 to vector<128x32xf32>
      %90 = arith.addf %89, %88 : vector<128x32xf32>
      %91 = arith.mulf %85, %90 : vector<128x32xf32>
      %c0_83 = arith.constant 0 : index
      %c40_84 = arith.constant 40 : index
      %c0_85 = arith.constant 0 : index
      %92 = vector.load %arg6[%c0_83, %c40_84, %c0_85] : memref<1x72x32xbf16, #tpu.memory_space<vmem>>, vector<1x32x32xbf16>
      %93 = vector.shape_cast %92 : vector<1x32x32xbf16> to vector<32x32xbf16>
      %94 = arith.truncf %91 : vector<128x32xf32> to vector<128x32xbf16>
      %cst_86 = arith.constant dense<0.000000e+00> : vector<128x32xf32>
      %95 = tpu.matmul %94, %93, %cst_86 {dimension_numbers = #tpu.dot_dimension_numbers<[1], [0], [0], [1], [0, 0, 1, 1], [], []>} : vector<128x32xbf16>, vector<32x32xbf16>, vector<128x32xf32> -> vector<128x32xf32>
      %c0_87 = arith.constant 0 : index
      %c0_88 = arith.constant 0 : index
      %c64_89 = arith.constant 64 : index
      %96 = vector.load %arg7[%c0_87, %c0_88, %c64_89] : memref<1x1x120xf32, #tpu.memory_space<vmem>>, vector<1x1x32xf32>
      %97 = vector.shape_cast %96 : vector<1x1x32xf32> to vector<1x32xf32>
      %98 = vector.broadcast %97 : vector<1x32xf32> to vector<128x32xf32>
      %99 = arith.addf %95, %98 : vector<128x32xf32>
      %c0_90 = arith.constant 0 : index
      %c0_91 = arith.constant 0 : index
      %c0_92 = arith.constant 0 : index
      %100 = vector.load %arg9[%c0_90, %c0_91, %c0_92] : memref<1x128x2xf32, #tpu.memory_space<vmem>>, vector<1x128x2xf32>
      %101 = vector.shape_cast %100 : vector<1x128x2xf32> to vector<128x2xf32>
      %c1_i32 = arith.constant 1 : i32
      %102 = tpu.dynamic_rotate %99 by %c1_i32 dim 0 : vector<128x32xf32>, i32 -> vector<128x32xf32>
      %103 = vector.extract_strided_slice %101 {offsets = [0, 0], sizes = [128, 1], strides = [1, 1]} : vector<128x2xf32> to vector<128x1xf32>
      %104 = vector.broadcast %103 : vector<128x1xf32> to vector<128x32xf32>
      %105 = arith.mulf %102, %104 : vector<128x32xf32>
      %c127_i32 = arith.constant 127 : i32
      %106 = tpu.dynamic_rotate %99 by %c127_i32 dim 0 : vector<128x32xf32>, i32 -> vector<128x32xf32>
      %107 = vector.extract_strided_slice %101 {offsets = [0, 1], sizes = [128, 1], strides = [1, 1]} : vector<128x2xf32> to vector<128x1xf32>
      %108 = vector.broadcast %107 : vector<128x1xf32> to vector<128x32xf32>
      %109 = arith.mulf %106, %108 : vector<128x32xf32>
      %c0_93 = arith.constant 0 : index
      %c0_94 = arith.constant 0 : index
      %c0_95 = arith.constant 0 : index
      %110 = vector.load %arg8[%c0_93, %c0_94, %c0_95] : memref<1x96x24xbf16, #tpu.memory_space<vmem>>, vector<1x32x24xbf16>
      %111 = vector.shape_cast %110 : vector<1x32x24xbf16> to vector<32x24xbf16>
      %112 = arith.truncf %105 : vector<128x32xf32> to vector<128x32xbf16>
      %cst_96 = arith.constant dense<0.000000e+00> : vector<128x24xf32>
      %113 = tpu.matmul %112, %111, %cst_96 {dimension_numbers = #tpu.dot_dimension_numbers<[1], [0], [0], [1], [0, 0, 1, 1], [], []>} : vector<128x32xbf16>, vector<32x24xbf16>, vector<128x24xf32> -> vector<128x24xf32>
      %c0_97 = arith.constant 0 : index
      %c32_98 = arith.constant 32 : index
      %c0_99 = arith.constant 0 : index
      %114 = vector.load %arg8[%c0_97, %c32_98, %c0_99] : memref<1x96x24xbf16, #tpu.memory_space<vmem>>, vector<1x32x24xbf16>
      %115 = vector.shape_cast %114 : vector<1x32x24xbf16> to vector<32x24xbf16>
      %116 = arith.truncf %99 : vector<128x32xf32> to vector<128x32xbf16>
      %cst_100 = arith.constant dense<0.000000e+00> : vector<128x24xf32>
      %117 = tpu.matmul %116, %115, %cst_100 {dimension_numbers = #tpu.dot_dimension_numbers<[1], [0], [0], [1], [0, 0, 1, 1], [], []>} : vector<128x32xbf16>, vector<32x24xbf16>, vector<128x24xf32> -> vector<128x24xf32>
      %118 = arith.addf %113, %117 : vector<128x24xf32>
      %c0_101 = arith.constant 0 : index
      %c64_102 = arith.constant 64 : index
      %c0_103 = arith.constant 0 : index
      %119 = vector.load %arg8[%c0_101, %c64_102, %c0_103] : memref<1x96x24xbf16, #tpu.memory_space<vmem>>, vector<1x32x24xbf16>
      %120 = vector.shape_cast %119 : vector<1x32x24xbf16> to vector<32x24xbf16>
      %121 = arith.truncf %109 : vector<128x32xf32> to vector<128x32xbf16>
      %cst_104 = arith.constant dense<0.000000e+00> : vector<128x24xf32>
      %122 = tpu.matmul %121, %120, %cst_104 {dimension_numbers = #tpu.dot_dimension_numbers<[1], [0], [0], [1], [0, 0, 1, 1], [], []>} : vector<128x32xbf16>, vector<32x24xbf16>, vector<128x24xf32> -> vector<128x24xf32>
      %123 = arith.addf %118, %122 : vector<128x24xf32>
      %c0_105 = arith.constant 0 : index
      %c0_106 = arith.constant 0 : index
      %c96_107 = arith.constant 96 : index
      %124 = vector.load %arg7[%c0_105, %c0_106, %c96_107] : memref<1x1x120xf32, #tpu.memory_space<vmem>>, vector<1x1x24xf32>
      %125 = vector.shape_cast %124 : vector<1x1x24xf32> to vector<1x24xf32>
      %126 = vector.broadcast %125 : vector<1x24xf32> to vector<128x24xf32>
      %127 = arith.addf %123, %126 : vector<128x24xf32>
      %128 = vector.extract_strided_slice %127 {offsets = [0, 0], sizes = [128, 8], strides = [1, 1]} : vector<128x24xf32> to vector<128x8xf32>
      %129 = vector.extract_strided_slice %127 {offsets = [0, 8], sizes = [128, 8], strides = [1, 1]} : vector<128x24xf32> to vector<128x8xf32>
      %130 = vector.extract_strided_slice %127 {offsets = [0, 16], sizes = [128, 8], strides = [1, 1]} : vector<128x24xf32> to vector<128x8xf32>
      %131 = arith.negf %129 : vector<128x8xf32>
      %132 = math.exp %131 : vector<128x8xf32>
      %cst_108 = arith.constant 1.000000e+00 : f32
      %133 = vector.broadcast %cst_108 : f32 to vector<128x8xf32>
      %134 = arith.addf %133, %132 : vector<128x8xf32>
      %135 = arith.divf %133, %134 : vector<128x8xf32>
      %136 = arith.mulf %128, %135 : vector<128x8xf32>
      %137 = arith.addf %136, %130 : vector<128x8xf32>
      %cst_109 = arith.constant 5.000000e-01 : f32
      %138 = vector.broadcast %cst_109 : f32 to vector<128x8xf32>
      %139 = arith.mulf %138, %137 : vector<128x8xf32>
      %cst_110 = arith.constant 0.707106769 : f32
      %140 = vector.broadcast %cst_110 : f32 to vector<128x8xf32>
      %141 = arith.mulf %137, %140 : vector<128x8xf32>
      %142 = math.erf %141 : vector<128x8xf32>
      %cst_111 = arith.constant 1.000000e+00 : f32
      %143 = vector.broadcast %cst_111 : f32 to vector<128x8xf32>
      %144 = arith.addf %143, %142 : vector<128x8xf32>
      %145 = arith.mulf %139, %144 : vector<128x8xf32>
      %c0_112 = arith.constant 0 : index
      %c0_113 = arith.constant 0 : index
      %c0_114 = arith.constant 0 : index
      %146 = vector.load %arg10[%c0_112, %c0_113, %c0_114] : memref<1x16x8xbf16, #tpu.memory_space<vmem>>, vector<1x16x8xbf16>
      %147 = vector.shape_cast %146 : vector<1x16x8xbf16> to vector<16x8xbf16>
      %c0_115 = arith.constant 0 : index
      %c0_116 = arith.constant 0 : index
      %c0_117 = arith.constant 0 : index
      %148 = vector.load %arg11[%c0_115, %c0_116, %c0_117] : memref<1x16x1xf32, #tpu.memory_space<vmem>>, vector<1x16x1xf32>
      %149 = vector.shape_cast %148 : vector<1x16x1xf32> to vector<16x1xf32>
      %150 = arith.truncf %145 : vector<128x8xf32> to vector<128x8xbf16>
      %c16_i32 = arith.constant 16 : i32
      %151 = arith.muli %arg0, %c16_i32 : i32
      %c0_i32_118 = arith.constant 0 : i32
      %152 = arith.addi %151, %c0_i32_118 : i32
      %153 = arith.index_cast %152 : i32 to index
      %154 = arith.index_cast %arg1 : i32 to index
      %155 = memref.load %arg3[%153, %154] : memref<16x4xf32, #tpu.memory_space<smem>>
      %156 = vector.extract_strided_slice %150 {offsets = [0, 0], sizes = [8, 8], strides = [1, 1]} : vector<128x8xbf16> to vector<8x8xbf16>
      %cst_119 = arith.constant dense<0.000000e+00> : vector<16x8xf32>
      %157 = tpu.matmul %147, %156, %cst_119 {dimension_numbers = #tpu.dot_dimension_numbers<[1], [0], [0], [1], [0, 0, 1, 1], [], []>} : vector<16x8xbf16>, vector<8x8xbf16>, vector<16x8xf32> -> vector<16x8xf32>
      %158 = vector.broadcast %149 : vector<16x1xf32> to vector<16x8xf32>
      %159 = arith.addf %157, %158 : vector<16x8xf32>
      %c0_120 = arith.constant 0 : index
      %c0_121 = arith.constant 0 : index
      %160 = vector.load %arg12[%c0_120, %c0_121] : memref<256x8xf32, #tpu.memory_space<vmem>>, vector<16x8xf32>
      %161 = vector.broadcast %155 : f32 to vector<16x8xf32>
      %162 = arith.mulf %161, %159 : vector<16x8xf32>
      %163 = arith.addf %160, %162 : vector<16x8xf32>
      %c0_122 = arith.constant 0 : index
      %c0_123 = arith.constant 0 : index
      %164 = vector.load %arg12[%c0_122, %c0_123] : memref<256x8xf32, #tpu.memory_space<vmem>>, vector<16x8xf32>
      tpu.vector_store %arg12[%c0_122, %c0_123], %163 {strides = array<i32>} : memref<256x8xf32, #tpu.memory_space<vmem>>, vector<16x8xf32>,
      %c16_i32_124 = arith.constant 16 : i32
      %165 = arith.muli %arg0, %c16_i32_124 : i32
      %c1_i32_125 = arith.constant 1 : i32
      %166 = arith.addi %165, %c1_i32_125 : i32
      %167 = arith.index_cast %166 : i32 to index
      %168 = arith.index_cast %arg1 : i32 to index
      %169 = memref.load %arg3[%167, %168] : memref<16x4xf32, #tpu.memory_space<smem>>
      %170 = vector.extract_strided_slice %150 {offsets = [8, 0], sizes = [8, 8], strides = [1, 1]} : vector<128x8xbf16> to vector<8x8xbf16>
      %cst_126 = arith.constant dense<0.000000e+00> : vector<16x8xf32>
      %171 = tpu.matmul %147, %170, %cst_126 {dimension_numbers = #tpu.dot_dimension_numbers<[1], [0], [0], [1], [0, 0, 1, 1], [], []>} : vector<16x8xbf16>, vector<8x8xbf16>, vector<16x8xf32> -> vector<16x8xf32>
      %172 = vector.broadcast %149 : vector<16x1xf32> to vector<16x8xf32>
      %173 = arith.addf %171, %172 : vector<16x8xf32>
      %c16_127 = arith.constant 16 : index
      %c0_128 = arith.constant 0 : index
      %174 = vector.load %arg12[%c16_127, %c0_128] : memref<256x8xf32, #tpu.memory_space<vmem>>, vector<16x8xf32>
      %175 = vector.broadcast %169 : f32 to vector<16x8xf32>
      %176 = arith.mulf %175, %173 : vector<16x8xf32>
      %177 = arith.addf %174, %176 : vector<16x8xf32>
      %c16_129 = arith.constant 16 : index
      %c0_130 = arith.constant 0 : index
      %178 = vector.load %arg12[%c16_129, %c0_130] : memref<256x8xf32, #tpu.memory_space<vmem>>, vector<16x8xf32>
      tpu.vector_store %arg12[%c16_129, %c0_130], %177 {strides = array<i32>} : memref<256x8xf32, #tpu.memory_space<vmem>>, vector<16x8xf32>,
      %c16_i32_131 = arith.constant 16 : i32
      %179 = arith.muli %arg0, %c16_i32_131 : i32
      %c2_i32 = arith.constant 2 : i32
      %180 = arith.addi %179, %c2_i32 : i32
      %181 = arith.index_cast %180 : i32 to index
      %182 = arith.index_cast %arg1 : i32 to index
      %183 = memref.load %arg3[%181, %182] : memref<16x4xf32, #tpu.memory_space<smem>>
      %184 = vector.extract_strided_slice %150 {offsets = [16, 0], sizes = [8, 8], strides = [1, 1]} : vector<128x8xbf16> to vector<8x8xbf16>
      %cst_132 = arith.constant dense<0.000000e+00> : vector<16x8xf32>
      %185 = tpu.matmul %147, %184, %cst_132 {dimension_numbers = #tpu.dot_dimension_numbers<[1], [0], [0], [1], [0, 0, 1, 1], [], []>} : vector<16x8xbf16>, vector<8x8xbf16>, vector<16x8xf32> -> vector<16x8xf32>
      %186 = vector.broadcast %149 : vector<16x1xf32> to vector<16x8xf32>
      %187 = arith.addf %185, %186 : vector<16x8xf32>
      %c32_133 = arith.constant 32 : index
      %c0_134 = arith.constant 0 : index
      %188 = vector.load %arg12[%c32_133, %c0_134] : memref<256x8xf32, #tpu.memory_space<vmem>>, vector<16x8xf32>
      %189 = vector.broadcast %183 : f32 to vector<16x8xf32>
      %190 = arith.mulf %189, %187 : vector<16x8xf32>
      %191 = arith.addf %188, %190 : vector<16x8xf32>
      %c32_135 = arith.constant 32 : index
      %c0_136 = arith.constant 0 : index
      %192 = vector.load %arg12[%c32_135, %c0_136] : memref<256x8xf32, #tpu.memory_space<vmem>>, vector<16x8xf32>
      tpu.vector_store %arg12[%c32_135, %c0_136], %191 {strides = array<i32>} : memref<256x8xf32, #tpu.memory_space<vmem>>, vector<16x8xf32>,
      %c16_i32_137 = arith.constant 16 : i32
      %193 = arith.muli %arg0, %c16_i32_137 : i32
      %c3_i32 = arith.constant 3 : i32
      %194 = arith.addi %193, %c3_i32 : i32
      %195 = arith.index_cast %194 : i32 to index
      %196 = arith.index_cast %arg1 : i32 to index
      %197 = memref.load %arg3[%195, %196] : memref<16x4xf32, #tpu.memory_space<smem>>
      %198 = vector.extract_strided_slice %150 {offsets = [24, 0], sizes = [8, 8], strides = [1, 1]} : vector<128x8xbf16> to vector<8x8xbf16>
      %cst_138 = arith.constant dense<0.000000e+00> : vector<16x8xf32>
      %199 = tpu.matmul %147, %198, %cst_138 {dimension_numbers = #tpu.dot_dimension_numbers<[1], [0], [0], [1], [0, 0, 1, 1], [], []>} : vector<16x8xbf16>, vector<8x8xbf16>, vector<16x8xf32> -> vector<16x8xf32>
      %200 = vector.broadcast %149 : vector<16x1xf32> to vector<16x8xf32>
      %201 = arith.addf %199, %200 : vector<16x8xf32>
      %c48_139 = arith.constant 48 : index
      %c0_140 = arith.constant 0 : index
      %202 = vector.load %arg12[%c48_139, %c0_140] : memref<256x8xf32, #tpu.memory_space<vmem>>, vector<16x8xf32>
      %203 = vector.broadcast %197 : f32 to vector<16x8xf32>
      %204 = arith.mulf %203, %201 : vector<16x8xf32>
      %205 = arith.addf %202, %204 : vector<16x8xf32>
      %c48_141 = arith.constant 48 : index
      %c0_142 = arith.constant 0 : index
      %206 = vector.load %arg12[%c48_141, %c0_142] : memref<256x8xf32, #tpu.memory_space<vmem>>, vector<16x8xf32>
      tpu.vector_store %arg12[%c48_141, %c0_142], %205 {strides = array<i32>} : memref<256x8xf32, #tpu.memory_space<vmem>>, vector<16x8xf32>,
      %c16_i32_143 = arith.constant 16 : i32
      %207 = arith.muli %arg0, %c16_i32_143 : i32
      %c4_i32 = arith.constant 4 : i32
      %208 = arith.addi %207, %c4_i32 : i32
      %209 = arith.index_cast %208 : i32 to index
      %210 = arith.index_cast %arg1 : i32 to index
      %211 = memref.load %arg3[%209, %210] : memref<16x4xf32, #tpu.memory_space<smem>>
      %212 = vector.extract_strided_slice %150 {offsets = [32, 0], sizes = [8, 8], strides = [1, 1]} : vector<128x8xbf16> to vector<8x8xbf16>
      %cst_144 = arith.constant dense<0.000000e+00> : vector<16x8xf32>
      %213 = tpu.matmul %147, %212, %cst_144 {dimension_numbers = #tpu.dot_dimension_numbers<[1], [0], [0], [1], [0, 0, 1, 1], [], []>} : vector<16x8xbf16>, vector<8x8xbf16>, vector<16x8xf32> -> vector<16x8xf32>
      %214 = vector.broadcast %149 : vector<16x1xf32> to vector<16x8xf32>
      %215 = arith.addf %213, %214 : vector<16x8xf32>
      %c64_145 = arith.constant 64 : index
      %c0_146 = arith.constant 0 : index
      %216 = vector.load %arg12[%c64_145, %c0_146] : memref<256x8xf32, #tpu.memory_space<vmem>>, vector<16x8xf32>
      %217 = vector.broadcast %211 : f32 to vector<16x8xf32>
      %218 = arith.mulf %217, %215 : vector<16x8xf32>
      %219 = arith.addf %216, %218 : vector<16x8xf32>
      %c64_147 = arith.constant 64 : index
      %c0_148 = arith.constant 0 : index
      %220 = vector.load %arg12[%c64_147, %c0_148] : memref<256x8xf32, #tpu.memory_space<vmem>>, vector<16x8xf32>
      tpu.vector_store %arg12[%c64_147, %c0_148], %219 {strides = array<i32>} : memref<256x8xf32, #tpu.memory_space<vmem>>, vector<16x8xf32>,
      %c16_i32_149 = arith.constant 16 : i32
      %221 = arith.muli %arg0, %c16_i32_149 : i32
      %c5_i32 = arith.constant 5 : i32
      %222 = arith.addi %221, %c5_i32 : i32
      %223 = arith.index_cast %222 : i32 to index
      %224 = arith.index_cast %arg1 : i32 to index
      %225 = memref.load %arg3[%223, %224] : memref<16x4xf32, #tpu.memory_space<smem>>
      %226 = vector.extract_strided_slice %150 {offsets = [40, 0], sizes = [8, 8], strides = [1, 1]} : vector<128x8xbf16> to vector<8x8xbf16>
      %cst_150 = arith.constant dense<0.000000e+00> : vector<16x8xf32>
      %227 = tpu.matmul %147, %226, %cst_150 {dimension_numbers = #tpu.dot_dimension_numbers<[1], [0], [0], [1], [0, 0, 1, 1], [], []>} : vector<16x8xbf16>, vector<8x8xbf16>, vector<16x8xf32> -> vector<16x8xf32>
      %228 = vector.broadcast %149 : vector<16x1xf32> to vector<16x8xf32>
      %229 = arith.addf %227, %228 : vector<16x8xf32>
      %c80_151 = arith.constant 80 : index
      %c0_152 = arith.constant 0 : index
      %230 = vector.load %arg12[%c80_151, %c0_152] : memref<256x8xf32, #tpu.memory_space<vmem>>, vector<16x8xf32>
      %231 = vector.broadcast %225 : f32 to vector<16x8xf32>
      %232 = arith.mulf %231, %229 : vector<16x8xf32>
      %233 = arith.addf %230, %232 : vector<16x8xf32>
      %c80_153 = arith.constant 80 : index
      %c0_154 = arith.constant 0 : index
      %234 = vector.load %arg12[%c80_153, %c0_154] : memref<256x8xf32, #tpu.memory_space<vmem>>, vector<16x8xf32>
      tpu.vector_store %arg12[%c80_153, %c0_154], %233 {strides = array<i32>} : memref<256x8xf32, #tpu.memory_space<vmem>>, vector<16x8xf32>,
      %c16_i32_155 = arith.constant 16 : i32
      %235 = arith.muli %arg0, %c16_i32_155 : i32
      %c6_i32 = arith.constant 6 : i32
      %236 = arith.addi %235, %c6_i32 : i32
      %237 = arith.index_cast %236 : i32 to index
      %238 = arith.index_cast %arg1 : i32 to index
      %239 = memref.load %arg3[%237, %238] : memref<16x4xf32, #tpu.memory_space<smem>>
      %240 = vector.extract_strided_slice %150 {offsets = [48, 0], sizes = [8, 8], strides = [1, 1]} : vector<128x8xbf16> to vector<8x8xbf16>
      %cst_156 = arith.constant dense<0.000000e+00> : vector<16x8xf32>
      %241 = tpu.matmul %147, %240, %cst_156 {dimension_numbers = #tpu.dot_dimension_numbers<[1], [0], [0], [1], [0, 0, 1, 1], [], []>} : vector<16x8xbf16>, vector<8x8xbf16>, vector<16x8xf32> -> vector<16x8xf32>
      %242 = vector.broadcast %149 : vector<16x1xf32> to vector<16x8xf32>
      %243 = arith.addf %241, %242 : vector<16x8xf32>
      %c96_157 = arith.constant 96 : index
      %c0_158 = arith.constant 0 : index
      %244 = vector.load %arg12[%c96_157, %c0_158] : memref<256x8xf32, #tpu.memory_space<vmem>>, vector<16x8xf32>
      %245 = vector.broadcast %239 : f32 to vector<16x8xf32>
      %246 = arith.mulf %245, %243 : vector<16x8xf32>
      %247 = arith.addf %244, %246 : vector<16x8xf32>
      %c96_159 = arith.constant 96 : index
      %c0_160 = arith.constant 0 : index
      %248 = vector.load %arg12[%c96_159, %c0_160] : memref<256x8xf32, #tpu.memory_space<vmem>>, vector<16x8xf32>
      tpu.vector_store %arg12[%c96_159, %c0_160], %247 {strides = array<i32>} : memref<256x8xf32, #tpu.memory_space<vmem>>, vector<16x8xf32>,
      %c16_i32_161 = arith.constant 16 : i32
      %249 = arith.muli %arg0, %c16_i32_161 : i32
      %c7_i32 = arith.constant 7 : i32
      %250 = arith.addi %249, %c7_i32 : i32
      %251 = arith.index_cast %250 : i32 to index
      %252 = arith.index_cast %arg1 : i32 to index
      %253 = memref.load %arg3[%251, %252] : memref<16x4xf32, #tpu.memory_space<smem>>
      %254 = vector.extract_strided_slice %150 {offsets = [56, 0], sizes = [8, 8], strides = [1, 1]} : vector<128x8xbf16> to vector<8x8xbf16>
      %cst_162 = arith.constant dense<0.000000e+00> : vector<16x8xf32>
      %255 = tpu.matmul %147, %254, %cst_162 {dimension_numbers = #tpu.dot_dimension_numbers<[1], [0], [0], [1], [0, 0, 1, 1], [], []>} : vector<16x8xbf16>, vector<8x8xbf16>, vector<16x8xf32> -> vector<16x8xf32>
      %256 = vector.broadcast %149 : vector<16x1xf32> to vector<16x8xf32>
      %257 = arith.addf %255, %256 : vector<16x8xf32>
      %c112_163 = arith.constant 112 : index
      %c0_164 = arith.constant 0 : index
      %258 = vector.load %arg12[%c112_163, %c0_164] : memref<256x8xf32, #tpu.memory_space<vmem>>, vector<16x8xf32>
      %259 = vector.broadcast %253 : f32 to vector<16x8xf32>
      %260 = arith.mulf %259, %257 : vector<16x8xf32>
      %261 = arith.addf %258, %260 : vector<16x8xf32>
      %c112_165 = arith.constant 112 : index
      %c0_166 = arith.constant 0 : index
      %262 = vector.load %arg12[%c112_165, %c0_166] : memref<256x8xf32, #tpu.memory_space<vmem>>, vector<16x8xf32>
      tpu.vector_store %arg12[%c112_165, %c0_166], %261 {strides = array<i32>} : memref<256x8xf32, #tpu.memory_space<vmem>>, vector<16x8xf32>,
      %c16_i32_167 = arith.constant 16 : i32
      %263 = arith.muli %arg0, %c16_i32_167 : i32
      %c8_i32 = arith.constant 8 : i32
      %264 = arith.addi %263, %c8_i32 : i32
      %265 = arith.index_cast %264 : i32 to index
      %266 = arith.index_cast %arg1 : i32 to index
      %267 = memref.load %arg3[%265, %266] : memref<16x4xf32, #tpu.memory_space<smem>>
      %268 = vector.extract_strided_slice %150 {offsets = [64, 0], sizes = [8, 8], strides = [1, 1]} : vector<128x8xbf16> to vector<8x8xbf16>
      %cst_168 = arith.constant dense<0.000000e+00> : vector<16x8xf32>
      %269 = tpu.matmul %147, %268, %cst_168 {dimension_numbers = #tpu.dot_dimension_numbers<[1], [0], [0], [1], [0, 0, 1, 1], [], []>} : vector<16x8xbf16>, vector<8x8xbf16>, vector<16x8xf32> -> vector<16x8xf32>
      %270 = vector.broadcast %149 : vector<16x1xf32> to vector<16x8xf32>
      %271 = arith.addf %269, %270 : vector<16x8xf32>
      %c128_169 = arith.constant 128 : index
      %c0_170 = arith.constant 0 : index
      %272 = vector.load %arg12[%c128_169, %c0_170] : memref<256x8xf32, #tpu.memory_space<vmem>>, vector<16x8xf32>
      %273 = vector.broadcast %267 : f32 to vector<16x8xf32>
      %274 = arith.mulf %273, %271 : vector<16x8xf32>
      %275 = arith.addf %272, %274 : vector<16x8xf32>
      %c128_171 = arith.constant 128 : index
      %c0_172 = arith.constant 0 : index
      %276 = vector.load %arg12[%c128_171, %c0_172] : memref<256x8xf32, #tpu.memory_space<vmem>>, vector<16x8xf32>
      tpu.vector_store %arg12[%c128_171, %c0_172], %275 {strides = array<i32>} : memref<256x8xf32, #tpu.memory_space<vmem>>, vector<16x8xf32>,
      %c16_i32_173 = arith.constant 16 : i32
      %277 = arith.muli %arg0, %c16_i32_173 : i32
      %c9_i32 = arith.constant 9 : i32
      %278 = arith.addi %277, %c9_i32 : i32
      %279 = arith.index_cast %278 : i32 to index
      %280 = arith.index_cast %arg1 : i32 to index
      %281 = memref.load %arg3[%279, %280] : memref<16x4xf32, #tpu.memory_space<smem>>
      %282 = vector.extract_strided_slice %150 {offsets = [72, 0], sizes = [8, 8], strides = [1, 1]} : vector<128x8xbf16> to vector<8x8xbf16>
      %cst_174 = arith.constant dense<0.000000e+00> : vector<16x8xf32>
      %283 = tpu.matmul %147, %282, %cst_174 {dimension_numbers = #tpu.dot_dimension_numbers<[1], [0], [0], [1], [0, 0, 1, 1], [], []>} : vector<16x8xbf16>, vector<8x8xbf16>, vector<16x8xf32> -> vector<16x8xf32>
      %284 = vector.broadcast %149 : vector<16x1xf32> to vector<16x8xf32>
      %285 = arith.addf %283, %284 : vector<16x8xf32>
      %c144_175 = arith.constant 144 : index
      %c0_176 = arith.constant 0 : index
      %286 = vector.load %arg12[%c144_175, %c0_176] : memref<256x8xf32, #tpu.memory_space<vmem>>, vector<16x8xf32>
      %287 = vector.broadcast %281 : f32 to vector<16x8xf32>
      %288 = arith.mulf %287, %285 : vector<16x8xf32>
      %289 = arith.addf %286, %288 : vector<16x8xf32>
      %c144_177 = arith.constant 144 : index
      %c0_178 = arith.constant 0 : index
      %290 = vector.load %arg12[%c144_177, %c0_178] : memref<256x8xf32, #tpu.memory_space<vmem>>, vector<16x8xf32>
      tpu.vector_store %arg12[%c144_177, %c0_178], %289 {strides = array<i32>} : memref<256x8xf32, #tpu.memory_space<vmem>>, vector<16x8xf32>,
      %c16_i32_179 = arith.constant 16 : i32
      %291 = arith.muli %arg0, %c16_i32_179 : i32
      %c10_i32 = arith.constant 10 : i32
      %292 = arith.addi %291, %c10_i32 : i32
      %293 = arith.index_cast %292 : i32 to index
      %294 = arith.index_cast %arg1 : i32 to index
      %295 = memref.load %arg3[%293, %294] : memref<16x4xf32, #tpu.memory_space<smem>>
      %296 = vector.extract_strided_slice %150 {offsets = [80, 0], sizes = [8, 8], strides = [1, 1]} : vector<128x8xbf16> to vector<8x8xbf16>
      %cst_180 = arith.constant dense<0.000000e+00> : vector<16x8xf32>
      %297 = tpu.matmul %147, %296, %cst_180 {dimension_numbers = #tpu.dot_dimension_numbers<[1], [0], [0], [1], [0, 0, 1, 1], [], []>} : vector<16x8xbf16>, vector<8x8xbf16>, vector<16x8xf32> -> vector<16x8xf32>
      %298 = vector.broadcast %149 : vector<16x1xf32> to vector<16x8xf32>
      %299 = arith.addf %297, %298 : vector<16x8xf32>
      %c160_181 = arith.constant 160 : index
      %c0_182 = arith.constant 0 : index
      %300 = vector.load %arg12[%c160_181, %c0_182] : memref<256x8xf32, #tpu.memory_space<vmem>>, vector<16x8xf32>
      %301 = vector.broadcast %295 : f32 to vector<16x8xf32>
      %302 = arith.mulf %301, %299 : vector<16x8xf32>
      %303 = arith.addf %300, %302 : vector<16x8xf32>
      %c160_183 = arith.constant 160 : index
      %c0_184 = arith.constant 0 : index
      %304 = vector.load %arg12[%c160_183, %c0_184] : memref<256x8xf32, #tpu.memory_space<vmem>>, vector<16x8xf32>
      tpu.vector_store %arg12[%c160_183, %c0_184], %303 {strides = array<i32>} : memref<256x8xf32, #tpu.memory_space<vmem>>, vector<16x8xf32>,
      %c16_i32_185 = arith.constant 16 : i32
      %305 = arith.muli %arg0, %c16_i32_185 : i32
      %c11_i32 = arith.constant 11 : i32
      %306 = arith.addi %305, %c11_i32 : i32
      %307 = arith.index_cast %306 : i32 to index
      %308 = arith.index_cast %arg1 : i32 to index
      %309 = memref.load %arg3[%307, %308] : memref<16x4xf32, #tpu.memory_space<smem>>
      %310 = vector.extract_strided_slice %150 {offsets = [88, 0], sizes = [8, 8], strides = [1, 1]} : vector<128x8xbf16> to vector<8x8xbf16>
      %cst_186 = arith.constant dense<0.000000e+00> : vector<16x8xf32>
      %311 = tpu.matmul %147, %310, %cst_186 {dimension_numbers = #tpu.dot_dimension_numbers<[1], [0], [0], [1], [0, 0, 1, 1], [], []>} : vector<16x8xbf16>, vector<8x8xbf16>, vector<16x8xf32> -> vector<16x8xf32>
      %312 = vector.broadcast %149 : vector<16x1xf32> to vector<16x8xf32>
      %313 = arith.addf %311, %312 : vector<16x8xf32>
      %c176_187 = arith.constant 176 : index
      %c0_188 = arith.constant 0 : index
      %314 = vector.load %arg12[%c176_187, %c0_188] : memref<256x8xf32, #tpu.memory_space<vmem>>, vector<16x8xf32>
      %315 = vector.broadcast %309 : f32 to vector<16x8xf32>
      %316 = arith.mulf %315, %313 : vector<16x8xf32>
      %317 = arith.addf %314, %316 : vector<16x8xf32>
      %c176_189 = arith.constant 176 : index
      %c0_190 = arith.constant 0 : index
      %318 = vector.load %arg12[%c176_189, %c0_190] : memref<256x8xf32, #tpu.memory_space<vmem>>, vector<16x8xf32>
      tpu.vector_store %arg12[%c176_189, %c0_190], %317 {strides = array<i32>} : memref<256x8xf32, #tpu.memory_space<vmem>>, vector<16x8xf32>,
      %c16_i32_191 = arith.constant 16 : i32
      %319 = arith.muli %arg0, %c16_i32_191 : i32
      %c12_i32 = arith.constant 12 : i32
      %320 = arith.addi %319, %c12_i32 : i32
      %321 = arith.index_cast %320 : i32 to index
      %322 = arith.index_cast %arg1 : i32 to index
      %323 = memref.load %arg3[%321, %322] : memref<16x4xf32, #tpu.memory_space<smem>>
      %324 = vector.extract_strided_slice %150 {offsets = [96, 0], sizes = [8, 8], strides = [1, 1]} : vector<128x8xbf16> to vector<8x8xbf16>
      %cst_192 = arith.constant dense<0.000000e+00> : vector<16x8xf32>
      %325 = tpu.matmul %147, %324, %cst_192 {dimension_numbers = #tpu.dot_dimension_numbers<[1], [0], [0], [1], [0, 0, 1, 1], [], []>} : vector<16x8xbf16>, vector<8x8xbf16>, vector<16x8xf32> -> vector<16x8xf32>
      %326 = vector.broadcast %149 : vector<16x1xf32> to vector<16x8xf32>
      %327 = arith.addf %325, %326 : vector<16x8xf32>
      %c192_193 = arith.constant 192 : index
      %c0_194 = arith.constant 0 : index
      %328 = vector.load %arg12[%c192_193, %c0_194] : memref<256x8xf32, #tpu.memory_space<vmem>>, vector<16x8xf32>
      %329 = vector.broadcast %323 : f32 to vector<16x8xf32>
      %330 = arith.mulf %329, %327 : vector<16x8xf32>
      %331 = arith.addf %328, %330 : vector<16x8xf32>
      %c192_195 = arith.constant 192 : index
      %c0_196 = arith.constant 0 : index
      %332 = vector.load %arg12[%c192_195, %c0_196] : memref<256x8xf32, #tpu.memory_space<vmem>>, vector<16x8xf32>
      tpu.vector_store %arg12[%c192_195, %c0_196], %331 {strides = array<i32>} : memref<256x8xf32, #tpu.memory_space<vmem>>, vector<16x8xf32>,
      %c16_i32_197 = arith.constant 16 : i32
      %333 = arith.muli %arg0, %c16_i32_197 : i32
      %c13_i32 = arith.constant 13 : i32
      %334 = arith.addi %333, %c13_i32 : i32
      %335 = arith.index_cast %334 : i32 to index
      %336 = arith.index_cast %arg1 : i32 to index
      %337 = memref.load %arg3[%335, %336] : memref<16x4xf32, #tpu.memory_space<smem>>
      %338 = vector.extract_strided_slice %150 {offsets = [104, 0], sizes = [8, 8], strides = [1, 1]} : vector<128x8xbf16> to vector<8x8xbf16>
      %cst_198 = arith.constant dense<0.000000e+00> : vector<16x8xf32>
      %339 = tpu.matmul %147, %338, %cst_198 {dimension_numbers = #tpu.dot_dimension_numbers<[1], [0], [0], [1], [0, 0, 1, 1], [], []>} : vector<16x8xbf16>, vector<8x8xbf16>, vector<16x8xf32> -> vector<16x8xf32>
      %340 = vector.broadcast %149 : vector<16x1xf32> to vector<16x8xf32>
      %341 = arith.addf %339, %340 : vector<16x8xf32>
      %c208_199 = arith.constant 208 : index
      %c0_200 = arith.constant 0 : index
      %342 = vector.load %arg12[%c208_199, %c0_200] : memref<256x8xf32, #tpu.memory_space<vmem>>, vector<16x8xf32>
      %343 = vector.broadcast %337 : f32 to vector<16x8xf32>
      %344 = arith.mulf %343, %341 : vector<16x8xf32>
      %345 = arith.addf %342, %344 : vector<16x8xf32>
      %c208_201 = arith.constant 208 : index
      %c0_202 = arith.constant 0 : index
      %346 = vector.load %arg12[%c208_201, %c0_202] : memref<256x8xf32, #tpu.memory_space<vmem>>, vector<16x8xf32>
      tpu.vector_store %arg12[%c208_201, %c0_202], %345 {strides = array<i32>} : memref<256x8xf32, #tpu.memory_space<vmem>>, vector<16x8xf32>,
      %c16_i32_203 = arith.constant 16 : i32
      %347 = arith.muli %arg0, %c16_i32_203 : i32
      %c14_i32 = arith.constant 14 : i32
      %348 = arith.addi %347, %c14_i32 : i32
      %349 = arith.index_cast %348 : i32 to index
      %350 = arith.index_cast %arg1 : i32 to index
      %351 = memref.load %arg3[%349, %350] : memref<16x4xf32, #tpu.memory_space<smem>>
      %352 = vector.extract_strided_slice %150 {offsets = [112, 0], sizes = [8, 8], strides = [1, 1]} : vector<128x8xbf16> to vector<8x8xbf16>
      %cst_204 = arith.constant dense<0.000000e+00> : vector<16x8xf32>
      %353 = tpu.matmul %147, %352, %cst_204 {dimension_numbers = #tpu.dot_dimension_numbers<[1], [0], [0], [1], [0, 0, 1, 1], [], []>} : vector<16x8xbf16>, vector<8x8xbf16>, vector<16x8xf32> -> vector<16x8xf32>
      %354 = vector.broadcast %149 : vector<16x1xf32> to vector<16x8xf32>
      %355 = arith.addf %353, %354 : vector<16x8xf32>
      %c224_205 = arith.constant 224 : index
      %c0_206 = arith.constant 0 : index
      %356 = vector.load %arg12[%c224_205, %c0_206] : memref<256x8xf32, #tpu.memory_space<vmem>>, vector<16x8xf32>
      %357 = vector.broadcast %351 : f32 to vector<16x8xf32>
      %358 = arith.mulf %357, %355 : vector<16x8xf32>
      %359 = arith.addf %356, %358 : vector<16x8xf32>
      %c224_207 = arith.constant 224 : index
      %c0_208 = arith.constant 0 : index
      %360 = vector.load %arg12[%c224_207, %c0_208] : memref<256x8xf32, #tpu.memory_space<vmem>>, vector<16x8xf32>
      tpu.vector_store %arg12[%c224_207, %c0_208], %359 {strides = array<i32>} : memref<256x8xf32, #tpu.memory_space<vmem>>, vector<16x8xf32>,
      %c16_i32_209 = arith.constant 16 : i32
      %361 = arith.muli %arg0, %c16_i32_209 : i32
      %c15_i32 = arith.constant 15 : i32
      %362 = arith.addi %361, %c15_i32 : i32
      %363 = arith.index_cast %362 : i32 to index
      %364 = arith.index_cast %arg1 : i32 to index
      %365 = memref.load %arg3[%363, %364] : memref<16x4xf32, #tpu.memory_space<smem>>
      %366 = vector.extract_strided_slice %150 {offsets = [120, 0], sizes = [8, 8], strides = [1, 1]} : vector<128x8xbf16> to vector<8x8xbf16>
      %cst_210 = arith.constant dense<0.000000e+00> : vector<16x8xf32>
      %367 = tpu.matmul %147, %366, %cst_210 {dimension_numbers = #tpu.dot_dimension_numbers<[1], [0], [0], [1], [0, 0, 1, 1], [], []>} : vector<16x8xbf16>, vector<8x8xbf16>, vector<16x8xf32> -> vector<16x8xf32>
      %368 = vector.broadcast %149 : vector<16x1xf32> to vector<16x8xf32>
      %369 = arith.addf %367, %368 : vector<16x8xf32>
      %c240_211 = arith.constant 240 : index
      %c0_212 = arith.constant 0 : index
      %370 = vector.load %arg12[%c240_211, %c0_212] : memref<256x8xf32, #tpu.memory_space<vmem>>, vector<16x8xf32>
      %371 = vector.broadcast %365 : f32 to vector<16x8xf32>
      %372 = arith.mulf %371, %369 : vector<16x8xf32>
      %373 = arith.addf %370, %372 : vector<16x8xf32>
      %c240_213 = arith.constant 240 : index
      %c0_214 = arith.constant 0 : index
      %374 = vector.load %arg12[%c240_213, %c0_214] : memref<256x8xf32, #tpu.memory_space<vmem>>, vector<16x8xf32>
      tpu.vector_store %arg12[%c240_213, %c0_214], %373 {strides = array<i32>} : memref<256x8xf32, #tpu.memory_space<vmem>>, vector<16x8xf32>,
    } else {
    }
    return
  }
  func.func @transform_0(%arg0: i32, %arg1: i32) -> (i32, i32) {
    %c0_i32 = arith.constant 0 : i32
    %c0_i32_0 = arith.constant 0 : i32
    %c0_i32_1 = arith.constant 0 : i32
    return %c0_i32, %c0_i32_0 : i32, i32
  }
  func.func @transform_1(%arg0: i32, %arg1: i32) -> (i32, i32) {
    %c0_i32 = arith.constant 0 : i32
    %c0_i32_0 = arith.constant 0 : i32
    %c0_i32_1 = arith.constant 0 : i32
    return %c0_i32, %c0_i32_0 : i32, i32
  }
  func.func @transform_2(%arg0: i32, %arg1: i32) -> (i32, i32) {
    %c0_i32 = arith.constant 0 : i32
    %c0_i32_0 = arith.constant 0 : i32
    return %arg0, %c0_i32 : i32, i32
  }
  func.func @transform_3(%arg0: i32, %arg1: i32) -> (i32, i32, i32) {
    %c0_i32 = arith.constant 0 : i32
    %c0_i32_0 = arith.constant 0 : i32
    %c0_i32_1 = arith.constant 0 : i32
    return %arg1, %c0_i32, %c0_i32_0 : i32, i32, i32
  }
  func.func @transform_4(%arg0: i32, %arg1: i32) -> (i32, i32, i32) {
    %c0_i32 = arith.constant 0 : i32
    %c0_i32_0 = arith.constant 0 : i32
    %c0_i32_1 = arith.constant 0 : i32
    return %arg1, %c0_i32, %c0_i32_0 : i32, i32, i32
  }
  func.func @transform_5(%arg0: i32, %arg1: i32) -> (i32, i32, i32) {
    %c0_i32 = arith.constant 0 : i32
    %c0_i32_0 = arith.constant 0 : i32
    %c0_i32_1 = arith.constant 0 : i32
    return %arg1, %c0_i32, %c0_i32_0 : i32, i32, i32
  }
  func.func @transform_6(%arg0: i32, %arg1: i32) -> (i32, i32, i32) {
    %c0_i32 = arith.constant 0 : i32
    %c0_i32_0 = arith.constant 0 : i32
    %c0_i32_1 = arith.constant 0 : i32
    return %arg1, %c0_i32, %c0_i32_0 : i32, i32, i32
  }
  func.func @transform_7(%arg0: i32, %arg1: i32) -> (i32, i32, i32) {
    %c0_i32 = arith.constant 0 : i32
    %c0_i32_0 = arith.constant 0 : i32
    %c0_i32_1 = arith.constant 0 : i32
    return %arg1, %c0_i32, %c0_i32_0 : i32, i32, i32
  }
  func.func @transform_8(%arg0: i32, %arg1: i32) -> (i32, i32, i32) {
    %c0_i32 = arith.constant 0 : i32
    %c0_i32_0 = arith.constant 0 : i32
    %c0_i32_1 = arith.constant 0 : i32
    return %arg1, %c0_i32, %c0_i32_0 : i32, i32, i32
  }
  func.func @transform_9(%arg0: i32, %arg1: i32) -> (i32, i32, i32) {
    %c0_i32 = arith.constant 0 : i32
    %c0_i32_0 = arith.constant 0 : i32
    %c0_i32_1 = arith.constant 0 : i32
    return %arg1, %c0_i32, %c0_i32_0 : i32, i32, i32
  }
  func.func @transform_10(%arg0: i32, %arg1: i32) -> (i32, i32) {
    %c0_i32 = arith.constant 0 : i32
    %c0_i32_0 = arith.constant 0 : i32
    return %arg0, %c0_i32 : i32, i32
  }
}

</mosaic_0001>

<bundles_post_ra>
// kernel: _lambda_.1
= control target key start
LH: loop header
LB: loop body
LE: loop exit
PB: predicated region body
PF: predicated region fallthrough
CT: control target
= control target key end

     0   :  { %s6639_s0 = inlined_call_operand.vmem [shape: s32[1,4], index: 0, kind: input, shape index: {}]   ;;  %s6640_s1 = inlined_call_operand.vmem [shape: f32[16,4], index: 1, kind: input, shape index: {}]   ;;  %s6641_s2 = inlined_call_operand.vmem [shape: bf16[256,8], index: 2, kind: input, shape index: {}]   ;;  %s6642_s3 = inlined_call_operand.vmem [shape: bf16[4,8,16], index: 3, kind: input, shape index: {}]   ;;  %s6643_s4 = inlined_call_operand.vmem [shape: bf16[4,72,32], index: 4, kind: input, shape index: {}]   ;;  %s6644_s5 = inlined_call_operand.vmem [shape: f32[4,1,120], index: 5, kind: input, shape index: {}]   ;;  %s6645_s6 = inlined_call_operand.vmem [shape: bf16[4,96,24], index: 6, kind: input, shape index: {}]   ;;  %s6646_s7 = inlined_call_operand.vmem [shape: f32[4,128,2], index: 7, kind: input, shape index: {}]   ;;  %s6647_s8 = inlined_call_operand.vmem [shape: bf16[4,16,8], index: 8, kind: input, shape index: {}]   ;;  %s6648_s9 = inlined_call_operand.vmem [shape: f32[4,16,1], index: 9, kind: input, shape index: {}]   ;;  %s6649_s10 = inlined_call_operand.vmem [shape: f32[256,8], index: 10, kind: output, shape index: {}]  }
   0x1   :  { %6653 = sst [smem:[#allocation9_spill]] %s6639_s0 }
   0x2   :  { %6654 = sst [smem:[#allocation10_spill]] %s6640_s1 }
   0x3   :  { %6655 = sst [smem:[#allocation11_spill]] %s6642_s3 }
   0x4   :  { %15 = vsyncpa [#allocation4], 0 }
   0x5   :  { %16 = vsyncpa [#allocation6], 0  ;;  %s5222_s13 = smov 0   ;;  %s5224_s14 = smov 0  }
   0x6   :  { %s5226_s15 = smov 0  }
   0x7 LB: > { %s4197_s16 = sadd.s32 4294967295, %s5151_s15   ;;  %s31_s17 = sadd.s32 1, %s5147_s14  ;;  %s5151_s15 = sphi %s5226_s15, %s22_s15   ;;  %s5147_s14 = sphi %s5224_s14, %s6666_s14   ;;  %s5143_s13 = sphi %s5222_s13, %s6665_s13  }
   0x8   : > { %p32_p0 = scmp.ge.s32.totalorder %s31_s17, 4  ;;  %p4198_p1 = scmp.ge.s32.totalorder %s5151_s15, 1 }
   0x9   : > { %p315_p2 = scmp.lt.s32.totalorder %s5151_s15, 5  ;;  %p5247_p4 = scmp.eq.s32.totalorder %s4197_s16, 0 }
   0xa   : > { %s6668_s17 = smov (%p32_p0, %s31_s17), 0  ;;  %s6658_s0 = sld [smem:[#allocation9_spill]] }
   0xb   : > { %p5243_p3 = pnand %p4198_p1, %p315_p2  ;;  %s6659_s1 = sld [smem:[#allocation10_spill]] }
   0xc   : > { %s6657_s19 = scalar_select %p5247_p4, 1, 0 }
   0xd   : > { %s6656_s18 = scalar_select %p5243_p3, 1, 0 }
   0xe   : > { %p4839_p5 = pneg %p5243_p3 }
  0x10   : > { %s328_s22 = sshll.u32 %s6658_s0, 4  ;;  %p5261_p6 = pnand %p5247_p4, %p4839_p5  ;;  %s329_s22 = int_to_ptr.vmem [resolvable:$true] %s328_s22 }
  0x11   : > { %s338_s25 = sshll.u32 %s6659_s1, 4  ;;  %s5091_s27 = scalar_lea.vmem %s329_s22, 16  ;;  %s339_s25 = int_to_ptr.vmem [resolvable:$true] %s338_s25 }
  0x12   : > { %p5092_p7 = scmp.ne.s32.totalorder %s329_s22, %s5091_s27  ;;  %p5093_p8 = pneg %p5261_p6 }
  0x13   : > { %p5099_p11 = scmp.lt.s32.totalorder %s329_s22, %s329_s22  ;;  %p5100_p12 = scmp.lt.s32.totalorder %s5091_s27, %s5091_s27 }
  0x14   : > { %p5094_p9 = pnand %p5093_p8, %p5092_p7 }
  0x15   : > { %p5101_p13 = por %p5100_p12, %p5099_p11 }
  0x16   : > { %p5095_p10 = pneg %p5094_p9 }
  0x18   : > { %p5102_p0 = pnand %p5101_p13, %p5095_p10 }
  0x1a   : > { %5105 = shalt.err (!%p5102_p0)
}
  0x1b   : > { %s5153_s28 = smov [#allocation3]   ;;  %s5106_s29 = scalar_lea.vmem %s339_s25, 256 }
  0x1c   : > { %4842 = dma.vmem_to_smem (!%p5261_p6), %s329_s22, 16, %s5153_s28, [#allocation4]  }
  0x1d   : > { %p5107_p1 = scmp.ne.s32.totalorder %s339_s25, %s5106_s29  ;;  %p5114_p4 = scmp.lt.s32.totalorder %s339_s25, %s339_s25 }
  0x1e   : > { %p5115_p3 = scmp.lt.s32.totalorder %s5106_s29, %s5106_s29 }
  0x1f   : > { %p5109_p2 = pnand %p5107_p1, %p5093_p8 }
  0x20   : > { %p5116_p7 = por %p5115_p3, %p5114_p4 }
  0x21   : > { %p5110_p5 = pneg %p5109_p2 }
  0x23   : > { %p5117_p9 = pnand %p5116_p7, %p5110_p5 }
  0x25   : > { %5120 = shalt.err (!%p5117_p9)
}
  0x26   : > { %s5154_s30 = smov [#allocation5]   ;;  %s5155_s11 = smov 128  }
  0x27   : > { %s5156_s12 = smov 8   ;;  %p6661_p10 = scmp.ne.s32.totalorder %s6656_s18, 0 }
  0x28   : > { %4845 = dma.vmem_to_smem (!%p5261_p6), %s339_s25, 256, %s5154_s30, [#allocation6], %s5155_s11, %s5155_s11, %s5156_s12  }
  0x29   : > { %416 = sbr.rel (%p6661_p10) target bundleno = 1668 (0x684), region = 60  ;;  %p6662_p11 = scmp.ne.s32.totalorder (!%p6661_p10), %s6657_s19, 0 }
  0x2e   : > { %5134 = dma.done.wait (%p6662_p11), [#allocation4], 16  }
  0x2f   : > { %5136 = vsyncadd (%p6662_p11), [#allocation4], 4294967280 }
  0x30   : > { %5138 = dma.done.wait (%p6662_p11), [#allocation6], 256  }
  0x31   : > { %5140 = vsyncadd (%p6662_p11), [#allocation6], 4294967040 }
  0x32   : > { %426 = sfence }
  0x33   : > { %p497_p3 = scmp.lt.s32.totalorder %s5143_s13, 3  ;;  %s6663_s3 = sld [smem:[#allocation11_spill]] }
  0x34   : > { %p4215_p4 = scmp.ne.s32.totalorder %s5143_s13, 0 }
  0x35   : > { %s5283_s16 = scalar_select %p497_p3, %s5143_s13, 3 }
  0x37   : > { %s4206_s18 = sshll.u32 %s5283_s16, 2  ;;  %s4829_s20 = smul.u32 36, %s5283_s16 }
  0x38   : > { %s4830_s29 = smul.u32 48, %s5283_s16  ;;  %s4362_s30 = sshll.u32 %s5283_s16, 7 }
  0x39   : > { %s5290_s19 = scalar_lea.vmem %s6663_s3, %s4206_s18  ;;  %s5299_s28 = scalar_lea.vmem %s6643_s4, %s4829_s20 }
  0x3a   : > { %s4363_s11 = sshll.u32 %s5283_s16, 3  ;;  %s5307_s1 = scalar_lea.vmem %s6645_s6, %s4830_s29 }
  0x3b   : > { %s5312_s22 = scalar_lea.vmem %s6646_s7, %s4362_s30  ;;  %s5317_s25 = scalar_lea.vmem %s6647_s8, %s4363_s11 }
  0x3c   : > { %s4364_s20 = sshll.u32 %s5283_s16, 4  ;;  %539 = sbr.rel (%p4215_p4) target bundleno = 82 (0x52), region = 72 }
  0x3d   : > { %s5323_s3 = scalar_lea.vmem %s6648_s9, %s4364_s20 }
  0x41   : > { %vm540_vm0 = vcmask 64512   ;;  %v5157_v0 = vmov 0.0  }
  0x42   : > { %541 = vst.msk [vmem:[%s6649_s10] sm:$0xff] %vm540_vm0, %v5157_v0  ;;  %542 = vst.msk [vmem:[%s6649_s10 + $0x8] sm:$0xff] %vm540_vm0, %v5157_v0 }
  0x43   : > { %543 = vst.msk [vmem:[%s6649_s10 + $0x10] sm:$0xff] %vm540_vm0, %v5157_v0  ;;  %544 = vst.msk [vmem:[%s6649_s10 + $0x18] sm:$0xff] %vm540_vm0, %v5157_v0 }
  0x44   : > { %545 = vst.msk [vmem:[%s6649_s10 + $0x20] sm:$0xff] %vm540_vm0, %v5157_v0  ;;  %546 = vst.msk [vmem:[%s6649_s10 + $0x28] sm:$0xff] %vm540_vm0, %v5157_v0 }
  0x45   : > { %547 = vst.msk [vmem:[%s6649_s10 + $0x30] sm:$0xff] %vm540_vm0, %v5157_v0  ;;  %548 = vst.msk [vmem:[%s6649_s10 + $0x38] sm:$0xff] %vm540_vm0, %v5157_v0 }
  0x46   : > { %549 = vst.msk [vmem:[%s6649_s10 + $0x40] sm:$0xff] %vm540_vm0, %v5157_v0  ;;  %550 = vst.msk [vmem:[%s6649_s10 + $0x48] sm:$0xff] %vm540_vm0, %v5157_v0 }
  0x47   : > { %551 = vst.msk [vmem:[%s6649_s10 + $0x50] sm:$0xff] %vm540_vm0, %v5157_v0  ;;  %552 = vst.msk [vmem:[%s6649_s10 + $0x58] sm:$0xff] %vm540_vm0, %v5157_v0 }
  0x48   : > { %553 = vst.msk [vmem:[%s6649_s10 + $0x60] sm:$0xff] %vm540_vm0, %v5157_v0  ;;  %554 = vst.msk [vmem:[%s6649_s10 + $0x68] sm:$0xff] %vm540_vm0, %v5157_v0 }
  0x49   : > { %555 = vst.msk [vmem:[%s6649_s10 + $0x70] sm:$0xff] %vm540_vm0, %v5157_v0  ;;  %556 = vst.msk [vmem:[%s6649_s10 + $0x78] sm:$0xff] %vm540_vm0, %v5157_v0 }
  0x4a   : > { %557 = vst.msk [vmem:[%s6649_s10 + $0x80] sm:$0xff] %vm540_vm0, %v5157_v0  ;;  %558 = vst.msk [vmem:[%s6649_s10 + $0x88] sm:$0xff] %vm540_vm0, %v5157_v0 }
  0x4b   : > { %559 = vst.msk [vmem:[%s6649_s10 + $0x90] sm:$0xff] %vm540_vm0, %v5157_v0  ;;  %560 = vst.msk [vmem:[%s6649_s10 + $0x98] sm:$0xff] %vm540_vm0, %v5157_v0 }
  0x4c   : > { %561 = vst.msk [vmem:[%s6649_s10 + $0xa0] sm:$0xff] %vm540_vm0, %v5157_v0  ;;  %562 = vst.msk [vmem:[%s6649_s10 + $0xa8] sm:$0xff] %vm540_vm0, %v5157_v0 }
  0x4d   : > { %563 = vst.msk [vmem:[%s6649_s10 + $0xb0] sm:$0xff] %vm540_vm0, %v5157_v0  ;;  %564 = vst.msk [vmem:[%s6649_s10 + $0xb8] sm:$0xff] %vm540_vm0, %v5157_v0 }
  0x4e   : > { %565 = vst.msk [vmem:[%s6649_s10 + $0xc0] sm:$0xff] %vm540_vm0, %v5157_v0  ;;  %566 = vst.msk [vmem:[%s6649_s10 + $0xc8] sm:$0xff] %vm540_vm0, %v5157_v0 }
  0x4f   : > { %567 = vst.msk [vmem:[%s6649_s10 + $0xd0] sm:$0xff] %vm540_vm0, %v5157_v0  ;;  %568 = vst.msk [vmem:[%s6649_s10 + $0xd8] sm:$0xff] %vm540_vm0, %v5157_v0 }
  0x50   : > { %569 = vst.msk [vmem:[%s6649_s10 + $0xe0] sm:$0xff] %vm540_vm0, %v5157_v0  ;;  %570 = vst.msk [vmem:[%s6649_s10 + $0xe8] sm:$0xff] %vm540_vm0, %v5157_v0 }
  0x51   : > { %571 = vst.msk [vmem:[%s6649_s10 + $0xf0] sm:$0xff] %vm540_vm0, %v5157_v0  ;;  %572 = vst.msk [vmem:[%s6649_s10 + $0xf8] sm:$0xff] %vm540_vm0, %v5157_v0 }
  0x52 PF: > { %s573_s12 = sshra.s32 %s5143_s13, 7  ;;  %s5456_s21 = sand.u32 127, %s5143_s13 }
  0x53   : > { %s5458_s18 = sshll.u32 %s573_s12, 7 }
  0x54   : > { %s5462_s23 = sadd.s32 %s5458_s18, %s5456_s21 }
  0x55   : > { %s580_s24 = sld [smem:[#allocation3 + %s5462_s23]] }
  0x5b   : > { %p4217_p6 = scmp.eq.s32.totalorder %s580_s24, 0 }
  0x5c   : > { %s6664_s26 = scalar_lea.vmem (!%p4217_p6), %s6644_s5, %s5283_s16  ;;  %s5160_s13 = smov (!%p4217_p6), 96  }
  0x5d   : > { %584 = sbr.rel (%p4217_p6) target bundleno = 1668 (0x684), region = 76  ;;  %s5162_s16 = smov (!%p4217_p6), 64  }
  0x5e   : > { %s4368_s29 = sadd.s32 (!%p4217_p6), 256, %s5458_s18  ;;  %s4370_s11 = sadd.s32 (!%p4217_p6), 384, %s5458_s18 }
  0x5f   : > { %s3206_s30 = sadd.s32 (!%p4217_p6), %s4368_s29, %s5456_s21  ;;  %s3264_s24 = sadd.s32 (!%p4217_p6), %s4370_s11, %s5456_s21 }
  0x60   : > { %s4374_s29 = sadd.s32 (!%p4217_p6), 640, %s5458_s18 }
  0x61   : > { %s3382_s20 = sadd.s32 (!%p4217_p6), %s4374_s29, %s5456_s21 }
  0x62   : > { %v4904_v1 = vld [vmem:[%s6641_s2] sm:$0xff]   ;;  %v5158_v2 = vmov 0.0   ;;  %v4905_v3 = vld [vmem:[%s6641_s2 + $0x8] sm:$0xff]   ;;  %vm5159_vm1 = vmmov 0   ;;  %vm594_vm2 = vcmask 130048   ;;  %v4906_v5 = vld [vmem:[%s6641_s2 + $0x10] sm:$0xff]  }
  0x63   : > { %4518 = vmatprep.subr.bf16.mxu0 %v5158_v2  ;;  %4524 = vmatprep.subr.bf16.mxu1 %v5158_v2  ;;  %v5476_v4 = vld [vmem:[%s5290_s19] sm:$0xf]  ;;  %v4907_v6 = vld [vmem:[%s6641_s2 + $0x18] sm:$0xff]   ;;  %v4909_v8 = vld [vmem:[%s6641_s2 + $0x28] sm:$0xff]   ;;  %vm1431_vm3 = vcmask 1043456   ;;  %vm638_vm4 = vcmask 64512  }
  0x64   : > { %4519 = vmatpush3.bf16.msra.mxu0 %v4904_v1  ;;  %4520 = vmatprep.mubr.msk.bf16.mxu0 %vm5159_vm1, %v5158_v2  ;;  %v4908_v7 = vld [vmem:[%s6641_s2 + $0x20] sm:$0xff]   ;;  %v4910_v9 = vld [vmem:[%s6641_s2 + $0x30] sm:$0xff]   ;;  %v4911_v10 = vld [vmem:[%s6641_s2 + $0x38] sm:$0xff]   ;;  %vm1639_vm5 = vcmask 261120  }
  0x65   : > { %4525 = vmatpush3.bf16.msra.mxu1 %v4905_v3  ;;  %4526 = vmatprep.mubr.msk.bf16.mxu1 %vm5159_vm1, %v5158_v2  ;;  %v4912_v11 = vld [vmem:[%s6641_s2 + $0x40] sm:$0xff]   ;;  %v4913_v12 = vld [vmem:[%s6641_s2 + $0x48] sm:$0xff]   ;;  %v4914_v13 = vld [vmem:[%s6641_s2 + $0x50] sm:$0xff]  }
  0x66   : > { %4530 = vmatprep.subr.bf16.mxu0 %v5158_v2  ;;  %4536 = vmatprep.subr.bf16.mxu1 %v5158_v2  ;;  %v4915_v14 = vld [vmem:[%s6641_s2 + $0x58] sm:$0xff]   ;;  %v4916_v15 = vld [vmem:[%s6641_s2 + $0x60] sm:$0xff]   ;;  %v4917_v16 = vld [vmem:[%s6641_s2 + $0x68] sm:$0xff]  }
  0x67   : > { %4521 = vmatmul.mubr.msk.bf16.vlgmr.msra.gmra.mxu0 %vm594_vm2, %v5476_v4  ;;  %v4918_v17 = vld [vmem:[%s6641_s2 + $0x70] sm:$0xff]   ;;  %v4919_v18 = vld [vmem:[%s6641_s2 + $0x78] sm:$0xff]   ;;  %v1391_v19 = vld [vmem:[%s5299_s28] sm:$0xf] }
  0x68   : > { %4527 = vmatmul.mubr.msk.bf16.vlgmr.msra.gmra.mxu1 %vm594_vm2, %v5476_v4  ;;  %4531 = vmatpush3.bf16.msra.mxu0 %v4906_v5  ;;  %v1433_v20 = vsel %vm1431_vm3, %v1391_v19, 0 }
  0x69   : > { %4537 = vmatpush3.bf16.msra.mxu1 %v4907_v6  ;;  %4532 = vmatprep.mubr.msk.bf16.mxu0 %vm5159_vm1, %v5158_v2 }
  0x6a   : > { %4538 = vmatprep.mubr.msk.bf16.mxu1 %vm5159_vm1, %v5158_v2  ;;  %4542 = vmatprep.subr.bf16.mxu0 %v5158_v2 }
  0x6b   : > { %4548 = vmatprep.subr.bf16.mxu1 %v5158_v2 }
  0x6f   : > { %4533 = vmatmul.mubr.msk.bf16.vlgmr.msra.gmra.mxu0 %vm594_vm2, %v5476_v4 }
  0x70   : > { %4539 = vmatmul.mubr.msk.bf16.vlgmr.msra.gmra.mxu1 %vm594_vm2, %v5476_v4  ;;  %4543 = vmatpush3.bf16.msra.mxu0 %v4908_v7 }
  0x71   : > { %4549 = vmatpush3.bf16.msra.mxu1 %v4909_v8  ;;  %4544 = vmatprep.mubr.msk.bf16.mxu0 %vm5159_vm1, %v5158_v2 }
  0x72   : > { %4550 = vmatprep.mubr.msk.bf16.mxu1 %vm5159_vm1, %v5158_v2  ;;  %4554 = vmatprep.subr.bf16.mxu0 %v5158_v2 }
  0x73   : > { %4560 = vmatprep.subr.bf16.mxu1 %v5158_v2 }
  0x77   : > { %4545 = vmatmul.mubr.msk.bf16.vlgmr.msra.gmra.mxu0 %vm594_vm2, %v5476_v4 }
  0x78   : > { %4551 = vmatmul.mubr.msk.bf16.vlgmr.msra.gmra.mxu1 %vm594_vm2, %v5476_v4  ;;  %4555 = vmatpush3.bf16.msra.mxu0 %v4910_v9 }
  0x79   : > { %4561 = vmatpush3.bf16.msra.mxu1 %v4911_v10  ;;  %4556 = vmatprep.mubr.msk.bf16.mxu0 %vm5159_vm1, %v5158_v2 }
  0x7a   : > { %4562 = vmatprep.mubr.msk.bf16.mxu1 %vm5159_vm1, %v5158_v2  ;;  %4566 = vmatprep.subr.bf16.mxu0 %v5158_v2 }
  0x7b   : > { %4572 = vmatprep.subr.bf16.mxu1 %v5158_v2 }
  0x7f   : > { %4557 = vmatmul.mubr.msk.bf16.vlgmr.msra.gmra.mxu0 %vm594_vm2, %v5476_v4 }
  0x80   : > { %4563 = vmatmul.mubr.msk.bf16.vlgmr.msra.gmra.mxu1 %vm594_vm2, %v5476_v4  ;;  %4567 = vmatpush3.bf16.msra.mxu0 %v4912_v11 }
  0x81   : > { %4573 = vmatpush3.bf16.msra.mxu1 %v4913_v12  ;;  %4568 = vmatprep.mubr.msk.bf16.mxu0 %vm5159_vm1, %v5158_v2 }
  0x82   : > { %4574 = vmatprep.mubr.msk.bf16.mxu1 %vm5159_vm1, %v5158_v2  ;;  %4578 = vmatprep.subr.bf16.mxu0 %v5158_v2 }
  0x83   : > { %4584 = vmatprep.subr.bf16.mxu1 %v5158_v2 }
  0x87   : > { %4569 = vmatmul.mubr.msk.bf16.vlgmr.msra.gmra.mxu0 %vm594_vm2, %v5476_v4 }
  0x88   : > { %4575 = vmatmul.mubr.msk.bf16.vlgmr.msra.gmra.mxu1 %vm594_vm2, %v5476_v4  ;;  %4579 = vmatpush3.bf16.msra.mxu0 %v4914_v13 }
  0x89   : > { %4585 = vmatpush3.bf16.msra.mxu1 %v4915_v14  ;;  %4580 = vmatprep.mubr.msk.bf16.mxu0 %vm5159_vm1, %v5158_v2 }
  0x8a   : > { %4586 = vmatprep.mubr.msk.bf16.mxu1 %vm5159_vm1, %v5158_v2  ;;  %4590 = vmatprep.subr.bf16.mxu0 %v5158_v2 }
  0x8b   : > { %4596 = vmatprep.subr.bf16.mxu1 %v5158_v2 }
  0x8f   : > { %4581 = vmatmul.mubr.msk.bf16.vlgmr.msra.gmra.mxu0 %vm594_vm2, %v5476_v4 }
  0x90   : > { %4587 = vmatmul.mubr.msk.bf16.vlgmr.msra.gmra.mxu1 %vm594_vm2, %v5476_v4  ;;  %4591 = vmatpush3.bf16.msra.mxu0 %v4916_v15 }
  0x91   : > { %4597 = vmatpush3.bf16.msra.mxu1 %v4917_v16  ;;  %4592 = vmatprep.mubr.msk.bf16.mxu0 %vm5159_vm1, %v5158_v2 }
  0x92   : > { %4598 = vmatprep.mubr.msk.bf16.mxu1 %vm5159_vm1, %v5158_v2  ;;  %4602 = vmatprep.subr.bf16.mxu0 %v5158_v2 }
  0x93   : > { %4608 = vmatprep.subr.bf16.mxu1 %v5158_v2 }
  0x97   : > { %4593 = vmatmul.mubr.msk.bf16.vlgmr.msra.gmra.mxu0 %vm594_vm2, %v5476_v4 }
  0x98   : > { %4599 = vmatmul.mubr.msk.bf16.vlgmr.msra.gmra.mxu1 %vm594_vm2, %v5476_v4  ;;  %4603 = vmatpush3.bf16.msra.mxu0 %v4918_v17 }
  0x99   : > { %4609 = vmatpush3.bf16.msra.mxu1 %v4919_v18  ;;  %4604 = vmatprep.mubr.msk.bf16.mxu0 %vm5159_vm1, %v5158_v2 }
  0x9a   : > { %4610 = vmatprep.mubr.msk.bf16.mxu1 %vm5159_vm1, %v5158_v2  ;;  %4828 = vmatprep.subr.msk.bf16.mxu0 %vm1431_vm3, %v1391_v19 }
  0x9f   : > { %4605 = vmatmul.mubr.msk.bf16.vlgmr.msra.gmra.mxu0 %vm594_vm2, %v5476_v4 }
  0xa0   : > { %4611 = vmatmul.mubr.msk.bf16.vlgmr.msra.gmra.mxu1 %vm594_vm2, %v5476_v4  ;;  %4615 = vmatpush3.bf16.msra.mxu0 %v1433_v20 }
 0x127   : > { %v632_v21 = vpop.f32.mrf.mxu0 }
 0x128   : > { %639 = vst.msk [vmem:[#allocation2] sm:$0xff] %vm638_vm4, %v632_v21  ;;  %v682_v22 = vpop.f32.mrf.mxu1 }
 0x129   : > { %688 = vst.msk [vmem:[#allocation2 + $0x8] sm:$0xff] %vm638_vm4, %v682_v22  ;;  %v4522_v23 = vpop.f32.mrf.mxu0 }
 0x12a   : > { %v4528_v24 = vpop.f32.mrf.mxu1 }
 0x12b   : > { %v635_v25 = vpop.f32.mrf.mxu0 }
 0x12c   : > { %v685_v26 = vpop.f32.mrf.mxu1 }
 0x12d   : > { %v4523_v27 = vpop.f32.mrf.mxu0 }
 0x12e   : > { %v4529_v28 = vpop.f32.mrf.mxu1 }
 0x12f   : > { %v731_v29 = vpop.f32.mrf.mxu0  ;;  %v1375_v30 = vld [vmem:[#allocation2] sm:$0xff] }
 0x130   : > { %737 = vst.msk [vmem:[#allocation2 + $0x10] sm:$0xff] %vm638_vm4, %v731_v29  ;;  %v780_v31 = vpop.f32.mrf.mxu1  ;;  %v1376_v32 = vld [vmem:[#allocation2 + $0x8] sm:$0xff] }
 0x131   : > { %786 = vst.msk [vmem:[#allocation2 + $0x18] sm:$0xff] %vm638_vm4, %v780_v31  ;;  %v4534_v33 = vpop.f32.mrf.mxu0  ;;  %v1392_v34 = vpack.c.bf16 %v1376_v32, %v1375_v30 }
 0x132   : > { %v4540_v35 = vpop.f32.mrf.mxu1 }
 0x133   : > { %4616 = vmatprep.mubr.msk.bf16.mxu0 %vm638_vm4, %v1392_v34  ;;  %v734_v36 = vpop.f32.mrf.mxu0 }
 0x134   : > { %v783_v37 = vpop.f32.mrf.mxu1 }
 0x135   : > { %v4535_v38 = vpop.f32.mrf.mxu0 }
 0x136   : > { %v4541_v39 = vpop.f32.mrf.mxu1 }
 0x137   : > { %v829_v40 = vpop.f32.mrf.mxu0  ;;  %v1377_v41 = vld [vmem:[#allocation2 + $0x10] sm:$0xff] }
 0x138   : > { %835 = vst.msk [vmem:[#allocation2 + $0x20] sm:$0xff] %vm638_vm4, %v829_v40  ;;  %v878_v42 = vpop.f32.mrf.mxu1  ;;  %v1378_v43 = vld [vmem:[#allocation2 + $0x18] sm:$0xff] }
 0x139   : > { %884 = vst.msk [vmem:[#allocation2 + $0x28] sm:$0xff] %vm638_vm4, %v878_v42  ;;  %v4546_v44 = vpop.f32.mrf.mxu0  ;;  %v1393_v45 = vpack.c.bf16 %v1378_v43, %v1377_v41 }
 0x13a   : > { %v4552_v46 = vpop.f32.mrf.mxu1 }
 0x13b   : > { %4617 = vmatmul.mubr.msk.bf16.vlgmr.msra.gmra.mxu0 %vm638_vm4, %v1393_v45  ;;  %v832_v47 = vpop.f32.mrf.mxu0  ;;  %v4920_v46 = vld [vmem:[%s5299_s28 + $0xc] sm:$0xff]  }
 0x13c   : > { %v881_v48 = vpop.f32.mrf.mxu1  ;;  %4632 = vmatprep.subr.bf16.mxu1 %v4920_v46  ;;  %v4921_v47 = vld [vmem:[%s5299_s28 + $0x4] sm:$0xff]  }
 0x13d   : > { %v4547_v49 = vpop.f32.mrf.mxu0  ;;  %4633 = vmatpush3.bf16.msra.mxu1 %v4920_v46  ;;  %v5630_v48 = vld [vmem:[%s6664_s26] ss:$0 sm:$0xff]  ;;  %s4386_s26 = sadd.s32 1408, %s5458_s18 }
 0x13e   : > { %v4553_v50 = vpop.f32.mrf.mxu1  ;;  %4634 = vmatprep.subr.bf16.mxu1 %v4921_v47  ;;  %1636 = vrot.lane.b32.xlu0 %v5630_v48, %s5160_s13 }
 0x13f   : > { %v927_v51 = vpop.f32.mrf.mxu0  ;;  %v1379_v52 = vld [vmem:[#allocation2 + $0x20] sm:$0xff] }
 0x140   : > { %933 = vst.msk [vmem:[#allocation2 + $0x30] sm:$0xff] %vm638_vm4, %v927_v51  ;;  %v976_v53 = vpop.f32.mrf.mxu1  ;;  %v1380_v54 = vld [vmem:[#allocation2 + $0x28] sm:$0xff] }
 0x141   : > { %982 = vst.msk [vmem:[#allocation2 + $0x38] sm:$0xff] %vm638_vm4, %v976_v53  ;;  %v4558_v55 = vpop.f32.mrf.mxu0  ;;  %v1394_v56 = vpack.c.bf16 %v1380_v54, %v1379_v52  ;;  %4635 = vmatpush3.bf16.msra.mxu1 %v4921_v47 }
 0x142   : > { %v4564_v57 = vpop.f32.mrf.mxu1  ;;  %1865 = vrot.lane.b32.xlu0 %v5630_v48, %s5162_s16 }
 0x143   : > { %4620 = vmatprep.mubr.msk.bf16.mxu0 %vm638_vm4, %v1394_v56  ;;  %v930_v58 = vpop.f32.mrf.mxu0 }
 0x144   : > { %v979_v59 = vpop.f32.mrf.mxu1 }
 0x145   : > { %v4559_v60 = vpop.f32.mrf.mxu0 }
 0x146   : > { %v4565_v61 = vpop.f32.mrf.mxu1 }
 0x147   : > { %v1025_v62 = vpop.f32.mrf.mxu0  ;;  %v1381_v63 = vld [vmem:[#allocation2 + $0x30] sm:$0xff] }
 0x148   : > { %1031 = vst.msk [vmem:[#allocation2 + $0x40] sm:$0xff] %vm638_vm4, %v1025_v62  ;;  %v1074_v0 = vpop.f32.mrf.mxu1  ;;  %v1382_v1 = vld [vmem:[#allocation2 + $0x38] sm:$0xff] }
 0x149   : > { %1080 = vst.msk [vmem:[#allocation2 + $0x48] sm:$0xff] %vm638_vm4, %v1074_v0  ;;  %v4570_v3 = vpop.f32.mrf.mxu0  ;;  %v1395_v4 = vpack.c.bf16 %v1382_v1, %v1381_v63 }
 0x14a   : > { %v4576_v5 = vpop.f32.mrf.mxu1 }
 0x14b   : > { %4621 = vmatmul.mubr.msk.bf16.gmra.mxu0 %vm638_vm4, %v1395_v4  ;;  %v1028_v6 = vpop.f32.mrf.mxu0 }
 0x14c   : > { %v1077_v7 = vpop.f32.mrf.mxu1 }
 0x14d   : > { %v4571_v8 = vpop.f32.mrf.mxu0 }
 0x14e   : > { %v4577_v9 = vpop.f32.mrf.mxu1 }
 0x14f   : > { %v1123_v10 = vpop.f32.mrf.mxu0  ;;  %v1383_v11 = vld [vmem:[#allocation2 + $0x40] sm:$0xff] }
 0x150   : > { %1129 = vst.msk [vmem:[#allocation2 + $0x50] sm:$0xff] %vm638_vm4, %v1123_v10  ;;  %v1172_v12 = vpop.f32.mrf.mxu1  ;;  %v1384_v13 = vld [vmem:[#allocation2 + $0x48] sm:$0xff] }
 0x151   : > { %1178 = vst.msk [vmem:[#allocation2 + $0x58] sm:$0xff] %vm638_vm4, %v1172_v12  ;;  %v4582_v14 = vpop.f32.mrf.mxu0  ;;  %v1396_v15 = vpack.c.bf16 %v1384_v13, %v1383_v11 }
 0x152   : > { %v4588_v16 = vpop.f32.mrf.mxu1 }
 0x153   : > { %4624 = vmatprep.mubr.msk.bf16.mxu0 %vm638_vm4, %v1396_v15  ;;  %v1126_v17 = vpop.f32.mrf.mxu0 }
 0x154   : > { %v1175_v18 = vpop.f32.mrf.mxu1 }
 0x155   : > { %v4583_v19 = vpop.f32.mrf.mxu0 }
 0x156   : > { %v4589_v20 = vpop.f32.mrf.mxu1 }
 0x157   : > { %v1221_v21 = vpop.f32.mrf.mxu0  ;;  %v1385_v22 = vld [vmem:[#allocation2 + $0x50] sm:$0xff] }
 0x158   : > { %1227 = vst.msk [vmem:[#allocation2 + $0x60] sm:$0xff] %vm638_vm4, %v1221_v21  ;;  %v1270_v23 = vpop.f32.mrf.mxu1  ;;  %v1386_v24 = vld [vmem:[#allocation2 + $0x58] sm:$0xff] }
 0x159   : > { %1276 = vst.msk [vmem:[#allocation2 + $0x68] sm:$0xff] %vm638_vm4, %v1270_v23  ;;  %v4594_v25 = vpop.f32.mrf.mxu0  ;;  %v1397_v26 = vpack.c.bf16 %v1386_v24, %v1385_v22 }
 0x15a   : > { %v4600_v27 = vpop.f32.mrf.mxu1 }
 0x15b   : > { %4625 = vmatmul.mubr.msk.bf16.gmra.mxu0 %vm638_vm4, %v1397_v26  ;;  %v1224_v28 = vpop.f32.mrf.mxu0 }
 0x15c   : > { %v1273_v29 = vpop.f32.mrf.mxu1 }
 0x15d   : > { %v4595_v30 = vpop.f32.mrf.mxu0 }
 0x15e   : > { %v4601_v31 = vpop.f32.mrf.mxu1 }
 0x15f   : > { %v1319_v32 = vpop.f32.mrf.mxu0  ;;  %v1387_v33 = vld [vmem:[#allocation2 + $0x60] sm:$0xff] }
 0x160   : > { %1325 = vst.msk [vmem:[#allocation2 + $0x70] sm:$0xff] %vm638_vm4, %v1319_v32  ;;  %v1368_v34 = vpop.f32.mrf.mxu1  ;;  %v1388_v35 = vld [vmem:[#allocation2 + $0x68] sm:$0xff] }
 0x161   : > { %1374 = vst.msk [vmem:[#allocation2 + $0x78] sm:$0xff] %vm638_vm4, %v1368_v34  ;;  %v4606_v36 = vpop.f32.mrf.mxu0  ;;  %v1398_v37 = vpack.c.bf16 %v1388_v35, %v1387_v33 }
 0x162   : > { %v4612_v38 = vpop.f32.mrf.mxu1 }
 0x163   : > { %4628 = vmatprep.mubr.msk.bf16.mxu0 %vm638_vm4, %v1398_v37  ;;  %v1322_v39 = vpop.f32.mrf.mxu0 }
 0x164   : > { %v1371_v40 = vpop.f32.mrf.mxu1 }
 0x165   : > { %v4607_v41 = vpop.f32.mrf.mxu0 }
 0x166   : > { %v4613_v42 = vpop.f32.mrf.mxu1 }
 0x167   : > { %v1389_v43 = vld [vmem:[#allocation2 + $0x70] sm:$0xff] }
 0x168   : > { %v1390_v44 = vld [vmem:[#allocation2 + $0x78] sm:$0xff] }
 0x169   : > { %v1399_v45 = vpack.c.bf16 %v1390_v44, %v1389_v43 }
 0x16b   : > { %4629 = vmatmul.mubr.msk.bf16.gmra.mxu0 %vm638_vm4, %v1399_v45 }
 0x1fb   : > { %v4618_v49 = vpop.f32.mrf.mxu0 }
 0x1fc   : > { %v1478_v50 = vadd.f32 %v4618_v49, %v5630_v48 }
 0x1fd   : > { %v1469_v51 = vpop.f32.mrf.mxu0 }
 0x1fe   : > { %v1470_v52 = vadd.f32 %v5630_v48, %v1469_v51  ;;  %v1550_v53 = vmul.f32 0.70710677, %v1478_v50  ;;  %v1534_v21 = vmul.f32 0.5, %v1478_v50 }
 0x1ff   : > { %v4619_v54 = vpop.f32.mrf.mxu0 }
 0x200   : > { %v1548_v55 = vmul.f32 0.70710677, %v1470_v52  ;;  %v1481_v56 = vadd.f32 %v4619_v54, %v5630_v48  ;;  %v1532_v17 = vmul.f32 0.5, %v1470_v52 }
 0x201   : > { %v1472_v57 = vpop.f32.mrf.mxu0 }
 0x202   : > { %4931 = verf.f32 %v1548_v55  ;;  %v1551_v58 = vmul.f32 0.70710677, %v1481_v56  ;;  %v1473_v59 = vadd.f32 %v5630_v48, %v1472_v57  ;;  %v1535_v15 = vmul.f32 0.5, %v1481_v56 }
 0x203   : > { %4933 = verf.f32 %v1550_v53 }
 0x204   : > { %4935 = verf.f32 %v1551_v58  ;;  %v1549_v60 = vmul.f32 0.70710677, %v1473_v59  ;;  %v1533_v18 = vmul.f32 0.5, %v1473_v59 }
 0x206   : > { %4937 = verf.f32 %v1549_v60 }
 0x20b   : > { %v4622_v61 = vpop.f32.mrf.mxu0 }
 0x20c   : > { %v1494_v62 = vadd.f32 %v4622_v61, %v5630_v48 }
 0x20d   : > { %v1485_v63 = vpop.f32.mrf.mxu0 }
 0x20e   : > { %v1554_v0 = vmul.f32 0.70710677, %v1494_v62  ;;  %v1486_v1 = vadd.f32 %v5630_v48, %v1485_v63  ;;  %v1538_v52 = vmul.f32 0.5, %v1494_v62 }
 0x20f   : > { %v4932_v3 = vpop.eup %4931  ;;  %v4623_v4 = vpop.f32.mrf.mxu0 }
 0x210   : > { %v4934_v5 = vpop.eup %4933  ;;  %v1552_v7 = vmul.f32 0.70710677, %v1486_v1  ;;  %v1497_v8 = vadd.f32 %v4623_v4, %v5630_v48  ;;  %v1580_v10 = vadd.f32 1.0, %v4932_v3  ;;  %4939 = verf.f32 %v1554_v0 }
 0x211   : > { %v4936_v6 = vpop.eup %4935  ;;  %v1488_v9 = vpop.f32.mrf.mxu0  ;;  %v1582_v14 = vadd.f32 1.0, %v4934_v5  ;;  %v1536_v47 = vmul.f32 0.5, %v1486_v1 }
 0x212   : > { %v1583_v11 = vadd.f32 1.0, %v4936_v6  ;;  %v1489_v12 = vadd.f32 %v5630_v48, %v1488_v9  ;;  %4941 = verf.f32 %v1552_v7  ;;  %v1555_v16 = vmul.f32 0.70710677, %v1497_v8 }
 0x213   : > { %v4938_v13 = vpop.eup %4937  ;;  %v1596_v23 = vmul.f32 %v1580_v10, %v1532_v17  ;;  %v1598_v25 = vmul.f32 %v1582_v14, %v1534_v21  ;;  %v1539_v41 = vmul.f32 0.5, %v1497_v8 }
 0x214   : > { %v1581_v19 = vadd.f32 1.0, %v4938_v13  ;;  %v1553_v20 = vmul.f32 0.70710677, %v1489_v12  ;;  %v1599_v22 = vmul.f32 %v1583_v11, %v1535_v15  ;;  %4943 = verf.f32 %v1555_v16 }
 0x215   : > { %v1537_v49 = vmul.f32 0.5, %v1489_v12 }
 0x216   : > { %v1597_v24 = vmul.f32 %v1581_v19, %v1533_v18  ;;  %4945 = verf.f32 %v1553_v20  ;;  %v1617_v27 = vpack.c.bf16 %v1599_v22, %v1598_v25 }
 0x218   : > { %v1616_v26 = vpack.c.bf16 %v1597_v24, %v1596_v23 }
 0x21a   : > { %4636 = vmatprep.mubr.msk.bf16.mxu1 %vm1639_vm5, %v1616_v26 }
 0x21b   : > { %v4626_v28 = vpop.f32.mrf.mxu0  ;;  %4637 = vmatmul.mubr.msk.bf16.vlgmr.msra.gmra.mxu1 %vm1639_vm5, %v1617_v27 }
 0x21c   : > { %v1510_v29 = vadd.f32 %v4626_v28, %v5630_v48 }
 0x21d   : > { %v1501_v30 = vpop.f32.mrf.mxu0  ;;  %v4940_v32 = vpop.eup %4939 }
 0x21e   : > { %v1502_v31 = vadd.f32 %v5630_v48, %v1501_v30  ;;  %v1558_v33 = vmul.f32 0.70710677, %v1510_v29  ;;  %v1586_v44 = vadd.f32 1.0, %v4940_v32  ;;  %v1542_v19 = vmul.f32 0.5, %v1510_v29 }
 0x21f   : > { %v4627_v34 = vpop.f32.mrf.mxu0  ;;  %v4942_v35 = vpop.eup %4941 }
 0x220   : > { %v1556_v36 = vmul.f32 0.70710677, %v1502_v31  ;;  %v1513_v37 = vadd.f32 %v4627_v34, %v5630_v48  ;;  %v1584_v40 = vadd.f32 1.0, %v4942_v35  ;;  %v1602_v56 = vmul.f32 %v1586_v44, %v1538_v52  ;;  %v4922_v44 = vld [vmem:[%s5299_s28 + $0x1c] sm:$0xff]   ;;  %v1991_v52 = vld [vmem:[%s5312_s22 + $0x10] sm:$0xff] }
 0x221   : > { %v1504_v38 = vpop.f32.mrf.mxu0  ;;  %v4944_v39 = vpop.eup %4943  ;;  %v1540_v15 = vmul.f32 0.5, %v1502_v31  ;;  %4652 = vmatprep.subr.bf16.mxu0 %v4922_v44 }
 0x222   : > { %4947 = verf.f32 %v1556_v36  ;;  %v1505_v42 = vadd.f32 %v5630_v48, %v1504_v38  ;;  %v1587_v45 = vadd.f32 1.0, %v4944_v39  ;;  %v1559_v46 = vmul.f32 0.70710677, %v1513_v37  ;;  %4653 = vmatpush3.bf16.msra.mxu0 %v4922_v44 }
 0x223   : > { %v4946_v43 = vpop.eup %4945  ;;  %4949 = verf.f32 %v1558_v33  ;;  %v1600_v54 = vmul.f32 %v1584_v40, %v1536_v47  ;;  %v1543_v9 = vmul.f32 0.5, %v1513_v37  ;;  %v1989_v47 = vld [vmem:[%s5312_s22] sm:$0xff] }
 0x224   : > { %v1585_v50 = vadd.f32 1.0, %v4946_v43  ;;  %v1557_v51 = vmul.f32 0.70710677, %v1505_v42  ;;  %v1603_v53 = vmul.f32 %v1587_v45, %v1539_v41  ;;  %4951 = verf.f32 %v1559_v46  ;;  %v4923_v45 = vld [vmem:[%s5299_s28 + $0x14] sm:$0xff]   ;;  %s5164_s28 = smov 32  }
 0x225   : > { %v1541_v16 = vmul.f32 0.5, %v1505_v42  ;;  %4654 = vmatprep.subr.bf16.mxu0 %v4923_v45  ;;  %v5161_v46 = vmov 0  }
 0x226   : > { %v1601_v55 = vmul.f32 %v1585_v50, %v1537_v49  ;;  %4953 = verf.f32 %v1557_v51  ;;  %v1619_v58 = vpack.c.bf16 %v1603_v53, %v1602_v56  ;;  %4655 = vmatpush3.bf16.msra.mxu0 %v4923_v45  ;;  %4888 = vset.pattern.permute.xlu1 %v5161_v46  ;;  %v1990_v49 = vld [vmem:[%s5312_s22 + $0x8] sm:$0xff]  ;;  %v1992_v50 = vld [vmem:[%s5312_s22 + $0x18] sm:$0xff]  ;;  %v5163_v51 = vmov 1  }
 0x227   : > { %4889 = vset.pattern.permute.xlu0 %v5161_v46  ;;  %2042 = vperm.xlu1 %4888, %v1989_v47   ;;  %v1994_v53 = vld [vmem:[%s5312_s22 + $0x28] sm:$0xff]  ;;  %v1996_v56 = vld [vmem:[%s5312_s22 + $0x38] sm:$0xff] }
 0x228   : > { %v1618_v57 = vpack.c.bf16 %v1601_v55, %v1600_v54  ;;  %2052 = vperm.xlu0 %4889, %v1991_v52   ;;  %v1993_v54 = vld [vmem:[%s5312_s22 + $0x20] sm:$0xff]  ;;  %v1995_v55 = vld [vmem:[%s5312_s22 + $0x30] sm:$0xff] }
 0x22a   : > { %4640 = vmatprep.mubr.msk.bf16.mxu1 %vm1639_vm5, %v1618_v57  ;;  %v1997_v57 = vld [vmem:[%s5312_s22 + $0x40] sm:$0xff] }
 0x22b   : > { %v4630_v59 = vpop.f32.mrf.mxu0  ;;  %4641 = vmatmul.mubr.msk.bf16.gmra.mxu1 %vm1639_vm5, %v1619_v58  ;;  %2047 = vperm.xlu1 %4888, %v1990_v49   ;;  %v2000_v58 = vld [vmem:[%s5312_s22 + $0x58] sm:$0xff] }
 0x22c   : > { %v1526_v60 = vadd.f32 %v4630_v59, %v5630_v48  ;;  %4891 = vset.pattern.permute.xlu0 %v5163_v51  ;;  %v1998_v59 = vld [vmem:[%s5312_s22 + $0x48] sm:$0xff] }
 0x22d   : > { %v1517_v61 = vpop.f32.mrf.mxu0  ;;  %2174 = vperm.xlu0 %4891, %v1990_v49  }
 0x22e   : > { %v1562_v63 = vmul.f32 0.70710677, %v1526_v60  ;;  %v1518_v0 = vadd.f32 %v5630_v48, %v1517_v61  ;;  %v1546_v37 = vmul.f32 0.5, %v1526_v60  ;;  %v2001_v60 = vld [vmem:[%s5312_s22 + $0x60] sm:$0xff]  ;;  %v1999_v61 = vld [vmem:[%s5312_s22 + $0x50] sm:$0xff] }
 0x22f   : > { %v4948_v62 = vpop.eup %4947  ;;  %v4631_v1 = vpop.f32.mrf.mxu0  ;;  %2057 = vperm.xlu1 %4888, %v1992_v50  }
 0x230   : > { %v4950_v3 = vpop.eup %4949  ;;  %v1560_v4 = vmul.f32 0.70710677, %v1518_v0  ;;  %v1529_v5 = vadd.f32 %v4631_v1, %v5630_v48  ;;  %v1588_v8 = vadd.f32 1.0, %v4948_v62  ;;  %4955 = verf.f32 %v1562_v63  ;;  %v5684_v63 = vld [vmem:[%s5312_s22 + $0x78] sm:$0xff] }
 0x231   : > { %v1520_v6 = vpop.f32.mrf.mxu0  ;;  %v4952_v7 = vpop.eup %4951  ;;  %v1590_v12 = vadd.f32 1.0, %v4950_v3  ;;  %v1544_v34 = vmul.f32 0.5, %v1518_v0  ;;  %2190 = vperm.xlu0 %4891, %v1994_v53   ;;  %v2002_v3 = vld [vmem:[%s5312_s22 + $0x68] sm:$0xff] }
 0x232   : > { %v1521_v10 = vadd.f32 %v5630_v48, %v1520_v6  ;;  %v1591_v13 = vadd.f32 1.0, %v4952_v7  ;;  %4957 = verf.f32 %v1560_v4  ;;  %v1563_v14 = vmul.f32 0.70710677, %v1529_v5  ;;  %v5687_v0 = vpop.permute.xlu0 %1636 }
 0x233   : > { %v4954_v11 = vpop.eup %4953  ;;  %v1604_v21 = vmul.f32 %v1588_v8, %v1540_v15  ;;  %v1606_v23 = vmul.f32 %v1590_v12, %v1542_v19  ;;  %v1547_v29 = vmul.f32 0.5, %v1529_v5  ;;  %4890 = vset.pattern.permute.xlu1 %v5163_v51 }
 0x234   : > { %v1589_v17 = vadd.f32 1.0, %v4954_v11  ;;  %v1561_v18 = vmul.f32 0.70710677, %v1521_v10  ;;  %v1607_v20 = vmul.f32 %v1591_v13, %v1543_v9  ;;  %4959 = verf.f32 %v1563_v14  ;;  %2170 = vperm.xlu1 %4890, %v1989_v47   ;;  %v2003_v14 = vld [vmem:[%s5312_s22 + $0x70] sm:$0xff]  ;;  %s5166_s22 = smov 112  }
 0x235   : > { %v1545_v35 = vmul.f32 0.5, %v1521_v10  ;;  %4894 = vset.pattern.permute.xlu0 %v5161_v46 }
 0x236   : > { %v1605_v22 = vmul.f32 %v1589_v17, %v1541_v16  ;;  %4961 = verf.f32 %v1561_v18  ;;  %v1621_v25 = vpack.c.bf16 %v1607_v20, %v1606_v23  ;;  %2062 = vperm.xlu0 %4894, %v1993_v54  }
 0x238   : > { %v1620_v24 = vpack.c.bf16 %v1605_v22, %v1604_v21  ;;  %2178 = vperm.xlu1 %4890, %v1991_v52  }
 0x23a   : > { %4644 = vmatprep.mubr.msk.bf16.mxu1 %vm1639_vm5, %v1620_v24  ;;  %2077 = vperm.xlu0 %4894, %v1996_v56  }
 0x23b   : > { %4645 = vmatmul.mubr.msk.bf16.gmra.mxu1 %vm1639_vm5, %v1621_v25 }
 0x23c   : > { %2182 = vperm.xlu1 %4890, %v1992_v50  }
 0x23d   : > { %v4956_v26 = vpop.eup %4955 }
 0x23e   : > { %v1594_v32 = vadd.f32 1.0, %v4956_v26  ;;  %2082 = vperm.xlu0 %4894, %v1997_v57  }
 0x23f   : > { %v4958_v27 = vpop.eup %4957 }
 0x240   : > { %v1592_v30 = vadd.f32 1.0, %v4958_v27  ;;  %v1610_v41 = vmul.f32 %v1594_v32, %v1546_v37  ;;  %4892 = vset.pattern.permute.xlu1 %v5161_v46 }
 0x241   : > { %v4960_v28 = vpop.eup %4959  ;;  %2067 = vperm.xlu1 %4892, %v1994_v53  }
 0x242   : > { %v1595_v33 = vadd.f32 1.0, %v4960_v28  ;;  %v1608_v39 = vmul.f32 %v1592_v30, %v1544_v34  ;;  %2097 = vperm.xlu0 %4894, %v2000_v58  }
 0x243   : > { %v4962_v31 = vpop.eup %4961 }
 0x244   : > { %v1593_v36 = vadd.f32 1.0, %v4962_v31  ;;  %v1611_v38 = vmul.f32 %v1595_v33, %v1547_v29 }
 0x245   : > { %2072 = vperm.xlu1 %4892, %v1995_v55  }
 0x246   : > { %v1609_v40 = vmul.f32 %v1593_v36, %v1545_v35  ;;  %v1623_v43 = vpack.c.bf16 %v1611_v38, %v1610_v41  ;;  %4897 = vset.pattern.permute.xlu0 %v5163_v51 }
 0x247   : > { %2206 = vperm.xlu0 %4897, %v1998_v59  }
 0x248   : > { %v1622_v42 = vpack.c.bf16 %v1609_v40, %v1608_v39 }
 0x249   : > { %4893 = vset.pattern.permute.xlu1 %v5163_v51 }
 0x24a   : > { %4648 = vmatprep.mubr.msk.bf16.mxu1 %vm1639_vm5, %v1622_v42  ;;  %2186 = vperm.xlu1 %4893, %v1993_v54  }
 0x24b   : > { %4649 = vmatmul.mubr.msk.bf16.gmra.mxu1 %vm1639_vm5, %v1623_v43  ;;  %4898 = vset.pattern.permute.xlu0 %v5161_v46 }
 0x24c   : > { %2102 = vperm.xlu0 %4898, %v2001_v60  }
 0x24e   : > { %2194 = vperm.xlu1 %4893, %v1995_v55  }
 0x250   : > { %2117 = vperm.xlu0 %4898, %v5684_v63  }
 0x252   : > { %2198 = vperm.xlu1 %4893, %v1996_v56  }
 0x254   : > { %4901 = vset.pattern.permute.xlu0 %v5163_v51 }
 0x255   : > { %2222 = vperm.xlu0 %4901, %v2002_v3  }
 0x256   : > { %4895 = vset.pattern.permute.xlu1 %v5161_v46 }
 0x257   : > { %2087 = vperm.xlu1 %4895, %v1998_v59  }
 0x259   : > { %4903 = vset.pattern.permute.xlu0 %v5161_v46 }
 0x25a   : > { %2700 = vrot.lane.b32.xlu0 %v5630_v48, %s5164_s28  ;;  %s4372_s28 = sadd.s32 512, %s5458_s18 }
 0x25b   : > { %2092 = vperm.xlu1 %4895, %v1999_v61  }
 0x25f   : > { %4896 = vset.pattern.permute.xlu1 %v5163_v51 }
 0x260   : > { %2202 = vperm.xlu1 %4896, %v1997_v57  }
 0x264   : > { %2210 = vperm.xlu1 %4896, %v1999_v61  }
 0x268   : > { %2214 = vperm.xlu1 %4896, %v2000_v58  }
 0x26c   : > { %4899 = vset.pattern.permute.xlu1 %v5161_v46 }
 0x26d   : > { %2107 = vperm.xlu1 %4899, %v2002_v3  }
 0x271   : > { %2112 = vperm.xlu1 %4899, %v2003_v14  }
 0x275   : > { %4900 = vset.pattern.permute.xlu1 %v5163_v51 }
 0x276   : > { %2218 = vperm.xlu1 %4900, %v2001_v60  }
 0x27a   : > { %2226 = vperm.xlu1 %4900, %v2003_v14  }
 0x27e   : > { %2230 = vperm.xlu1 %4900, %v5684_v63  }
 0x282   : > { %4902 = vset.pattern.permute.xlu1 %v5161_v46 }
 0x2db   : > { %v4638_v62 = vpop.f32.mrf.mxu1 }
 0x2dc   : > { %v1707_v1 = vadd.f32 %v4638_v62, %v5687_v0 }
 0x2dd   : > { %v1698_v4 = vpop.f32.mrf.mxu1 }
 0x2de   : > { %v1699_v5 = vadd.f32 %v1698_v4, %v5687_v0  ;;  %v1779_v6 = vmul.f32 0.70710677, %v1707_v1  ;;  %v1763_v38 = vmul.f32 0.5, %v1707_v1 }
 0x2df   : > { %v4639_v7 = vpop.f32.mrf.mxu1 }
 0x2e0   : > { %v1777_v8 = vmul.f32 0.70710677, %v1699_v5  ;;  %v1710_v9 = vadd.f32 %v4639_v7, %v5687_v0  ;;  %v1761_v34 = vmul.f32 0.5, %v1699_v5 }
 0x2e1   : > { %v1701_v10 = vpop.f32.mrf.mxu1 }
 0x2e2   : > { %4963 = verf.f32 %v1777_v8  ;;  %v1780_v11 = vmul.f32 0.70710677, %v1710_v9  ;;  %v1702_v12 = vadd.f32 %v1701_v10, %v5687_v0  ;;  %v1764_v29 = vmul.f32 0.5, %v1710_v9 }
 0x2e3   : > { %4965 = verf.f32 %v1779_v6 }
 0x2e4   : > { %4967 = verf.f32 %v1780_v11  ;;  %v1778_v13 = vmul.f32 0.70710677, %v1702_v12  ;;  %v1762_v35 = vmul.f32 0.5, %v1702_v12 }
 0x2e6   : > { %4969 = verf.f32 %v1778_v13 }
 0x2eb   : > { %v4642_v15 = vpop.f32.mrf.mxu1 }
 0x2ec   : > { %v5700_v16 = vadd.f32 %v4642_v15, %v5687_v0 }
 0x2ed   : > { %v1714_v17 = vpop.f32.mrf.mxu1 }
 0x2ee   : > { %v1783_v18 = vmul.f32 0.70710677, %v5700_v16  ;;  %v1715_v19 = vadd.f32 %v1714_v17, %v5687_v0  ;;  %v1767_v7 = vmul.f32 0.5, %v5700_v16 }
 0x2ef   : > { %v4964_v20 = vpop.eup %4963  ;;  %v4643_v21 = vpop.f32.mrf.mxu1 }
 0x2f0   : > { %v4966_v22 = vpop.eup %4965  ;;  %v1781_v24 = vmul.f32 0.70710677, %v1715_v19  ;;  %v1726_v25 = vadd.f32 %v4643_v21, %v5687_v0  ;;  %v1809_v27 = vadd.f32 1.0, %v4964_v20  ;;  %4971 = verf.f32 %v1783_v18 }
 0x2f1   : > { %v4968_v23 = vpop.eup %4967  ;;  %v1717_v26 = vpop.f32.mrf.mxu1  ;;  %v1811_v32 = vadd.f32 1.0, %v4966_v22  ;;  %v1765_v46 = vmul.f32 0.5, %v1715_v19 }
 0x2f2   : > { %v1812_v28 = vadd.f32 1.0, %v4968_v23  ;;  %v1718_v30 = vadd.f32 %v1717_v26, %v5687_v0  ;;  %4973 = verf.f32 %v1781_v24  ;;  %v1784_v33 = vmul.f32 0.70710677, %v1726_v25 }
 0x2f3   : > { %v4970_v31 = vpop.eup %4969  ;;  %v1825_v40 = vmul.f32 %v1809_v27, %v1761_v34  ;;  %v1827_v42 = vmul.f32 %v1811_v32, %v1763_v38  ;;  %v1768_v60 = vmul.f32 0.5, %v1726_v25 }
 0x2f4   : > { %v1810_v36 = vadd.f32 1.0, %v4970_v31  ;;  %v1782_v37 = vmul.f32 0.70710677, %v1718_v30  ;;  %v1828_v39 = vmul.f32 %v1812_v28, %v1764_v29  ;;  %4975 = verf.f32 %v1784_v33 }
 0x2f5   : > { %v1766_v4 = vmul.f32 0.5, %v1718_v30 }
 0x2f6   : > { %v1826_v41 = vmul.f32 %v1810_v36, %v1762_v35  ;;  %4977 = verf.f32 %v1782_v37  ;;  %v1846_v44 = vpack.c.bf16 %v1828_v39, %v1827_v42 }
 0x2f8   : > { %v1845_v43 = vpack.c.bf16 %v1826_v41, %v1825_v40 }
 0x2fa   : > { %4656 = vmatprep.mubr.msk.bf16.mxu0 %vm1639_vm5, %v1845_v43 }
 0x2fb   : > { %v4646_v45 = vpop.f32.mrf.mxu1  ;;  %4657 = vmatmul.mubr.msk.bf16.vlgmr.msra.gmra.mxu0 %vm1639_vm5, %v1846_v44 }
 0x2fc   : > { %v1739_v47 = vadd.f32 %v4646_v45, %v5687_v0 }
 0x2fd   : > { %v1730_v49 = vpop.f32.mrf.mxu1  ;;  %v4972_v51 = vpop.eup %4971 }
 0x2fe   : > { %v1731_v50 = vadd.f32 %v1730_v49, %v5687_v0  ;;  %v1787_v52 = vmul.f32 0.70710677, %v1739_v47  ;;  %v1815_v62 = vadd.f32 1.0, %v4972_v51  ;;  %v1771_v37 = vmul.f32 0.5, %v1739_v47 }
 0x2ff   : > { %v4647_v53 = vpop.f32.mrf.mxu1  ;;  %v4974_v54 = vpop.eup %4973 }
 0x300   : > { %v1785_v55 = vmul.f32 0.70710677, %v1731_v50  ;;  %v1742_v56 = vadd.f32 %v4647_v53, %v5687_v0  ;;  %v1813_v59 = vadd.f32 1.0, %v4974_v54  ;;  %v1831_v11 = vmul.f32 %v1815_v62, %v1767_v7  ;;  %v4924_v62 = vld [vmem:[%s5307_s1 + $0x18] sm:$0xff]  }
 0x301   : > { %v1733_v57 = vpop.f32.mrf.mxu1  ;;  %v4976_v58 = vpop.eup %4975  ;;  %v1769_v33 = vmul.f32 0.5, %v1731_v50  ;;  %4672 = vmatprep.subr.bf16.mxu1 %v4924_v62 }
 0x302   : > { %4979 = verf.f32 %v1785_v55  ;;  %v1734_v61 = vadd.f32 %v1733_v57, %v5687_v0  ;;  %v1816_v1 = vadd.f32 1.0, %v4976_v58  ;;  %v1788_v3 = vmul.f32 0.70710677, %v1742_v56  ;;  %4673 = vmatpush3.bf16.msra.mxu1 %v4924_v62 }
 0x303   : > { %v4978_v63 = vpop.eup %4977  ;;  %4981 = verf.f32 %v1787_v52  ;;  %v1829_v9 = vmul.f32 %v1813_v59, %v1765_v46  ;;  %v1772_v27 = vmul.f32 0.5, %v1742_v56  ;;  %v4927_v46 = vld [vmem:[%s5307_s1] sm:$0xff]  }
 0x304   : > { %v1814_v5 = vadd.f32 1.0, %v4978_v63  ;;  %v1786_v6 = vmul.f32 0.70710677, %v1734_v61  ;;  %v1832_v8 = vmul.f32 %v1816_v1, %v1768_v60  ;;  %4983 = verf.f32 %v1788_v3  ;;  %v4925_v1 = vld [vmem:[%s5307_s1 + $0x10] sm:$0xff]   ;;  %v4926_v3 = vld [vmem:[%s5307_s1 + $0x8] sm:$0xff]  }
 0x305   : > { %v1770_v34 = vmul.f32 0.5, %v1734_v61  ;;  %4674 = vmatprep.subr.bf16.mxu1 %v4925_v1  ;;  %4692 = vmatprep.subr.bf16.mxu0 %v4926_v3 }
 0x306   : > { %v1830_v10 = vmul.f32 %v1814_v5, %v1766_v4  ;;  %4985 = verf.f32 %v1786_v6  ;;  %v1848_v13 = vpack.c.bf16 %v1832_v8, %v1831_v11  ;;  %4675 = vmatpush3.bf16.msra.mxu1 %v4925_v1  ;;  %4693 = vmatpush3.bf16.msra.mxu0 %v4926_v3  ;;  %v4928_v4 = vld [vmem:[%s5307_s1 + $0x28] sm:$0xff]   ;;  %v5732_v5 = vpop.permute.xlu1 %2042 }
 0x307   : > { %4694 = vmatprep.subr.bf16.mxu0 %v4927_v46  ;;  %4712 = vmatprep.subr.bf16.mxu1 %v4928_v4 }
 0x308   : > { %v1847_v12 = vpack.c.bf16 %v1830_v10, %v1829_v9 }
 0x30a   : > { %4660 = vmatprep.mubr.msk.bf16.mxu0 %vm1639_vm5, %v1847_v12  ;;  %4695 = vmatpush3.bf16.msra.mxu0 %v4927_v46  ;;  %v5735_v6 = vpop.permute.xlu1 %2047 }
 0x30b   : > { %v4650_v14 = vpop.f32.mrf.mxu1  ;;  %4661 = vmatmul.mubr.msk.bf16.gmra.mxu0 %vm1639_vm5, %v1848_v13  ;;  %4732 = vmatprep.subr.bf16.mxu0 %v5158_v2 }
 0x30c   : > { %v1755_v15 = vadd.f32 %v4650_v14, %v5687_v0 }
 0x30d   : > { %v1746_v17 = vpop.f32.mrf.mxu1 }
 0x30e   : > { %v1791_v18 = vmul.f32 0.70710677, %v1755_v15  ;;  %v1747_v19 = vadd.f32 %v1746_v17, %v5687_v0  ;;  %v1775_v56 = vmul.f32 0.5, %v1755_v15  ;;  %v5737_v7 = vpop.permute.xlu1 %2057  ;;  %v5747_v15 = vpop.permute.xlu0 %1865 }
 0x30f   : > { %v4980_v16 = vpop.eup %4979  ;;  %v4651_v20 = vpop.f32.mrf.mxu1 }
 0x310   : > { %v4982_v21 = vpop.eup %4981  ;;  %v1789_v22 = vmul.f32 0.70710677, %v1747_v19  ;;  %v1758_v23 = vadd.f32 %v4651_v20, %v5687_v0  ;;  %v1817_v26 = vadd.f32 1.0, %v4980_v16  ;;  %4987 = verf.f32 %v1791_v18 }
 0x311   : > { %v1749_v24 = vpop.f32.mrf.mxu1  ;;  %v4984_v25 = vpop.eup %4983  ;;  %v1819_v31 = vadd.f32 1.0, %v4982_v21  ;;  %v1773_v53 = vmul.f32 0.5, %v1747_v19 }
 0x312   : > { %v1750_v28 = vadd.f32 %v1749_v24, %v5687_v0  ;;  %v1820_v32 = vadd.f32 1.0, %v4984_v25  ;;  %4989 = verf.f32 %v1789_v22  ;;  %v1792_v29 = vmul.f32 0.70710677, %v1758_v23  ;;  %v5739_v8 = vpop.permute.xlu1 %2170 }
 0x313   : > { %v4986_v30 = vpop.eup %4985  ;;  %v1833_v39 = vmul.f32 %v1817_v26, %v1769_v33  ;;  %v1835_v41 = vmul.f32 %v1819_v31, %v1771_v37  ;;  %v1776_v47 = vmul.f32 0.5, %v1758_v23  ;;  %v4929_v23 = vld [vmem:[%s5307_s1 + $0x20] sm:$0xff]   ;;  %v5775_v31 = vpop.permute.xlu0 %2052  ;;  %s5165_s1 = smov 120  }
 0x314   : > { %v1818_v35 = vadd.f32 1.0, %v4986_v30  ;;  %v1790_v36 = vmul.f32 0.70710677, %v1750_v28  ;;  %v1836_v38 = vmul.f32 %v1820_v32, %v1772_v27  ;;  %4991 = verf.f32 %v1792_v29 }
 0x315   : > { %v1774_v54 = vmul.f32 0.5, %v1750_v28 }
 0x316   : > { %v1834_v40 = vmul.f32 %v1818_v35, %v1770_v34  ;;  %4993 = verf.f32 %v1790_v36  ;;  %v1850_v43 = vpack.c.bf16 %v1836_v38, %v1835_v41  ;;  %v5741_v9 = vpop.permute.xlu1 %2178 }
 0x317   : > { %v2175_v38 = vpop.permute.xlu0 %2174 }
 0x318   : > { %v1849_v42 = vpack.c.bf16 %v1834_v40, %v1833_v39 }
 0x31a   : > { %4664 = vmatprep.mubr.msk.bf16.mxu0 %vm1639_vm5, %v1849_v42  ;;  %v5743_v10 = vpop.permute.xlu1 %2182 }
 0x31b   : > { %4665 = vmatmul.mubr.msk.bf16.gmra.mxu0 %vm1639_vm5, %v1850_v43  ;;  %v5799_v41 = vpop.permute.xlu0 %2190 }
 0x31d   : > { %v4988_v0 = vpop.eup %4987 }
 0x31e   : > { %v1823_v51 = vadd.f32 1.0, %v4988_v0  ;;  %v5745_v12 = vpop.permute.xlu1 %2067 }
 0x31f   : > { %v4990_v44 = vpop.eup %4989 }
 0x320   : > { %v1821_v49 = vadd.f32 1.0, %v4990_v44  ;;  %v1839_v60 = vmul.f32 %v1823_v51, %v1775_v56 }
 0x321   : > { %v4992_v45 = vpop.eup %4991 }
 0x322   : > { %v1824_v52 = vadd.f32 1.0, %v4992_v45  ;;  %v1837_v58 = vmul.f32 %v1821_v49, %v1773_v53  ;;  %v5752_v17 = vpop.permute.xlu1 %2072  ;;  %v5803_v45 = vpop.permute.xlu0 %2062 }
 0x323   : > { %v4994_v50 = vpop.eup %4993 }
 0x324   : > { %v1822_v55 = vadd.f32 1.0, %v4994_v50  ;;  %v1840_v57 = vmul.f32 %v1824_v52, %v1776_v47 }
 0x326   : > { %v1838_v59 = vmul.f32 %v1822_v55, %v1774_v54  ;;  %v1852_v63 = vpack.c.bf16 %v1840_v57, %v1839_v60  ;;  %v5769_v24 = vpop.permute.xlu1 %2186  ;;  %v2021_v54 = vlaneseq  ;;  %v5824_v56 = vpop.permute.xlu0 %2077 }
 0x328   : > { %v1851_v61 = vpack.c.bf16 %v1838_v59, %v1837_v58  ;;  %v5827_v57 = vshrl.u32 %v2021_v54, 7 }
 0x32a   : > { %4668 = vmatprep.mubr.msk.bf16.mxu0 %vm1639_vm5, %v1851_v61  ;;  %v5772_v26 = vpop.permute.xlu1 %2194  ;;  %v5832_v61 = vpop.permute.xlu0 %2082  ;;  %vm2152_vm6 = vcmp.lt.s32.totalorder %v5827_v57, 7  ;;  %vm2023_vm7 = vcmp.lt.s32.totalorder %v5827_v57, 1 }
 0x32b   : > { %4669 = vmatmul.mubr.msk.bf16.gmra.mxu0 %vm1639_vm5, %v1852_v63 }
 0x32e   : > { %v5780_v29 = vpop.permute.xlu1 %2198 }
 0x332   : > { %v5797_v39 = vpop.permute.xlu1 %2087 }
 0x336   : > { %v5801_v43 = vpop.permute.xlu1 %2092 }
 0x33a   : > { %v5817_v52 = vpop.permute.xlu1 %2202 }
 0x33e   : > { %v5830_v59 = vpop.permute.xlu1 %2210 }
 0x3bb   : > { %v4658_v11 = vpop.f32.mrf.mxu0 }
 0x3bc   : > { %v5761_v20 = vadd.f32 %v4658_v11, %v5747_v15 }
 0x3bd   : > { %v1926_v13 = vpop.f32.mrf.mxu0 }
 0x3be   : > { %v5755_v19 = vadd.f32 %v1926_v13, %v5747_v15  ;;  %v2138_v63 = vrot.slane %v5761_v20, 1 }
 0x3bf   : > { %v4659_v14 = vpop.f32.mrf.mxu0 }
 0x3c0   : > { %v5750_v48 = vadd.f32 %v4659_v14, %v5747_v15  ;;  %v2136_v46 = vrot.slane %v5755_v19, 1  ;;  %v2005_v11 = vrot.slane %v5755_v19, 7 }
 0x3c1   : > { %v1929_v18 = vpop.f32.mrf.mxu0 }
 0x3c2   : > { %v5758_v16 = vadd.f32 %v1929_v18, %v5747_v15  ;;  %v2266_v22 = vpack.c.bf16 %v5750_v48, %v5761_v20  ;;  %v2008_v62 = vrot.slane %v5750_v48, 7 }
 0x3c4   : > { %v2265_v21 = vpack.c.bf16 %v5758_v16, %v5755_v19  ;;  %v2137_v58 = vrot.slane %v5758_v16, 1  ;;  %v2006_v1 = vrot.slane %v5758_v16, 7 }
 0x3c6   : > { %4676 = vmatprep.mubr.msk.bf16.mxu1 %vm1639_vm5, %v2265_v21  ;;  %v2166_v13 = vsel %vm2152_vm6, %v2137_v58, %v2138_v63  ;;  %v2167_v18 = vsel %vm2152_vm6, %v2136_v46, %v2137_v58 }
 0x3c7   : > { %4677 = vmatmul.mubr.msk.bf16.vlgmr.msra.gmra.mxu1 %vm1639_vm5, %v2266_v22  ;;  %v2139_v22 = vrot.slane %v5750_v48, 1  ;;  %v2233_v48 = vmul.f32 %v5739_v8, %v2167_v18 }
 0x3c8   : > { %4713 = vmatpush3.bf16.msra.mxu1 %v4928_v4  ;;  %v2007_v4 = vrot.slane %v5761_v20, 7  ;;  %v2038_v20 = vsel %vm2023_vm7, %v2005_v11, %v2006_v1 }
 0x3c9   : > { %4714 = vmatprep.subr.bf16.mxu1 %v4929_v23  ;;  %v2165_v18 = vsel %vm2152_vm6, %v2138_v63, %v2139_v22 }
 0x3cb   : > { %v4662_v25 = vpop.f32.mrf.mxu0 }
 0x3cc   : > { %4715 = vmatpush3.bf16.msra.mxu1 %v4929_v23  ;;  %v5789_v35 = vadd.f32 %v4662_v25, %v5747_v15  ;;  %v2036_v23 = vsel %vm2023_vm7, %v2007_v4, %v2008_v62  ;;  %v5857_v25 = vpop.permute.xlu1 %2214 }
 0x3cd   : > { %v1942_v27 = vpop.f32.mrf.mxu0  ;;  %4738 = vmatprep.subr.bf16.mxu1 %v5158_v2 }
 0x3ce   : > { %v5783_v33 = vadd.f32 %v1942_v27, %v5747_v15 }
 0x3cf   : > { %v4663_v28 = vpop.f32.mrf.mxu0 }
 0x3d0   : > { %v5778_v32 = vadd.f32 %v4663_v28, %v5747_v15  ;;  %v2037_v28 = vsel %vm2023_vm7, %v2006_v1, %v2007_v4  ;;  %v2121_v1 = vmul.f32 %v5735_v6, %v2038_v20 }
 0x3d1   : > { %v1945_v30 = vpop.f32.mrf.mxu0 }
 0x3d2   : > { %v5786_v34 = vadd.f32 %v1945_v30, %v5747_v15  ;;  %v2268_v37 = vpack.c.bf16 %v5778_v32, %v5789_v35  ;;  %v2234_v30 = vmul.f32 %v2175_v38, %v2166_v13  ;;  %v2012_v13 = vrot.slane %v5778_v32, 7 }
 0x3d4   : > { %v2267_v36 = vpack.c.bf16 %v5786_v34, %v5783_v33  ;;  %v2010_v16 = vrot.slane %v5786_v34, 7  ;;  %v2141_v38 = vrot.slane %v5786_v34, 1  ;;  %v2543_v4 = vpack.c.bf16 %v2234_v30, %v2233_v48 }
 0x3d6   : > { %4680 = vmatprep.mubr.msk.bf16.mxu1 %vm1639_vm5, %v2267_v36  ;;  %v2009_v36 = vrot.slane %v5783_v33, 7 }
 0x3d7   : > { %4681 = vmatmul.mubr.msk.bf16.gmra.mxu1 %vm1639_vm5, %v2268_v37  ;;  %v5862_v37 = vpop.permute.xlu0 %2097 }
 0x3db   : > { %v4666_v40 = vpop.f32.mrf.mxu0 }
 0x3dc   : > { %v5815_v47 = vadd.f32 %v4666_v40, %v5747_v15 }
 0x3dd   : > { %v1958_v42 = vpop.f32.mrf.mxu0 }
 0x3de   : > { %v5809_v50 = vadd.f32 %v1958_v42, %v5747_v15  ;;  %v2140_v42 = vrot.slane %v5783_v33, 1  ;;  %v2122_v33 = vmul.f32 %v5775_v31, %v2037_v28  ;;  %v2011_v31 = vrot.slane %v5789_v35, 7 }
 0x3df   : > { %v4667_v0 = vpop.f32.mrf.mxu0 }
 0x3e0   : > { %v5806_v49 = vadd.f32 %v4667_v0, %v5747_v15  ;;  %v2033_v28 = vsel %vm2023_vm7, %v2010_v16, %v2011_v31  ;;  %v2013_v30 = vrot.slane %v5809_v50, 7 }
 0x3e1   : > { %v1961_v44 = vpop.f32.mrf.mxu0 }
 0x3e2   : > { %v5812_v51 = vadd.f32 %v1961_v44, %v5747_v15  ;;  %v2270_v55 = vpack.c.bf16 %v5806_v49, %v5815_v47 }
 0x3e4   : > { %v2269_v53 = vpack.c.bf16 %v5812_v51, %v5809_v50 }
 0x3e6   : > { %4684 = vmatprep.mubr.msk.bf16.mxu1 %vm1639_vm5, %v2269_v53  ;;  %v2034_v53 = vsel %vm2023_vm7, %v2009_v36, %v2010_v16  ;;  %v2145_v16 = vrot.slane %v5812_v51, 1 }
 0x3e7   : > { %4685 = vmatmul.mubr.msk.bf16.gmra.mxu1 %vm1639_vm5, %v2270_v55  ;;  %v2123_v55 = vmul.f32 %v5737_v7, %v2036_v23  ;;  %v2164_v7 = vsel %vm2152_vm6, %v2139_v22, %v2140_v42  ;;  %v2125_v6 = vmul.f32 %v5745_v12, %v2034_v53  ;;  %v2235_v22 = vmul.f32 %v5741_v9, %v2165_v18 }
 0x3e8   : > { %v2126_v9 = vmul.f32 %v5752_v17, %v2033_v28 }
 0x3e9   : > { %v2254_v23 = vpack.c.bf16 %v2123_v55, %v2122_v33 }
 0x3eb   : > { %v4670_v60 = vpop.f32.mrf.mxu0 }
 0x3ec   : > { %v5877_v54 = vadd.f32 %v4670_v60, %v5747_v15 }
 0x3ed   : > { %v1974_v3 = vpop.f32.mrf.mxu0 }
 0x3ee   : > { %v5868_v0 = vadd.f32 %v1974_v3, %v5747_v15  ;;  %v2142_v3 = vrot.slane %v5789_v35, 1  ;;  %v2207_v35 = vpop.permute.xlu0 %2206 }
 0x3ef   : > { %v4671_v14 = vpop.f32.mrf.mxu0 }
 0x3f0   : > { %v5850_v21 = vadd.f32 %v4671_v14, %v5747_v15  ;;  %v2014_v14 = vrot.slane %v5812_v51, 7 }
 0x3f1   : > { %v1977_v27 = vpop.f32.mrf.mxu0 }
 0x3f2   : > { %v2020_v40 = vrot.slane %v5850_v21, 7  ;;  %v5871_v44 = vadd.f32 %v1977_v27, %v5747_v15  ;;  %v2035_v15 = vsel %vm2023_vm7, %v2008_v62, %v2009_v36  ;;  %v2272_v34 = vpack.c.bf16 %v5850_v21, %v5877_v54  ;;  %v2103_v53 = vpop.permute.xlu0 %2102 }
 0x3f3   : > { %v2162_v62 = vsel %vm2152_vm6, %v2141_v38, %v2142_v3  ;;  %v2124_v20 = vmul.f32 %v5803_v45, %v2035_v15  ;;  %v2236_v27 = vmul.f32 %v5743_v10, %v2164_v7  ;;  %v2144_v36 = vrot.slane %v5809_v50, 1 }
 0x3f4   : > { %v2039_v8 = vsel %vm2023_vm7, %v2020_v40, %v2005_v11  ;;  %v2271_v58 = vpack.c.bf16 %v5871_v44, %v5868_v0  ;;  %v5897_v11 = vpop.permute.xlu1 %2107  ;;  %v2238_v45 = vmul.f32 %v5799_v41, %v2162_v62  ;;  %v2030_v10 = vsel %vm2023_vm7, %v2013_v30, %v2014_v14 }
 0x3f5   : > { %v2120_v60 = vmul.f32 %v5732_v5, %v2039_v8  ;;  %v2163_v5 = vsel %vm2152_vm6, %v2140_v42, %v2141_v38  ;;  %v2255_v48 = vpack.c.bf16 %v2125_v6, %v2124_v20  ;;  %v2032_v42 = vsel %vm2023_vm7, %v2011_v31, %v2012_v13 }
 0x3f6   : > { %4688 = vmatprep.mubr.msk.bf16.mxu1 %vm1639_vm5, %v2271_v58  ;;  %v2237_v63 = vmul.f32 %v5769_v24, %v2163_v5  ;;  %v2143_v50 = vrot.slane %v5778_v32, 1  ;;  %v2544_v24 = vpack.c.bf16 %v2236_v27, %v2235_v22  ;;  %v2146_v41 = vrot.slane %v5815_v47, 1  ;;  %v2118_v31 = vpop.permute.xlu0 %2117 }
 0x3f7   : > { %4689 = vmatmul.mubr.msk.bf16.gmra.mxu1 %vm1639_vm5, %v2272_v34  ;;  %v2253_v12 = vpack.c.bf16 %v2121_v1, %v2120_v60  ;;  %v2031_v8 = vsel %vm2023_vm7, %v2012_v13, %v2013_v30  ;;  %v2127_v33 = vmul.f32 %v5824_v56, %v2032_v42  ;;  %v2129_v32 = vmul.f32 %v5797_v39, %v2030_v10 }
 0x3f8   : > { %4716 = vmatprep.mubr.msk.bf16.mxu1 %vm1639_vm5, %v2543_v4  ;;  %v5928_v38 = vpop.permute.xlu1 %2112  ;;  %v2160_v51 = vsel %vm2152_vm6, %v2143_v50, %v2144_v36  ;;  %v2545_v55 = vpack.c.bf16 %v2238_v45, %v2237_v63  ;;  %v2015_v58 = vrot.slane %v5815_v47, 7  ;;  %v2158_v1 = vsel %vm2152_vm6, %v2145_v16, %v2146_v41 }
 0x3f9   : > { %4696 = vmatprep.mubr.msk.bf16.mxu0 %vm1639_vm5, %v2253_v12  ;;  %v2159_v17 = vsel %vm2152_vm6, %v2144_v36, %v2145_v16  ;;  %v2018_v15 = vrot.slane %v5871_v44, 7  ;;  %v2161_v56 = vsel %vm2152_vm6, %v2142_v3, %v2143_v50  ;;  %v2128_v34 = vmul.f32 %v5832_v61, %v2031_v8 }
 0x3fa   : > { %4697 = vmatmul.mubr.msk.bf16.vlgmr.msra.gmra.mxu0 %vm1639_vm5, %v2254_v23  ;;  %v2016_v60 = vrot.slane %v5806_v49, 7  ;;  %v2256_v39 = vpack.c.bf16 %v2127_v33, %v2126_v9  ;;  %v2029_v47 = vsel %vm2023_vm7, %v2014_v14, %v2015_v58  ;;  %v2017_v4 = vrot.slane %v5868_v0, 7  ;;  %v2223_v27 = vpop.permute.xlu0 %2222 }
 0x3fb   : > { %4700 = vmatprep.mubr.msk.bf16.mxu0 %vm1639_vm5, %v2255_v48  ;;  %v2240_v7 = vmul.f32 %v5780_v29, %v2160_v51  ;;  %v2241_v6 = vmul.f32 %v5817_v52, %v2159_v17  ;;  %v2242_v13 = vmul.f32 %v2207_v35, %v2158_v1  ;;  %v2148_v3 = vrot.slane %v5868_v0, 1 }
 0x3fc   : > { %v2219_v62 = vpop.permute.xlu1 %2218  ;;  %v2257_v61 = vpack.c.bf16 %v2129_v32, %v2128_v34  ;;  %v2026_v5 = vsel %vm2023_vm7, %v2017_v4, %v2018_v15  ;;  %v2149_v18 = vrot.slane %v5871_v44, 1  ;;  %v2239_v14 = vmul.f32 %v5772_v26, %v2161_v56 }
 0x3fd   : > { %v2147_v20 = vrot.slane %v5806_v49, 1  ;;  %v2028_v29 = vsel %vm2023_vm7, %v2015_v58, %v2016_v60  ;;  %v2130_v52 = vmul.f32 %v5801_v43, %v2029_v47  ;;  %v2150_v0 = vrot.slane %v5877_v54, 1 }
 0x3fe   : > { %v2027_v35 = vsel %vm2023_vm7, %v2016_v60, %v2017_v4  ;;  %v2546_v12 = vpack.c.bf16 %v2240_v7, %v2239_v14  ;;  %v2547_v44 = vpack.c.bf16 %v2242_v13, %v2241_v6  ;;  %v2133_v26 = vmul.f32 %v5897_v11, %v2026_v5 }
 0x3ff   : > { %4717 = vmatmul.mubr.msk.bf16.vlgmr.msra.gmra.mxu1 %vm1639_vm5, %v2544_v24  ;;  %v2156_v23 = vsel %vm2152_vm6, %v2147_v20, %v2148_v3  ;;  %v2131_v49 = vmul.f32 %v5862_v37, %v2028_v29  ;;  %v2154_v28 = vsel %vm2152_vm6, %v2149_v18, %v2150_v0  ;;  %v2155_v43 = vsel %vm2152_vm6, %v2148_v3, %v2149_v18  ;;  %v6027_v18 = vpop.permute.xlu0 %2700 }
 0x400   : > { %4720 = vmatprep.mubr.msk.bf16.mxu1 %vm1639_vm5, %v2545_v55  ;;  %v2157_v30 = vsel %vm2152_vm6, %v2146_v41, %v2147_v20  ;;  %v2019_v36 = vrot.slane %v5877_v54, 7  ;;  %v2132_v48 = vmul.f32 %v2103_v53, %v2027_v35  ;;  %v2227_v63 = vpop.permute.xlu1 %2226  ;;  %v2151_v37 = vrot.slane %v5850_v21, 1 }
 0x401   : > { %v2258_v11 = vpack.c.bf16 %v2131_v49, %v2130_v52  ;;  %v2244_v45 = vmul.f32 %v5857_v25, %v2156_v23  ;;  %v2245_v42 = vmul.f32 %v2219_v62, %v2155_v43  ;;  %v2246_v10 = vmul.f32 %v2223_v27, %v2154_v28 }
 0x402   : > { %4701 = vmatmul.mubr.msk.bf16.gmra.mxu0 %vm1639_vm5, %v2256_v39  ;;  %v2025_v22 = vsel %vm2023_vm7, %v2018_v15, %v2019_v36  ;;  %v2259_v16 = vpack.c.bf16 %v2133_v26, %v2132_v48  ;;  %v2243_v50 = vmul.f32 %v5830_v59, %v2157_v30  ;;  %v2024_v54 = vsel %vm2023_vm7, %v2019_v36, %v2020_v40 }
 0x403   : > { %4704 = vmatprep.mubr.msk.bf16.mxu0 %vm1639_vm5, %v2257_v61  ;;  %v2134_v53 = vmul.f32 %v5928_v38, %v2025_v22  ;;  %v2153_v24 = vsel %vm2152_vm6, %v2150_v0, %v2151_v37  ;;  %v2168_v41 = vsel %vm2152_vm6, %v2151_v37, %v2136_v46  ;;  %v2549_v59 = vpack.c.bf16 %v2246_v10, %v2245_v42 }
 0x404   : > { %v2548_v25 = vpack.c.bf16 %v2244_v45, %v2243_v50  ;;  %v2231_v9 = vpop.permute.xlu1 %2230  ;;  %v2135_v8 = vmul.f32 %v2118_v31, %v2024_v54  ;;  %v2247_v21 = vmul.f32 %v2227_v63, %v2153_v24 }
 0x405   : > { %v2248_v33 = vmul.f32 %v2231_v9, %v2168_v41 }
 0x406   : > { %v2260_v40 = vpack.c.bf16 %v2135_v8, %v2134_v53 }
 0x407   : > { %4721 = vmatmul.mubr.msk.bf16.gmra.mxu1 %vm1639_vm5, %v2546_v12  ;;  %v2550_v38 = vpack.c.bf16 %v2248_v33, %v2247_v21 }
 0x408   : > { %4724 = vmatprep.mubr.msk.bf16.mxu1 %vm1639_vm5, %v2547_v44 }
 0x40a   : > { %4705 = vmatmul.mubr.msk.bf16.gmra.mxu0 %vm1639_vm5, %v2258_v11 }
 0x40b   : > { %4708 = vmatprep.mubr.msk.bf16.mxu0 %vm1639_vm5, %v2259_v16 }
 0x40f   : > { %4725 = vmatmul.mubr.msk.bf16.gmra.mxu1 %vm1639_vm5, %v2548_v25 }
 0x410   : > { %4728 = vmatprep.mubr.msk.bf16.mxu1 %vm1639_vm5, %v2549_v59 }
 0x412   : > { %4709 = vmatmul.mubr.msk.bf16.gmra.mxu0 %vm1639_vm5, %v2260_v40 }
 0x413   : > { %4734 = vmatprep.mubr.msk.bf16.mxu0 %vm5159_vm1, %v5158_v2 }
 0x417   : > { %4729 = vmatmul.mubr.msk.bf16.gmra.mxu1 %vm1639_vm5, %v2550_v38 }
 0x418   : > { %4740 = vmatprep.mubr.msk.bf16.mxu1 %vm5159_vm1, %v5158_v2 }
 0x487   : > { %v4678_v19 = vpop.f32.mrf.mxu1 }
 0x489   : > { %v2343_v57 = vpop.f32.mrf.mxu1 }
 0x48b   : > { %v4679_v46 = vpop.f32.mrf.mxu1 }
 0x48d   : > { %v2346_v51 = vpop.f32.mrf.mxu1 }
 0x497   : > { %v6009_v55 = vpop.f32.mrf.mxu1 }
 0x499   : > { %v2359_v32 = vpop.f32.mrf.mxu1 }
 0x49b   : > { %v4683_v58 = vpop.f32.mrf.mxu1 }
 0x49d   : > { %v2362_v1 = vpop.f32.mrf.mxu1 }
 0x4a7   : > { %v6011_v17 = vpop.f32.mrf.mxu1 }
 0x4a9   : > { %v6013_v15 = vpop.f32.mrf.mxu1 }
 0x4ab   : > { %v6015_v56 = vpop.f32.mrf.mxu1 }
 0x4ad   : > { %v6017_v34 = vpop.f32.mrf.mxu1 }
 0x4b7   : > { %v6019_v60 = vpop.f32.mrf.mxu1 }
 0x4b9   : > { %v6021_v39 = vpop.f32.mrf.mxu1 }
 0x4ba   : > { %v4698_v47 = vpop.f32.mrf.mxu0 }
 0x4bb   : > { %v6023_v4 = vpop.f32.mrf.mxu1  ;;  %v2485_v23 = vadd.f32 %v4698_v47, %v4678_v19 }
 0x4bc   : > { %v2476_v31 = vpop.f32.mrf.mxu0 }
 0x4bd   : > { %v6025_v7 = vpop.f32.mrf.mxu1  ;;  %v2477_v62 = vadd.f32 %v2476_v31, %v2343_v57 }
 0x4be   : > { %v4699_v6 = vpop.f32.mrf.mxu0 }
 0x4bf   : > { %v4718_v13 = vpop.f32.mrf.mxu1  ;;  %v2488_v5 = vadd.f32 %v4699_v6, %v4679_v46 }
 0x4c0   : > { %v2479_v3 = vpop.f32.mrf.mxu0  ;;  %v2686_v43 = vadd.f32 %v4718_v13, %v2485_v23 }
 0x4c1   : > { %v2621_v61 = vpop.f32.mrf.mxu1  ;;  %v2480_v52 = vadd.f32 %v2479_v3, %v2346_v51 }
 0x4c2   : > { %v2684_v14 = vadd.f32 %v2621_v61, %v2477_v62  ;;  %v4702_v20 = vpop.f32.mrf.mxu0  ;;  %v6044_v10 = vadd.f32 %v6027_v18, %v2686_v43 }
 0x4c3   : > { %v4719_v29 = vpop.f32.mrf.mxu1  ;;  %v2501_v46 = vadd.f32 %v4702_v20, %v6009_v55 }
 0x4c4   : > { %v6030_v0 = vadd.f32 %v6027_v18, %v2684_v14  ;;  %v2687_v35 = vadd.f32 %v4719_v29, %v2488_v5  ;;  %v2492_v12 = vpop.f32.mrf.mxu0  ;;  %v4311_v41 = vmul.f32 -1.442695, %v6044_v10 }
 0x4c5   : > { %v2624_v44 = vpop.f32.mrf.mxu1  ;;  %v2493_v16 = vadd.f32 %v2492_v12, %v2359_v32 }
 0x4c6   : > { %v4309_v26 = vmul.f32 -1.442695, %v6030_v0  ;;  %v2685_v49 = vadd.f32 %v2624_v44, %v2480_v52  ;;  %v4703_v27 = vpop.f32.mrf.mxu0  ;;  %v6034_v30 = vadd.f32 %v6027_v18, %v2687_v35 }
 0x4c7   : > { %v4722_v28 = vpop.f32.mrf.mxu1  ;;  %v2504_v8 = vadd.f32 %v4703_v27, %v4683_v58 }
 0x4c8   : > { %4995 = vpow2.f32 %v4309_v26  ;;  %v6037_v36 = vadd.f32 %v6027_v18, %v2685_v49  ;;  %v2495_v48 = vpop.f32.mrf.mxu0  ;;  %v4312_v22 = vmul.f32 -1.442695, %v6034_v30 }
 0x4c9   : > { %v2637_v63 = vpop.f32.mrf.mxu1  ;;  %v2496_v42 = vadd.f32 %v2495_v48, %v2362_v1  ;;  %v2690_v1 = vadd.f32 %v4722_v28, %v2501_v46 }
 0x4ca   : > { %v4310_v11 = vmul.f32 -1.442695, %v6037_v36  ;;  %v6040_v37 = vpop.f32.mrf.mxu0  ;;  %v2688_v25 = vadd.f32 %v2637_v63, %v2493_v16 }
 0x4cb   : > { %v4723_v45 = vpop.f32.mrf.mxu1  ;;  %v6061_v3 = vadd.f32 %v6027_v18, %v2690_v1 }
 0x4cc   : > { %4997 = vpow2.f32 %v4310_v11  ;;  %v2508_v54 = vpop.f32.mrf.mxu0  ;;  %v6051_v40 = vadd.f32 %v6027_v18, %v2688_v25  ;;  %v2691_v38 = vadd.f32 %v4723_v45, %v2504_v8  ;;  %v2517_v45 = vadd.f32 %v6040_v37, %v6011_v17 }
 0x4cd   : > { %v2640_v50 = vpop.f32.mrf.mxu1  ;;  %4999 = vpow2.f32 %v4312_v22  ;;  %v2509_v20 = vadd.f32 %v2508_v54, %v6013_v15  ;;  %v4315_v52 = vmul.f32 -1.442695, %v6061_v3 }
 0x4ce   : > { %v2689_v53 = vadd.f32 %v2640_v50, %v2496_v42  ;;  %v4707_v21 = vpop.f32.mrf.mxu0  ;;  %5001 = vpow2.f32 %v4311_v41  ;;  %v4313_v47 = vmul.f32 -1.442695, %v6051_v40  ;;  %v6057_v58 = vadd.f32 %v6027_v18, %v2691_v38 }
 0x4cf   : > { %v4726_v24 = vpop.f32.mrf.mxu1  ;;  %v2520_v26 = vadd.f32 %v4707_v21, %v6015_v56 }
 0x4d0   : > { %v6047_v9 = vadd.f32 %v6027_v18, %v2689_v53  ;;  %v2511_v32 = vpop.f32.mrf.mxu0  ;;  %v4316_v5 = vmul.f32 -1.442695, %v6057_v58  ;;  %v2694_v56 = vadd.f32 %v4726_v24, %v2517_v45 }
 0x4d1   : > { %v2653_v59 = vpop.f32.mrf.mxu1  ;;  %v2512_v13 = vadd.f32 %v2511_v32, %v6017_v34 }
 0x4d2   : > { %v4314_v33 = vmul.f32 -1.442695, %v6047_v9  ;;  %v6063_v55 = vpop.f32.mrf.mxu0  ;;  %v2692_v35 = vadd.f32 %v2653_v59, %v2509_v20  ;;  %v6090_v17 = vadd.f32 %v6027_v18, %v2694_v56 }
 0x4d3   : > { %v4727_v19 = vpop.f32.mrf.mxu1 }
 0x4d4   : > { %5003 = vpow2.f32 %v4314_v33  ;;  %v2524_v34 = vpop.f32.mrf.mxu0  ;;  %v6075_v27 = vadd.f32 %v6027_v18, %v2692_v35  ;;  %v2695_v15 = vadd.f32 %v4727_v19, %v2520_v26 }
 0x4d5   : > { %v4996_v57 = vpop.eup %4995  ;;  %v2656_v31 = vpop.f32.mrf.mxu1  ;;  %v2525_v33 = vadd.f32 %v2524_v34, %v6021_v39 }
 0x4d6   : > { %v2767_v51 = vadd.f32 1.0, %v4996_v57  ;;  %v2693_v61 = vadd.f32 %v2656_v31, %v2512_v13  ;;  %v4711_v43 = vpop.f32.mrf.mxu0  ;;  %v4317_v42 = vmul.f32 -1.442695, %v6075_v27  ;;  %v6083_v16 = vadd.f32 %v6027_v18, %v2695_v15 }
 0x4d7   : > { %v6067_v29 = vpop.f32.mrf.mxu1  ;;  %v2536_v32 = vadd.f32 %v4711_v43, %v6023_v4 }
 0x4d8   : > { %5005 = vrcp.f32 %v2767_v51  ;;  %v6071_v12 = vadd.f32 %v6027_v18, %v2693_v61  ;;  %v2527_v50 = vpop.f32.mrf.mxu0  ;;  %v4320_v37 = vmul.f32 -1.442695, %v6083_v16 }
 0x4d9   : > { %v4998_v6 = vpop.eup %4997  ;;  %5007 = vpow2.f32 %v4313_v47  ;;  %v2669_v49 = vpop.f32.mrf.mxu1  ;;  %v2528_v59 = vadd.f32 %v2527_v50, %v6025_v7  ;;  %v4319_v7 = vmul.f32 -1.442695, %v6090_v17 }
 0x4da   : > { %v2768_v62 = vadd.f32 1.0, %v4998_v6  ;;  %v5000_v14 = vpop.eup %4999  ;;  %v4318_v28 = vmul.f32 -1.442695, %v6071_v12  ;;  %v2696_v38 = vadd.f32 %v2669_v49, %v2525_v33 }
 0x4db   : > { %v2770_v44 = vadd.f32 1.0, %v5000_v14  ;;  %v5002_v23 = vpop.eup %5001  ;;  %v4731_v22 = vpop.f32.mrf.mxu1 }
 0x4dc   : > { %5009 = vrcp.f32 %v2768_v62  ;;  %v2769_v63 = vadd.f32 1.0, %v5002_v23  ;;  %v6103_v39 = vadd.f32 %v6027_v18, %v2696_v38  ;;  %v2699_v47 = vadd.f32 %v4731_v22, %v2536_v32 }
 0x4dd   : > { %5011 = vpow2.f32 %v4316_v5  ;;  %v2672_v41 = vpop.f32.mrf.mxu1  ;;  %v2533_v62 = vadd.f32 %v6063_v55, %v6019_v60 }
 0x4de   : > { %5013 = vpow2.f32 %v4315_v52  ;;  %v2697_v8 = vadd.f32 %v2672_v41, %v2528_v59  ;;  %v4321_v61 = vmul.f32 -1.442695, %v6103_v39  ;;  %v6114_v5 = vadd.f32 %v6027_v18, %v2699_v47 }
 0x4df   : > { %5015 = vrcp.f32 %v2770_v44  ;;  %v2698_v4 = vadd.f32 %v6067_v29, %v2533_v62 }
 0x4e0   : > { %5017 = vpow2.f32 %v4318_v28  ;;  %v6098_v46 = vadd.f32 %v6027_v18, %v2697_v8  ;;  %v4324_v55 = vmul.f32 -1.442695, %v6114_v5  ;;  %v3057_v8 = vld [vmem:[%s5323_s3] sm:$0xff] }
 0x4e1   : > { %v5004_v48 = vpop.eup %5003  ;;  %5019 = vrcp.f32 %v2769_v63  ;;  %v6120_v60 = vadd.f32 %v6027_v18, %v2698_v4 }
 0x4e2   : > { %v2772_v53 = vadd.f32 1.0, %v5004_v48  ;;  %5021 = vpow2.f32 %v4317_v42  ;;  %v4322_v6 = vmul.f32 -1.442695, %v6098_v46 }
 0x4e3   : > { %v4323_v44 = vmul.f32 -1.442695, %v6120_v60 }
 0x4e4   : > { %5023 = vrcp.f32 %v2772_v53 }
 0x4e5   : > { %v5006_v11 = vpop.eup %5005  ;;  %5025 = vpow2.f32 %v4320_v37 }
 0x4e6   : > { %2831 = vrot.lane.b32.xlu1 %v5006_v11, %s5165_s1  ;;  %v5008_v54 = vpop.eup %5007 }
 0x4e7   : > { %v2771_v24 = vadd.f32 1.0, %v5008_v54 }
 0x4e9   : > { %v5010_v25 = vpop.eup %5009  ;;  %5027 = vrcp.f32 %v2771_v24  ;;  %v3058_v24 = vld [vmem:[%s5323_s3 + $0x8] sm:$0xff]  ;;  %s4366_s3 = sadd.s32 128, %s5458_s18 }
 0x4ea   : > { %2833 = vrot.lane.b32.xlu0 %v5010_v25, %s5165_s1  ;;  %2911 = vrot.lane.b32.xlu1 %v6030_v0, %s5166_s22  ;;  %v5012_v21 = vpop.eup %5011  ;;  %5029 = vpow2.f32 %v4319_v7  ;;  %s3146_s27 = sadd.s32 %s4366_s3, %s5456_s21  ;;  %s6327_s3 = sld [smem:[#allocation5 + %s3264_s24]] }
 0x4eb   : > { %v5014_v19 = vpop.eup %5013  ;;  %v2774_v57 = vadd.f32 1.0, %v5012_v21  ;;  %s6297_s0 = sld [smem:[#allocation5 + %s3146_s27]] }
 0x4ec   : > { %v5016_v51 = vpop.eup %5015  ;;  %v2773_v1 = vadd.f32 1.0, %v5014_v19 }
 0x4ed   : > { %v5018_v31 = vpop.eup %5017  ;;  %5031 = vrcp.f32 %v2774_v57 }
 0x4ee   : > { %2913 = vrot.lane.b32.xlu0 %v6037_v36, %s5166_s22  ;;  %v5020_v13 = vpop.eup %5019  ;;  %5033 = vrcp.f32 %v2773_v1  ;;  %v2776_v20 = vadd.f32 1.0, %v5018_v31 }
 0x4ef   : > { %2835 = vrot.lane.b32.xlu1 %v5020_v13, %s5165_s1  ;;  %v5022_v14 = vpop.eup %5021  ;;  %5035 = vpow2.f32 %v4322_v6 }
 0x4f0   : > { %5037 = vpow2.f32 %v4321_v61  ;;  %v2775_v35 = vadd.f32 1.0, %v5022_v14 }
 0x4f1   : > { %v5024_v52 = vpop.eup %5023  ;;  %5039 = vrcp.f32 %v2776_v20 }
 0x4f2   : > { %2837 = vrot.lane.b32.xlu0 %v5016_v51, %s5165_s1  ;;  %v5026_v29 = vpop.eup %5025  ;;  %5041 = vpow2.f32 %v4324_v55 }
 0x4f3   : > { %2915 = vrot.lane.b32.xlu1 %v6044_v10, %s5166_s22  ;;  %5043 = vrcp.f32 %v2775_v35  ;;  %v2778_v26 = vadd.f32 1.0, %v5026_v29 }
 0x4f4   : > { %5045 = vpow2.f32 %v4323_v44 }
 0x4f5   : > { %5047 = vrcp.f32 %v2778_v26 }
 0x4f6   : > { %2917 = vrot.lane.b32.xlu0 %v6034_v30, %s5166_s22  ;;  %v5028_v34 = vpop.eup %5027 }
 0x4f7   : > { %2839 = vrot.lane.b32.xlu1 %v5028_v34, %s5165_s1  ;;  %v5030_v23 = vpop.eup %5029 }
 0x4f8   : > { %v2777_v15 = vadd.f32 1.0, %v5030_v23 }
 0x4fa   : > { %2841 = vrot.lane.b32.xlu0 %v5024_v52, %s5165_s1  ;;  %v5032_v18 = vpop.eup %5031  ;;  %5049 = vrcp.f32 %v2777_v15 }
 0x4fb   : > { %2919 = vrot.lane.b32.xlu1 %v6051_v40, %s5166_s22  ;;  %v5034_v49 = vpop.eup %5033 }
 0x4fc   : > { %v5036_v28 = vpop.eup %5035 }
 0x4fd   : > { %v5038_v43 = vpop.eup %5037  ;;  %v2780_v48 = vadd.f32 1.0, %v5036_v28 }
 0x4fe   : > { %2921 = vrot.lane.b32.xlu0 %v6047_v9, %s5166_s22  ;;  %v5040_v63 = vpop.eup %5039  ;;  %v2779_v45 = vadd.f32 1.0, %v5038_v43 }
 0x4ff   : > { %2843 = vrot.lane.b32.xlu1 %v5034_v49, %s5165_s1  ;;  %v5042_v11 = vpop.eup %5041  ;;  %5051 = vrcp.f32 %v2780_v48 }
 0x500   : > { %v5044_v22 = vpop.eup %5043  ;;  %5053 = vrcp.f32 %v2779_v45  ;;  %v2782_v42 = vadd.f32 1.0, %v5042_v11 }
 0x501   : > { %v5046_v56 = vpop.eup %5045 }
 0x502   : > { %2845 = vrot.lane.b32.xlu0 %v5032_v18, %s5165_s1  ;;  %v5048_v50 = vpop.eup %5047  ;;  %v2781_v54 = vadd.f32 1.0, %v5046_v56  ;;  %5055 = vrcp.f32 %v2782_v42 }
 0x503   : > { %2923 = vrot.lane.b32.xlu1 %v6061_v3, %s5166_s22 }
 0x504   : > { %5057 = vrcp.f32 %v2781_v54 }
 0x506   : > { %2925 = vrot.lane.b32.xlu0 %v6057_v58, %s5166_s22 }
 0x507   : > { %2847 = vrot.lane.b32.xlu1 %v5044_v22, %s5165_s1  ;;  %v5050_v53 = vpop.eup %5049 }
 0x50a   : > { %2849 = vrot.lane.b32.xlu0 %v5040_v63, %s5165_s1 }
 0x50b   : > { %2927 = vrot.lane.b32.xlu1 %v6075_v27, %s5166_s22 }
 0x50c   : > { %v5052_v25 = vpop.eup %5051 }
 0x50d   : > { %v5054_v41 = vpop.eup %5053 }
 0x50e   : > { %2929 = vrot.lane.b32.xlu0 %v6071_v12, %s5166_s22 }
 0x50f   : > { %2851 = vrot.lane.b32.xlu1 %v5050_v53, %s5165_s1  ;;  %v5056_v59 = vpop.eup %5055 }
 0x511   : > { %v5058_v37 = vpop.eup %5057 }
 0x512   : > { %2853 = vrot.lane.b32.xlu0 %v5048_v50, %s5165_s1 }
 0x513   : > { %2931 = vrot.lane.b32.xlu1 %v6090_v17, %s5166_s22 }
 0x516   : > { %2933 = vrot.lane.b32.xlu0 %v6083_v16, %s5166_s22 }
 0x517   : > { %2855 = vrot.lane.b32.xlu1 %v5054_v41, %s5165_s1 }
 0x51a   : > { %2857 = vrot.lane.b32.xlu0 %v5052_v25, %s5165_s1 }
 0x51b   : > { %2935 = vrot.lane.b32.xlu1 %v6103_v39, %s5166_s22 }
 0x51e   : > { %2937 = vrot.lane.b32.xlu0 %v6098_v46, %s5166_s22 }
 0x51f   : > { %2859 = vrot.lane.b32.xlu1 %v5058_v37, %s5165_s1 }
 0x522   : > { %2861 = vrot.lane.b32.xlu0 %v5056_v59, %s5165_s1  ;;  %s4376_s1 = sadd.s32 768, %s5458_s18 }
 0x523   : > { %2939 = vrot.lane.b32.xlu1 %v6120_v60, %s5166_s22  ;;  %s3442_s27 = sadd.s32 %s4376_s1, %s5456_s21 }
 0x524   : > { %s6375_s19 = sld [smem:[#allocation5 + %s3442_s27]] }
 0x526   : > { %2941 = vrot.lane.b32.xlu0 %v6114_v5, %s5166_s22 }
 0x527   : > { %3074 = vperm.xlu1 %4902, %v3057_v8  }
 0x52a   : > { %3079 = vperm.xlu0 %4903, %v3058_v24  }
 0x558   : > { %v2832_v21 = vpop.permute.xlu1 %2831 }
 0x559   : > { %v2879_v33 = vmul.f32 %v2832_v21, %v6030_v0 }
 0x55c   : > { %v2834_v7 = vpop.permute.xlu0 %2833  ;;  %v2912_v38 = vpop.permute.xlu1 %2911 }
 0x55d   : > { %v2959_v19 = vadd.f32 %v2912_v38, %v2879_v33  ;;  %v2880_v57 = vmul.f32 %v2834_v7, %v6037_v36 }
 0x55f   : > { %v2991_v51 = vmul.f32 0.70710677, %v2959_v19  ;;  %v2975_v26 = vmul.f32 0.5, %v2959_v19 }
 0x560   : > { %v2914_v32 = vpop.permute.xlu0 %2913 }
 0x561   : > { %5059 = verf.f32 %v2991_v51  ;;  %v2960_v1 = vadd.f32 %v2914_v32, %v2880_v57  ;;  %v2836_v13 = vpop.permute.xlu1 %2835 }
 0x562   : > { %v2881_v61 = vmul.f32 %v2836_v13, %v6044_v10 }
 0x563   : > { %v2992_v47 = vmul.f32 0.70710677, %v2960_v1  ;;  %v2976_v18 = vmul.f32 0.5, %v2960_v1 }
 0x564   : > { %v2838_v31 = vpop.permute.xlu0 %2837 }
 0x565   : > { %5061 = verf.f32 %v2992_v47  ;;  %v2882_v6 = vmul.f32 %v2838_v31, %v6034_v30  ;;  %v2916_v14 = vpop.permute.xlu1 %2915 }
 0x566   : > { %v2961_v52 = vadd.f32 %v2916_v14, %v2881_v61 }
 0x568   : > { %v2918_v62 = vpop.permute.xlu0 %2917  ;;  %v2993_v55 = vmul.f32 0.70710677, %v2961_v52  ;;  %v2977_v38 = vmul.f32 0.5, %v2961_v52 }
 0x569   : > { %v2962_v4 = vadd.f32 %v2918_v62, %v2882_v6  ;;  %v2840_v35 = vpop.permute.xlu1 %2839 }
 0x56a   : > { %v2883_v10 = vmul.f32 %v2840_v35, %v6051_v40  ;;  %v6172_v40 = vld [vmem:[%s5317_s25] sm:$0xff]   ;;  %s3071_s25 = sld [smem:[#allocation5 + %s5462_s23]] }
 0x56b   : > { %v2994_v0 = vmul.f32 0.70710677, %v2962_v4  ;;  %v2978_v21 = vmul.f32 0.5, %v2962_v4  ;;  %s6312_s23 = sld [smem:[#allocation5 + %s3206_s30]]  ;;  %s4382_s30 = sadd.s32 1152, %s5458_s18 }
 0x56c   : > { %v2842_v20 = vpop.permute.xlu0 %2841 }
 0x56d   : > { %5063 = verf.f32 %v2994_v0  ;;  %v2884_v29 = vmul.f32 %v2842_v20, %v6047_v9  ;;  %v2920_v28 = vpop.permute.xlu1 %2919 }
 0x56e   : > { %v5060_v36 = vpop.eup %5059  ;;  %5065 = verf.f32 %v2993_v55  ;;  %v2963_v11 = vadd.f32 %v2920_v28, %v2883_v10 }
 0x56f   : > { %v3023_v44 = vadd.f32 1.0, %v5060_v36 }
 0x570   : > { %v2922_v34 = vpop.permute.xlu0 %2921  ;;  %v2995_v9 = vmul.f32 0.70710677, %v2963_v11  ;;  %v2979_v55 = vmul.f32 0.5, %v2963_v11 }
 0x571   : > { %v2964_v23 = vadd.f32 %v2922_v34, %v2884_v29  ;;  %v3039_v48 = vmul.f32 %v3023_v44, %v2975_v26  ;;  %v2844_v56 = vpop.permute.xlu1 %2843 }
 0x572   : > { %v5062_v30 = vpop.eup %5061  ;;  %v2885_v59 = vmul.f32 %v2844_v56, %v6061_v3 }
 0x573   : > { %v3024_v49 = vadd.f32 1.0, %v5062_v30  ;;  %v2996_v15 = vmul.f32 0.70710677, %v2964_v23  ;;  %v2980_v14 = vmul.f32 0.5, %v2964_v23 }
 0x574   : > { %v2846_v43 = vpop.permute.xlu0 %2845 }
 0x575   : > { %v3040_v63 = vmul.f32 %v3024_v49, %v2976_v18  ;;  %5067 = verf.f32 %v2996_v15  ;;  %v2886_v45 = vmul.f32 %v2846_v43, %v6057_v58  ;;  %v2924_v58 = vpop.permute.xlu1 %2923 }
 0x576   : > { %5069 = verf.f32 %v2995_v9  ;;  %v2965_v33 = vadd.f32 %v2924_v58, %v2885_v59 }
 0x577   : > { %v3059_v22 = vpack.c.bf16 %v3040_v63, %v3039_v48 }
 0x578   : > { %v2926_v42 = vpop.permute.xlu0 %2925  ;;  %v2997_v57 = vmul.f32 0.70710677, %v2965_v33 }
 0x579   : > { %v6168_v50 = vadd.f32 %v2926_v42, %v2886_v45  ;;  %v3091_v54 = vsel %vm1431_vm3, %v3059_v22, 0  ;;  %v3149_v25 = vrot.slane %v3059_v22, 4  ;;  %v2848_v32 = vpop.permute.xlu1 %2847 }
 0x57a   : > { %v5064_v53 = vpop.eup %5063  ;;  %4733 = vmatpush3.bf16.msra.mxu0 %v3091_v54  ;;  %v2887_v62 = vmul.f32 %v2848_v32, %v6075_v27 }
 0x57b   : > { %v3026_v41 = vadd.f32 1.0, %v5064_v53  ;;  %v2998_v37 = vmul.f32 0.70710677, %v6168_v50  ;;  %4744 = vmatprep.subr.bf16.mxu0 %v5158_v2  ;;  %v3151_v8 = vsel %vm1431_vm3, %v3149_v25, 0  ;;  %v5066_v7 = vpop.eup %5065  ;;  %v2982_v11 = vmul.f32 0.5, %v6168_v50 }
 0x57c   : > { %v2850_v24 = vpop.permute.xlu0 %2849  ;;  %4739 = vmatpush3.bf16.msra.mxu1 %v3151_v8  ;;  %v3025_v3 = vadd.f32 1.0, %v5066_v7 }
 0x57d   : > { %5071 = verf.f32 %v2998_v37  ;;  %4735 = vmatmul.mubr.msk.bf16.vlgmr.msra.gmra.mxu0 %vm638_vm4, %v6172_v40  ;;  %4750 = vmatprep.subr.bf16.mxu1 %v5158_v2  ;;  %v3042_v19 = vmul.f32 %v3026_v41, %v2978_v21  ;;  %v2888_v51 = vmul.f32 %v2850_v24, %v6071_v12  ;;  %v2928_v12 = vpop.permute.xlu1 %2927 }
 0x57e   : > { %4746 = vmatprep.mubr.msk.bf16.mxu0 %vm5159_vm1, %v5158_v2  ;;  %v3041_v47 = vmul.f32 %v3025_v3, %v2977_v38  ;;  %5073 = verf.f32 %v2997_v57  ;;  %v6192_v20 = vadd.f32 %v2928_v12, %v2887_v62 }
 0x57f   : > { %4741 = vmatmul.mubr.msk.bf16.vlgmr.msra.gmra.mxu1 %vm638_vm4, %v6172_v40 }
 0x580   : > { %v2930_v1 = vpop.permute.xlu0 %2929  ;;  %4752 = vmatprep.mubr.msk.bf16.mxu1 %vm5159_vm1, %v5158_v2  ;;  %v3060_v61 = vpack.c.bf16 %v3042_v19, %v3041_v47  ;;  %v2999_v44 = vmul.f32 0.70710677, %v6192_v20 }
 0x581   : > { %v6186_v31 = vadd.f32 %v2930_v1, %v2888_v51  ;;  %v2852_v30 = vpop.permute.xlu1 %2851 }
 0x582   : > { %v5068_v6 = vpop.eup %5067  ;;  %v3209_v52 = vsel %vm1431_vm3, %v3060_v61, 0  ;;  %v3267_v29 = vrot.slane %v3060_v61, 4  ;;  %v2889_v15 = vmul.f32 %v2852_v30, %v6090_v17  ;;  %v2981_v17 = vmul.f32 0.5, %v2965_v33 }
 0x583   : > { %v3028_v13 = vadd.f32 1.0, %v5068_v6  ;;  %v3000_v4 = vmul.f32 0.70710677, %v6186_v31  ;;  %v5070_v36 = vpop.eup %5069  ;;  %4745 = vmatpush3.bf16.msra.mxu0 %v3209_v52  ;;  %v2984_v3 = vmul.f32 0.5, %v6186_v31 }
 0x584   : > { %v2854_v0 = vpop.permute.xlu0 %2853  ;;  %v3027_v35 = vadd.f32 1.0, %v5070_v36  ;;  %4756 = vmatprep.subr.bf16.mxu0 %v5158_v2  ;;  %v3269_v23 = vsel %vm1431_vm3, %v3267_v29, 0 }
 0x585   : > { %5075 = verf.f32 %v3000_v4  ;;  %v3044_v34 = vmul.f32 %v3028_v13, %v2980_v14  ;;  %v2890_v27 = vmul.f32 %v2854_v0, %v6083_v16  ;;  %4751 = vmatpush3.bf16.msra.mxu1 %v3269_v23  ;;  %v2932_v48 = vpop.permute.xlu1 %2931 }
 0x586   : > { %v3043_v18 = vmul.f32 %v3027_v35, %v2979_v55  ;;  %5077 = verf.f32 %v2999_v44  ;;  %4747 = vmatmul.mubr.msk.bf16.vlgmr.msra.gmra.mxu0 %vm638_vm4, %v6172_v40  ;;  %4762 = vmatprep.subr.bf16.mxu1 %v5158_v2  ;;  %v6211_v9 = vadd.f32 %v2932_v48, %v2889_v15 }
 0x587   : > { %4758 = vmatprep.mubr.msk.bf16.mxu0 %vm5159_vm1, %v5158_v2 }
 0x588   : > { %v2934_v26 = vpop.permute.xlu0 %2933  ;;  %v3061_v43 = vpack.c.bf16 %v3044_v34, %v3043_v18  ;;  %4753 = vmatmul.mubr.msk.bf16.vlgmr.msra.gmra.mxu1 %vm638_vm4, %v6172_v40  ;;  %v3001_v53 = vmul.f32 0.70710677, %v6211_v9 }
 0x589   : > { %v6199_v49 = vadd.f32 %v2934_v26, %v2890_v27  ;;  %4764 = vmatprep.mubr.msk.bf16.mxu1 %vm5159_vm1, %v5158_v2  ;;  %v2856_v50 = vpop.permute.xlu1 %2855 }
 0x58a   : > { %v5072_v10 = vpop.eup %5071  ;;  %v3327_v45 = vsel %vm1431_vm3, %v3061_v43, 0  ;;  %v3385_v56 = vrot.slane %v3061_v43, 4  ;;  %v2891_v8 = vmul.f32 %v2856_v50, %v6103_v39  ;;  %v2983_v39 = vmul.f32 0.5, %v6192_v20 }
 0x58b   : > { %v3030_v16 = vadd.f32 1.0, %v5072_v10  ;;  %v3002_v28 = vmul.f32 0.70710677, %v6199_v49  ;;  %v5074_v22 = vpop.eup %5073  ;;  %4757 = vmatpush3.bf16.msra.mxu0 %v3327_v45  ;;  %v2986_v55 = vmul.f32 0.5, %v6199_v49 }
 0x58c   : > { %v2858_v63 = vpop.permute.xlu0 %2857  ;;  %v3029_v42 = vadd.f32 1.0, %v5074_v22  ;;  %4768 = vmatprep.subr.bf16.mxu0 %v5158_v2  ;;  %v3387_v41 = vsel %vm1431_vm3, %v3385_v56, 0 }
 0x58d   : > { %5079 = verf.f32 %v3002_v28  ;;  %v3046_v54 = vmul.f32 %v3030_v16, %v2982_v11  ;;  %v2892_v25 = vmul.f32 %v2858_v63, %v6098_v46  ;;  %4763 = vmatpush3.bf16.msra.mxu1 %v3387_v41  ;;  %v2936_v7 = vpop.permute.xlu1 %2935 }
 0x58e   : > { %v3045_v37 = vmul.f32 %v3029_v42, %v2981_v17  ;;  %5081 = verf.f32 %v3001_v53  ;;  %4759 = vmatmul.mubr.msk.bf16.vlgmr.msra.gmra.mxu0 %vm638_vm4, %v6172_v40  ;;  %4774 = vmatprep.subr.bf16.mxu1 %v5158_v2  ;;  %v2971_v19 = vadd.f32 %v2936_v7, %v2891_v8 }
 0x58f   : > { %4770 = vmatprep.mubr.msk.bf16.mxu0 %vm5159_vm1, %v5158_v2 }
 0x590   : > { %v2938_v59 = vpop.permute.xlu0 %2937  ;;  %v3062_v33 = vpack.c.bf16 %v3046_v54, %v3045_v37  ;;  %4765 = vmatmul.mubr.msk.bf16.vlgmr.msra.gmra.mxu1 %vm638_vm4, %v6172_v40  ;;  %v3003_v6 = vmul.f32 0.70710677, %v2971_v19  ;;  %v2987_v63 = vmul.f32 0.5, %v2971_v19 }
 0x591   : > { %v6220_v58 = vadd.f32 %v2938_v59, %v2892_v25  ;;  %4776 = vmatprep.mubr.msk.bf16.mxu1 %vm5159_vm1, %v5158_v2  ;;  %v2860_v31 = vpop.permute.xlu1 %2859 }
 0x592   : > { %v5076_v24 = vpop.eup %5075  ;;  %v3445_v57 = vsel %vm1431_vm3, %v3062_v33, 0  ;;  %v3503_v32 = vrot.slane %v3062_v33, 4  ;;  %v2893_v14 = vmul.f32 %v2860_v31, %v6120_v60  ;;  %v2985_v60 = vmul.f32 0.5, %v6211_v9  ;;  %v3194_v31 = vld [vmem:[%s6649_s10 + $0x10] sm:$0xff] }
 0x593   : > { %v3032_v46 = vadd.f32 1.0, %v5076_v24  ;;  %v3004_v21 = vmul.f32 0.70710677, %v6220_v58  ;;  %v5078_v51 = vpop.eup %5077  ;;  %4769 = vmatpush3.bf16.msra.mxu0 %v3445_v57  ;;  %v2988_v15 = vmul.f32 0.5, %v6220_v58 }
 0x594   : > { %v2862_v38 = vpop.permute.xlu0 %2861  ;;  %v3031_v1 = vadd.f32 1.0, %v5078_v51  ;;  %4780 = vmatprep.subr.bf16.mxu0 %v5158_v2  ;;  %v3505_v62 = vsel %vm1431_vm3, %v3503_v32, 0 }
 0x595   : > { %5083 = verf.f32 %v3004_v21  ;;  %v3048_v47 = vmul.f32 %v3032_v46, %v2984_v3  ;;  %v2894_v13 = vmul.f32 %v2862_v38, %v6114_v5  ;;  %4775 = vmatpush3.bf16.msra.mxu1 %v3505_v62  ;;  %v2940_v36 = vpop.permute.xlu1 %2939  ;;  %v3136_v38 = vstv %s3071_s25 }
 0x596   : > { %v3047_v61 = vmul.f32 %v3031_v1, %v2983_v39  ;;  %5085 = verf.f32 %v3003_v6  ;;  %4771 = vmatmul.mubr.msk.bf16.vlgmr.msra.gmra.mxu0 %vm638_vm4, %v6172_v40  ;;  %4786 = vmatprep.subr.bf16.mxu1 %v5158_v2  ;;  %v2973_v29 = vadd.f32 %v2940_v36, %v2893_v14  ;;  %v3196_v39 = vstv %s6297_s0  ;;  %s3324_s0 = sadd.s32 %s4372_s28, %s5456_s21  ;;  %s3618_s28 = sadd.s32 %s4382_s30, %s5456_s21 }
 0x597   : > { %4782 = vmatprep.mubr.msk.bf16.mxu0 %vm5159_vm1, %v5158_v2  ;;  %s6344_s24 = sld [smem:[#allocation5 + %s3324_s0]]  ;;  %s4378_s0 = sadd.s32 896, %s5458_s18 }
 0x598   : > { %v2942_v4 = vpop.permute.xlu0 %2941  ;;  %v3063_v52 = vpack.c.bf16 %v3048_v47, %v3047_v61  ;;  %4777 = vmatmul.mubr.msk.bf16.vlgmr.msra.gmra.mxu1 %vm638_vm4, %v6172_v40  ;;  %v3005_v23 = vmul.f32 0.70710677, %v2973_v29  ;;  %v2989_v41 = vmul.f32 0.5, %v2973_v29  ;;  %s3500_s12 = sadd.s32 %s4378_s0, %s5456_s21  ;;  %s3736_s0 = sadd.s32 %s4386_s26, %s5456_s21 }
 0x599   : > { %v2974_v12 = vadd.f32 %v2942_v4, %v2894_v13  ;;  %4788 = vmatprep.mubr.msk.bf16.mxu1 %vm5159_vm1, %v5158_v2  ;;  %v3135_v4 = vld [vmem:[%s6649_s10 + $0x8] sm:$0xff]  ;;  %s6395_s27 = sld [smem:[#allocation5 + %s3500_s12]] }
 0x59a   : > { %v5080_v0 = vpop.eup %5079  ;;  %v3563_v35 = vsel %vm1431_vm3, %v3063_v52, 0  ;;  %v3621_v44 = vrot.slane %v3063_v52, 4  ;;  %v3195_v52 = vld [vmem:[%s6649_s10 + $0x18] sm:$0xff] }
 0x59b   : > { %v3034_v5 = vadd.f32 1.0, %v5080_v0  ;;  %v3006_v20 = vmul.f32 0.70710677, %v2974_v12  ;;  %v5082_v34 = vpop.eup %5081  ;;  %4781 = vmatpush3.bf16.msra.mxu0 %v3563_v35  ;;  %v2990_v54 = vmul.f32 0.5, %v2974_v12 }
 0x59c   : > { %v3033_v27 = vadd.f32 1.0, %v5082_v34  ;;  %4792 = vmatprep.subr.bf16.mxu0 %v5158_v2  ;;  %v3623_v26 = vsel %vm1431_vm3, %v3621_v44, 0  ;;  %v3254_v44 = vstv %s6312_s23  ;;  %s6357_s23 = sld [smem:[#allocation5 + %s3382_s20]] }
 0x59d   : > { %5087 = verf.f32 %v3006_v20  ;;  %v3050_v30 = vmul.f32 %v3034_v5, %v2986_v55  ;;  %4787 = vmatpush3.bf16.msra.mxu1 %v3623_v26 }
 0x59e   : > { %v3049_v18 = vmul.f32 %v3033_v27, %v2985_v60  ;;  %5089 = verf.f32 %v3005_v23  ;;  %4783 = vmatmul.mubr.msk.bf16.vlgmr.msra.gmra.mxu0 %vm638_vm4, %v6172_v40  ;;  %4798 = vmatprep.subr.bf16.mxu1 %v5158_v2  ;;  %v3252_v27 = vld [vmem:[%s6649_s10 + $0x20] sm:$0xff] }
 0x59f   : > { %4794 = vmatprep.mubr.msk.bf16.mxu0 %vm5159_vm1, %v5158_v2 }
 0x5a0   : > { %v3064_v16 = vpack.c.bf16 %v3050_v30, %v3049_v18  ;;  %4789 = vmatmul.mubr.msk.bf16.vlgmr.msra.gmra.mxu1 %vm638_vm4, %v6172_v40  ;;  %v3314_v18 = vstv %s6327_s3 }
 0x5a1   : > { %4800 = vmatprep.mubr.msk.bf16.mxu1 %vm5159_vm1, %v5158_v2 }
 0x5a2   : > { %v5084_v49 = vpop.eup %5083  ;;  %v3681_v28 = vsel %vm1431_vm3, %v3064_v16, 0  ;;  %v3739_v43 = vrot.slane %v3064_v16, 4  ;;  %v6299_v7 = vpop.permute.xlu1 %3074 }
 0x5a3   : > { %v3036_v10 = vadd.f32 1.0, %v5084_v49  ;;  %v5086_v48 = vpop.eup %5085  ;;  %4793 = vmatpush3.bf16.msra.mxu0 %v3681_v28 }
 0x5a4   : > { %v3035_v11 = vadd.f32 1.0, %v5086_v48  ;;  %v3741_v45 = vsel %vm1431_vm3, %v3739_v43, 0  ;;  %4804 = vmatprep.subr.bf16.mxu0 %v5158_v2 }
 0x5a5   : > { %v3052_v9 = vmul.f32 %v3036_v10, %v2988_v15  ;;  %4799 = vmatpush3.bf16.msra.mxu1 %v3741_v45  ;;  %v6305_v57 = vpop.permute.xlu0 %3079  ;;  %v3312_v15 = vld [vmem:[%s6649_s10 + $0x30] sm:$0xff] }
 0x5a6   : > { %v3051_v22 = vmul.f32 %v3035_v11, %v2987_v63  ;;  %4795 = vmatmul.mubr.msk.bf16.vlgmr.msra.gmra.mxu0 %vm638_vm4, %v6172_v40  ;;  %4810 = vmatprep.subr.bf16.mxu1 %v5158_v2  ;;  %v3253_v63 = vld [vmem:[%s6649_s10 + $0x28] sm:$0xff] }
 0x5a7   : > { %4806 = vmatprep.mubr.msk.bf16.mxu0 %vm5159_vm1, %v5158_v2 }
 0x5a8   : > { %v3065_v42 = vpack.c.bf16 %v3052_v9, %v3051_v22  ;;  %4801 = vmatmul.mubr.msk.bf16.vlgmr.msra.gmra.mxu1 %vm638_vm4, %v6172_v40 }
 0x5a9   : > { %4812 = vmatprep.mubr.msk.bf16.mxu1 %vm5159_vm1, %v5158_v2 }
 0x5aa   : > { %v5088_v17 = vpop.eup %5087  ;;  %v3799_v53 = vsel %vm1431_vm3, %v3065_v42, 0  ;;  %v3857_v25 = vrot.slane %v3065_v42, 4  ;;  %v3372_v42 = vstv %s6344_s24  ;;  %s4380_s24 = sadd.s32 1024, %s5458_s18 }
 0x5ab   : > { %v3038_v56 = vadd.f32 1.0, %v5088_v17  ;;  %v5090_v50 = vpop.eup %5089  ;;  %4805 = vmatpush3.bf16.msra.mxu0 %v3799_v53  ;;  %v3313_v53 = vld [vmem:[%s6649_s10 + $0x38] sm:$0xff]  ;;  %s3560_s3 = sadd.s32 %s4380_s24, %s5456_s21  ;;  %s4390_s24 = sadd.s32 1664, %s5458_s18 }
 0x5ac   : > { %v3037_v59 = vadd.f32 1.0, %v5090_v50  ;;  %v3859_v58 = vsel %vm1431_vm3, %v3857_v25, 0  ;;  %4816 = vmatprep.subr.bf16.mxu0 %v5158_v2  ;;  %s6417_s16 = sld [smem:[#allocation5 + %s3560_s3]]  ;;  %s3854_s11 = sadd.s32 %s4390_s24, %s5456_s21 }
 0x5ad   : > { %v3054_v37 = vmul.f32 %v3038_v56, %v2990_v54  ;;  %4811 = vmatpush3.bf16.msra.mxu1 %v3859_v58 }
 0x5ae   : > { %v3053_v24 = vmul.f32 %v3037_v59, %v2989_v41  ;;  %4807 = vmatmul.mubr.msk.bf16.vlgmr.msra.gmra.mxu0 %vm638_vm4, %v6172_v40  ;;  %4822 = vmatprep.subr.bf16.mxu1 %v5158_v2  ;;  %v3370_v59 = vld [vmem:[%s6649_s10 + $0x40] sm:$0xff] }
 0x5af   : > { %4818 = vmatprep.mubr.msk.bf16.mxu0 %vm5159_vm1, %v5158_v2 }
 0x5b0   : > { %v3066_v46 = vpack.c.bf16 %v3054_v37, %v3053_v24  ;;  %4813 = vmatmul.mubr.msk.bf16.vlgmr.msra.gmra.mxu1 %vm638_vm4, %v6172_v40 }
 0x5b1   : > { %4824 = vmatprep.mubr.msk.bf16.mxu1 %vm5159_vm1, %v5158_v2 }
 0x5b2   : > { %v3917_v8 = vsel %vm1431_vm3, %v3066_v46, 0  ;;  %v3975_v21 = vrot.slane %v3066_v46, 4  ;;  %v3432_v46 = vstv %s6357_s23  ;;  %s6437_s23 = sld [smem:[#allocation5 + %s3618_s28]] }
 0x5b3   : > { %4817 = vmatpush3.bf16.msra.mxu0 %v3917_v8 }
 0x5b4   : > { %v3977_v33 = vsel %vm1431_vm3, %v3975_v21, 0 }
 0x5b5   : > { %4823 = vmatpush3.bf16.msra.mxu1 %v3977_v33 }
 0x5b6   : > { %4819 = vmatmul.mubr.msk.bf16.vlgmr.msra.gmra.mxu0 %vm638_vm4, %v6172_v40 }
 0x5b8   : > { %4825 = vmatmul.mubr.msk.bf16.vlgmr.msra.gmra.mxu1 %vm638_vm4, %v6172_v40  ;;  %v3134_v40 = vld [vmem:[%s6649_s10] sm:$0xff] }
 0x63d   : > { %v3127_v2 = vpop.f32.mrf.mxu0 }
 0x63e   : > { %v3128_v3 = vadd.f32 %v3127_v2, %v6299_v7 }
 0x63f   : > { %v4736_v19 = vpop.f32.mrf.mxu0  ;;  %v3187_v51 = vpop.f32.mrf.mxu1 }
 0x640   : > { %v3137_v32 = vmul.f32 %v3136_v38, %v3128_v3  ;;  %v3188_v47 = vadd.f32 %v3187_v51, %v6299_v7  ;;  %v3371_v51 = vld [vmem:[%s6649_s10 + $0x48] sm:$0xff] }
 0x641   : > { %v3130_v1 = vpop.f32.mrf.mxu0  ;;  %v4742_v6 = vpop.f32.mrf.mxu1 }
 0x642   : > { %v3131_v13 = vadd.f32 %v3130_v1, %v6305_v57  ;;  %v3139_v62 = vadd.f32 %v3137_v32, %v3134_v40  ;;  %v3197_v12 = vmul.f32 %v3196_v39, %v3188_v47 }
 0x643   : > { %v4737_v61 = vpop.f32.mrf.mxu0  ;;  %v3190_v0 = vpop.f32.mrf.mxu1 }
 0x644   : > { %v3138_v5 = vmul.f32 %v3136_v38, %v3131_v13  ;;  %3141 = vst.msk [vmem:[%s6649_s10] sm:$0xff] %vm638_vm4, %v3139_v62  ;;  %v3191_v14 = vadd.f32 %v3190_v0, %v6305_v57  ;;  %v3199_v20 = vadd.f32 %v3197_v12, %v3194_v31  ;;  %v3430_v38 = vld [vmem:[%s6649_s10 + $0x50] sm:$0xff]  ;;  %v3490_v31 = vstv %s6375_s19  ;;  %s4384_s19 = sadd.s32 1280, %s5458_s18 }
 0x645   : > { %v4743_v55 = vpop.f32.mrf.mxu1  ;;  %s3678_s20 = sadd.s32 %s4384_s19, %s5456_s21  ;;  %s4394_s19 = sadd.s32 1920, %s5458_s18 }
 0x646   : > { %v3140_v36 = vadd.f32 %v3138_v5, %v3135_v4  ;;  %v3198_v29 = vmul.f32 %v3196_v39, %v3191_v14  ;;  %3201 = vst.msk [vmem:[%s6649_s10 + $0x10] sm:$0xff] %vm638_vm4, %v3199_v20  ;;  %v3245_v34 = vpop.f32.mrf.mxu0  ;;  %v3431_v4 = vld [vmem:[%s6649_s10 + $0x58] sm:$0xff]  ;;  %v3488_v5 = vld [vmem:[%s6649_s10 + $0x60] sm:$0xff]  ;;  %s6459_s25 = sld [smem:[#allocation5 + %s3678_s20]]  ;;  %s3972_s26 = sadd.s32 %s4394_s19, %s5456_s21 }
 0x647   : > { %v3246_v60 = vadd.f32 %v3245_v34, %v6299_v7 }
 0x648   : > { %3142 = vst.msk [vmem:[%s6649_s10 + $0x8] sm:$0xff] %vm638_vm4, %v3140_v36  ;;  %v3200_v35 = vadd.f32 %v3198_v29, %v3195_v52  ;;  %v4748_v30 = vpop.f32.mrf.mxu0  ;;  %v3305_v26 = vpop.f32.mrf.mxu1  ;;  %v3550_v36 = vstv %s6395_s27  ;;  %s6479_s27 = sld [smem:[#allocation5 + %s3736_s0]] }
 0x649   : > { %v3255_v23 = vmul.f32 %v3254_v44, %v3246_v60  ;;  %v3306_v49 = vadd.f32 %v3305_v26, %v6299_v7  ;;  %s6562_s0 = sld [smem:[#allocation5 + %s3972_s26]] }
 0x64a   : > { %3202 = vst.msk [vmem:[%s6649_s10 + $0x18] sm:$0xff] %vm638_vm4, %v3200_v35  ;;  %v3248_v10 = vpop.f32.mrf.mxu0  ;;  %v4754_v28 = vpop.f32.mrf.mxu1 }
 0x64b   : > { %v3257_v16 = vadd.f32 %v3255_v23, %v3252_v27  ;;  %v3249_v43 = vadd.f32 %v3248_v10, %v6305_v57  ;;  %v3315_v48 = vmul.f32 %v3314_v18, %v3306_v49  ;;  %v3489_v23 = vld [vmem:[%s6649_s10 + $0x68] sm:$0xff]  ;;  %v3608_v28 = vstv %s6417_s16  ;;  %s4388_s16 = sadd.s32 1536, %s5458_s18 }
 0x64c   : > { %v4749_v11 = vpop.f32.mrf.mxu0  ;;  %v3308_v45 = vpop.f32.mrf.mxu1  ;;  %s3796_s1 = sadd.s32 %s4388_s16, %s5456_s21 }
 0x64d   : > { %3259 = vst.msk [vmem:[%s6649_s10 + $0x20] sm:$0xff] %vm638_vm4, %v3257_v16  ;;  %v3256_v9 = vmul.f32 %v3254_v44, %v3249_v43  ;;  %v3317_v22 = vadd.f32 %v3315_v48, %v3312_v15  ;;  %v3309_v17 = vadd.f32 %v3308_v45, %v6305_v57  ;;  %v3548_v44 = vld [vmem:[%s6649_s10 + $0x70] sm:$0xff]  ;;  %v3549_v48 = vld [vmem:[%s6649_s10 + $0x78] sm:$0xff]  ;;  %v3606_v45 = vld [vmem:[%s6649_s10 + $0x80] sm:$0xff]  ;;  %s6501_s30 = sld [smem:[#allocation5 + %s3796_s1]] }
 0x64e   : > { %v3363_v56 = vpop.f32.mrf.mxu0  ;;  %v4755_v25 = vpop.f32.mrf.mxu1 }
 0x64f   : > { %v3258_v54 = vadd.f32 %v3256_v9, %v3253_v63  ;;  %v3364_v50 = vadd.f32 %v3363_v56, %v6299_v7  ;;  %3319 = vst.msk [vmem:[%s6649_s10 + $0x30] sm:$0xff] %vm638_vm4, %v3317_v22  ;;  %v3316_v41 = vmul.f32 %v3314_v18, %v3309_v17 }
 0x650   : > { %v4760_v37 = vpop.f32.mrf.mxu0  ;;  %v3423_v24 = vpop.f32.mrf.mxu1 }
 0x651   : > { %3260 = vst.msk [vmem:[%s6649_s10 + $0x28] sm:$0xff] %vm638_vm4, %v3258_v54  ;;  %v3373_v58 = vmul.f32 %v3372_v42, %v3364_v50  ;;  %v3318_v8 = vadd.f32 %v3316_v41, %v3313_v53  ;;  %v3424_v21 = vadd.f32 %v3423_v24, %v6299_v7  ;;  %v3666_v41 = vld [vmem:[%s6649_s10 + $0x90] sm:$0xff]  ;;  %v3607_v24 = vld [vmem:[%s6649_s10 + $0x88] sm:$0xff] }
 0x652   : > { %v3366_v33 = vpop.f32.mrf.mxu0  ;;  %v4766_v3 = vpop.f32.mrf.mxu1 }
 0x653   : > { %v3375_v2 = vadd.f32 %v3373_v58, %v3370_v59  ;;  %v3367_v19 = vadd.f32 %v3366_v33, %v6305_v57  ;;  %3320 = vst.msk [vmem:[%s6649_s10 + $0x38] sm:$0xff] %vm638_vm4, %v3318_v8  ;;  %v3433_v40 = vmul.f32 %v3432_v46, %v3424_v21  ;;  %v3726_v3 = vstv %s6459_s25  ;;  %s4392_s25 = sadd.s32 1792, %s5458_s18 }
 0x654   : > { %v4761_v39 = vpop.f32.mrf.mxu0  ;;  %v3426_v1 = vpop.f32.mrf.mxu1  ;;  %s3914_s29 = sadd.s32 %s4392_s25, %s5456_s21 }
 0x655   : > { %3377 = vst.msk [vmem:[%s6649_s10 + $0x40] sm:$0xff] %vm638_vm4, %v3375_v2  ;;  %v3374_v32 = vmul.f32 %v3372_v42, %v3367_v19  ;;  %v3435_v47 = vadd.f32 %v3433_v40, %v3430_v38  ;;  %v3427_v6 = vadd.f32 %v3426_v1, %v6305_v57  ;;  %v3668_v42 = vstv %s6437_s23  ;;  %v3667_v40 = vld [vmem:[%s6649_s10 + $0x98] sm:$0xff]  ;;  %v3724_v1 = vld [vmem:[%s6649_s10 + $0xa0] sm:$0xff]  ;;  %s6521_s23 = sld [smem:[#allocation5 + %s3854_s11]] }
 0x656   : > { %v3481_v13 = vpop.f32.mrf.mxu0  ;;  %v4767_v61 = vpop.f32.mrf.mxu1  ;;  %s6543_s18 = sld [smem:[#allocation5 + %s3914_s29]] }
 0x657   : > { %v3376_v62 = vadd.f32 %v3374_v32, %v3371_v51  ;;  %v3482_v12 = vadd.f32 %v3481_v13, %v6299_v7  ;;  %3437 = vst.msk [vmem:[%s6649_s10 + $0x50] sm:$0xff] %vm638_vm4, %v3435_v47  ;;  %v3434_v0 = vmul.f32 %v3432_v46, %v3427_v6 }
 0x658   : > { %v4772_v14 = vpop.f32.mrf.mxu0  ;;  %v3541_v52 = vpop.f32.mrf.mxu1 }
 0x659   : > { %3378 = vst.msk [vmem:[%s6649_s10 + $0x48] sm:$0xff] %vm638_vm4, %v3376_v62  ;;  %v3491_v20 = vmul.f32 %v3490_v31, %v3482_v12  ;;  %v3436_v55 = vadd.f32 %v3434_v0, %v3431_v4  ;;  %v3542_v29 = vadd.f32 %v3541_v52, %v6299_v7  ;;  %v3784_v0 = vld [vmem:[%s6649_s10 + $0xb0] sm:$0xff]  ;;  %v3725_v52 = vld [vmem:[%s6649_s10 + $0xa8] sm:$0xff] }
 0x65a   : > { %v3484_v35 = vpop.f32.mrf.mxu0  ;;  %v4778_v60 = vpop.f32.mrf.mxu1 }
 0x65b   : > { %v3493_v34 = vadd.f32 %v3491_v20, %v3488_v5  ;;  %v3485_v27 = vadd.f32 %v3484_v35, %v6305_v57  ;;  %3438 = vst.msk [vmem:[%s6649_s10 + $0x58] sm:$0xff] %vm638_vm4, %v3436_v55  ;;  %v3551_v30 = vmul.f32 %v3550_v36, %v3542_v29  ;;  %v3844_v60 = vstv %s6501_s30 }
 0x65c   : > { %v4773_v26 = vpop.f32.mrf.mxu0  ;;  %v3544_v49 = vpop.f32.mrf.mxu1 }
 0x65d   : > { %3495 = vst.msk [vmem:[%s6649_s10 + $0x60] sm:$0xff] %vm638_vm4, %v3493_v34  ;;  %v3492_v18 = vmul.f32 %v3490_v31, %v3485_v27  ;;  %v3553_v10 = vadd.f32 %v3551_v30, %v3548_v44  ;;  %v3545_v16 = vadd.f32 %v3544_v49, %v6305_v57  ;;  %v3786_v31 = vstv %s6479_s27  ;;  %v3785_v30 = vld [vmem:[%s6649_s10 + $0xb8] sm:$0xff]  ;;  %v3842_v49 = vld [vmem:[%s6649_s10 + $0xc0] sm:$0xff] }
 0x65e   : > { %v3599_v15 = vpop.f32.mrf.mxu0  ;;  %v4779_v63 = vpop.f32.mrf.mxu1 }
 0x65f   : > { %v3494_v43 = vadd.f32 %v3492_v18, %v3489_v23  ;;  %v3600_v11 = vadd.f32 %v3599_v15, %v6299_v7  ;;  %3555 = vst.msk [vmem:[%s6649_s10 + $0x70] sm:$0xff] %vm638_vm4, %v3553_v10  ;;  %v3552_v9 = vmul.f32 %v3550_v36, %v3545_v16 }
 0x660   : > { %v4784_v22 = vpop.f32.mrf.mxu0  ;;  %v3659_v56 = vpop.f32.mrf.mxu1 }
 0x661   : > { %3496 = vst.msk [vmem:[%s6649_s10 + $0x68] sm:$0xff] %vm638_vm4, %v3494_v43  ;;  %v3609_v17 = vmul.f32 %v3608_v28, %v3600_v11  ;;  %v3554_v54 = vadd.f32 %v3552_v9, %v3549_v48  ;;  %v3660_v53 = vadd.f32 %v3659_v56, %v6299_v7  ;;  %v3902_v9 = vld [vmem:[%s6649_s10 + $0xd0] sm:$0xff]  ;;  %v3843_v56 = vld [vmem:[%s6649_s10 + $0xc8] sm:$0xff] }
 0x662   : > { %v3602_v25 = vpop.f32.mrf.mxu0  ;;  %v4790_v59 = vpop.f32.mrf.mxu1 }
 0x663   : > { %v3611_v50 = vadd.f32 %v3609_v17, %v3606_v45  ;;  %v3603_v37 = vadd.f32 %v3602_v25, %v6305_v57  ;;  %3556 = vst.msk [vmem:[%s6649_s10 + $0x78] sm:$0xff] %vm638_vm4, %v3554_v54  ;;  %v3669_v58 = vmul.f32 %v3668_v42, %v3660_v53  ;;  %v3962_v59 = vstv %s6543_s18 }
 0x664   : > { %v4785_v46 = vpop.f32.mrf.mxu0  ;;  %v3662_v21 = vpop.f32.mrf.mxu1 }
 0x665   : > { %3613 = vst.msk [vmem:[%s6649_s10 + $0x80] sm:$0xff] %vm638_vm4, %v3611_v50  ;;  %v3610_v8 = vmul.f32 %v3608_v28, %v3603_v37  ;;  %v3671_v33 = vadd.f32 %v3669_v58, %v3666_v41  ;;  %v3663_v2 = vadd.f32 %v3662_v21, %v6305_v57  ;;  %v3904_v28 = vstv %s6521_s23  ;;  %v3903_v58 = vld [vmem:[%s6649_s10 + $0xd8] sm:$0xff]  ;;  %v3960_v21 = vld [vmem:[%s6649_s10 + $0xe0] sm:$0xff] }
 0x666   : > { %v3717_v38 = vpop.f32.mrf.mxu0  ;;  %v4791_v51 = vpop.f32.mrf.mxu1 }
 0x667   : > { %v3612_v19 = vadd.f32 %v3610_v8, %v3607_v24  ;;  %v3718_v39 = vadd.f32 %v3717_v38, %v6299_v7  ;;  %3673 = vst.msk [vmem:[%s6649_s10 + $0x90] sm:$0xff] %vm638_vm4, %v3671_v33  ;;  %v3670_v32 = vmul.f32 %v3668_v42, %v3663_v2 }
 0x668   : > { %v4796_v47 = vpop.f32.mrf.mxu0  ;;  %v3777_v13 = vpop.f32.mrf.mxu1 }
 0x669   : > { %3614 = vst.msk [vmem:[%s6649_s10 + $0x88] sm:$0xff] %vm638_vm4, %v3612_v19  ;;  %v3727_v6 = vmul.f32 %v3726_v3, %v3718_v39  ;;  %v3672_v62 = vadd.f32 %v3670_v32, %v3667_v40  ;;  %v3778_v4 = vadd.f32 %v3777_v13, %v6299_v7  ;;  %v4020_v32 = vld [vmem:[%s6649_s10 + $0xf0] sm:$0xff]  ;;  %v3961_v13 = vld [vmem:[%s6649_s10 + $0xe8] sm:$0xff] }
 0x66a   : > { %v3720_v61 = vpop.f32.mrf.mxu0  ;;  %v4802_v5 = vpop.f32.mrf.mxu1 }
 0x66b   : > { %v3729_v12 = vadd.f32 %v3727_v6, %v3724_v1  ;;  %v3721_v14 = vadd.f32 %v3720_v61, %v6305_v57  ;;  %3674 = vst.msk [vmem:[%s6649_s10 + $0x98] sm:$0xff] %vm638_vm4, %v3672_v62  ;;  %v3787_v20 = vmul.f32 %v3786_v31, %v3778_v4 }
 0x66c   : > { %v4797_v36 = vpop.f32.mrf.mxu0  ;;  %v3780_v29 = vpop.f32.mrf.mxu1 }
 0x66d   : > { %3731 = vst.msk [vmem:[%s6649_s10 + $0xa0] sm:$0xff] %vm638_vm4, %v3729_v12  ;;  %v3728_v55 = vmul.f32 %v3726_v3, %v3721_v14  ;;  %v3789_v35 = vadd.f32 %v3787_v20, %v3784_v0  ;;  %v3781_v34 = vadd.f32 %v3780_v29, %v6305_v57  ;;  %v4022_v3 = vstv %s6562_s0  ;;  %v4021_v0 = vld [vmem:[%s6649_s10 + $0xf8] sm:$0xff] }
 0x66e   : > { %v3835_v44 = vpop.f32.mrf.mxu0  ;;  %v4803_v23 = vpop.f32.mrf.mxu1 }
 0x66f   : > { %v3730_v27 = vadd.f32 %v3728_v55, %v3725_v52  ;;  %v3836_v26 = vadd.f32 %v3835_v44, %v6299_v7  ;;  %3791 = vst.msk [vmem:[%s6649_s10 + $0xb0] sm:$0xff] %vm638_vm4, %v3789_v35  ;;  %v3788_v18 = vmul.f32 %v3786_v31, %v3781_v34 }
 0x670   : > { %v4808_v10 = vpop.f32.mrf.mxu0  ;;  %v3895_v15 = vpop.f32.mrf.mxu1 }
 0x671   : > { %3732 = vst.msk [vmem:[%s6649_s10 + $0xa8] sm:$0xff] %vm638_vm4, %v3730_v27  ;;  %v3845_v16 = vmul.f32 %v3844_v60, %v3836_v26  ;;  %v3790_v43 = vadd.f32 %v3788_v18, %v3785_v30  ;;  %v3896_v48 = vadd.f32 %v3895_v15, %v6299_v7 }
 0x672   : > { %v3838_v63 = vpop.f32.mrf.mxu0  ;;  %v4814_v45 = vpop.f32.mrf.mxu1 }
 0x673   : > { %v3847_v11 = vadd.f32 %v3845_v16, %v3842_v49  ;;  %v3839_v22 = vadd.f32 %v3838_v63, %v6305_v57  ;;  %3792 = vst.msk [vmem:[%s6649_s10 + $0xb8] sm:$0xff] %vm638_vm4, %v3790_v43  ;;  %v3905_v17 = vmul.f32 %v3904_v28, %v3896_v48 }
 0x674   : > { %v4809_v42 = vpop.f32.mrf.mxu0  ;;  %v3898_v53 = vpop.f32.mrf.mxu1 }
 0x675   : > { %3849 = vst.msk [vmem:[%s6649_s10 + $0xc0] sm:$0xff] %vm638_vm4, %v3847_v11  ;;  %v3846_v54 = vmul.f32 %v3844_v60, %v3839_v22  ;;  %v3907_v25 = vadd.f32 %v3905_v17, %v3902_v9  ;;  %v3899_v50 = vadd.f32 %v3898_v53, %v6305_v57 }
 0x676   : > { %v3953_v41 = vpop.f32.mrf.mxu0  ;;  %v4815_v24 = vpop.f32.mrf.mxu1 }
 0x677   : > { %v3848_v37 = vadd.f32 %v3846_v54, %v3843_v56  ;;  %v3954_v46 = vadd.f32 %v3953_v41, %v6299_v7  ;;  %3909 = vst.msk [vmem:[%s6649_s10 + $0xd0] sm:$0xff] %vm638_vm4, %v3907_v25  ;;  %v3906_v8 = vmul.f32 %v3904_v28, %v3899_v50 }
 0x678   : > { %v4820_v33 = vpop.f32.mrf.mxu0  ;;  %v4013_v38 = vpop.f32.mrf.mxu1 }
 0x679   : > { %3850 = vst.msk [vmem:[%s6649_s10 + $0xc8] sm:$0xff] %vm638_vm4, %v3848_v37  ;;  %v3963_v2 = vmul.f32 %v3962_v59, %v3954_v46  ;;  %v3908_v19 = vadd.f32 %v3906_v8, %v3903_v58  ;;  %v4014_v40 = vadd.f32 %v4013_v38, %v6299_v7 }
 0x67a   : > { %v3956_v51 = vpop.f32.mrf.mxu0  ;;  %v4826_v1 = vpop.f32.mrf.mxu1 }
 0x67b   : > { %v3965_v39 = vadd.f32 %v3963_v2, %v3960_v21  ;;  %v3957_v47 = vadd.f32 %v3956_v51, %v6305_v57  ;;  %3910 = vst.msk [vmem:[%s6649_s10 + $0xd8] sm:$0xff] %vm638_vm4, %v3908_v19  ;;  %v4023_v6 = vmul.f32 %v4022_v3, %v4014_v40 }
 0x67c   : > { %v4821_v7 = vpop.f32.mrf.mxu0  ;;  %v4016_v62 = vpop.f32.mrf.mxu1 }
 0x67d   : > { %3967 = vst.msk [vmem:[%s6649_s10 + $0xe0] sm:$0xff] %vm638_vm4, %v3965_v39  ;;  %v3964_v31 = vmul.f32 %v3962_v59, %v3957_v47  ;;  %v4025_v4 = vadd.f32 %v4023_v6, %v4020_v32  ;;  %v4017_v61 = vadd.f32 %v4016_v62, %v6305_v57 }
 0x67e   : > { %v4827_v5 = vpop.f32.mrf.mxu1 }
 0x67f   : > { %v3966_v12 = vadd.f32 %v3964_v31, %v3961_v13  ;;  %4027 = vst.msk [vmem:[%s6649_s10 + $0xf0] sm:$0xff] %vm638_vm4, %v4025_v4  ;;  %v4024_v14 = vmul.f32 %v4022_v3, %v4017_v61 }
 0x681   : > { %3968 = vst.msk [vmem:[%s6649_s10 + $0xe8] sm:$0xff] %vm638_vm4, %v3966_v12  ;;  %v4026_v20 = vadd.f32 %v4024_v14, %v4021_v0 }
 0x683   : > { %4028 = vst.msk [vmem:[%s6649_s10 + $0xf8] sm:$0xff] %vm638_vm4, %v4026_v20 }
 0x684 PF: > { %s22_s15 = sadd.s32 1, %s5151_s15   ;;  %s6665_s13 = smov %s5147_s14 }
 0x685   : > { %p19_p8 = scmp.ge.s32.totalorder %s22_s15, 6   ;;  %s6666_s14 = smov %s6668_s17 }
 0x687   :  { %21 = sbr.rel (!%p19_p8) target bundleno = 7 (0x7), region = 128 }
 0x68c   :  { %4051 = vsyncpa [#allocation4], 1 }
 0x68d   :  { %4053 = vsyncpa [#allocation4 + $0x1], 1 }
 0x68e   :  { %4054 = vsyncpa [#allocation6], 1 }

</bundles_post_ra>
